<compile_context>
chip_gen: v7x
topology: tpu7x:2x2x1
jax: 0.10.0
libtpu: 0.0.40
codegen_flags: <defaults>
</compile_context>

<pallas_src>
import functools

import jax
import jax.numpy as jnp
from jax.experimental import pallas as pl
from jax.experimental.pallas import tpu as pltpu

Z_DIM = 20
_PARALLEL = pltpu.CompilerParams(dimension_semantics=("parallel",))


def _apply_act(y, act):
    if act == "relu":
        return jnp.maximum(y, 0.0)
    if act == "sigmoid":
        return jax.nn.sigmoid(y)
    return y


def _pick_tm(m, cap=512):
    """Row tile: multiple of 16 sublanes (bf16 packing on v5e), and >=2 grid
    steps whenever M is big enough to split (keeps both v7x TCs busy)."""
    if m <= 16:
        return m
    half = (m + 1) // 2
    return min(cap, ((half + 15) // 16) * 16)


# ----------------------------------------------------------------------------
# Tiled matmul + bias + activation kernel (used by every conv/linear layer;
# batch and spatial dims are folded into the row dimension by the wrappers).
# ----------------------------------------------------------------------------
def _matmul_bias_act_kernel(x_ref, w_ref, b_ref, o_ref, *, act):
    y = jnp.dot(x_ref[...].astype(jnp.bfloat16), w_ref[...],
                preferred_element_type=jnp.float32)
    y = _apply_act(y + b_ref[...], act)
    o_ref[...] = y.astype(o_ref.dtype)


def linear_act(x, w, b, act="none", out_dtype=jnp.float32, tm_cap=512):
    """act(x @ w + b).  x:(M,K)  w:(K,N) bf16  b:(1,N) f32.  Rows are padded to
    a multiple of the tile so every block is full (deterministic, no OOB reads);
    zero rows just produce act(bias) and are sliced off."""
    M, K = x.shape
    N = w.shape[1]
    tm = _pick_tm(M, tm_cap)
    Mp = ((M + tm - 1) // tm) * tm
    if Mp != M:
        x = jnp.pad(x, ((0, Mp - M), (0, 0)))
    y = pl.pallas_call(
        functools.partial(_matmul_bias_act_kernel, act=act),
        out_shape=jax.ShapeDtypeStruct((Mp, N), out_dtype),
        grid=(Mp // tm,),
        in_specs=[pl.BlockSpec((tm, K), lambda i: (i, 0)),
                  pl.BlockSpec((K, N), lambda i: (0, 0)),
                  pl.BlockSpec((1, N), lambda i: (0, 0))],
        out_specs=pl.BlockSpec((tm, N), lambda i: (i, 0)),
        compiler_params=_PARALLEL,
    )(x, w, b)
    return y[:M] if Mp != M else y


# ----------------------------------------------------------------------------
# Fused encoder heads (fc21|fc22 concatenated into one matmul) + reparam.
# ----------------------------------------------------------------------------
def _head_reparam_kernel(h_ref, w_ref, b_ref, eps_ref, mu_ref, lv_ref, z_ref):
    zdim = eps_ref.shape[-1]
    y = jnp.dot(h_ref[...].astype(jnp.bfloat16), w_ref[...],
                preferred_element_type=jnp.float32) + b_ref[...]
    mu = y[:, :zdim]
    lv = y[:, zdim:]
    z = mu + eps_ref[...] * jnp.exp(0.5 * lv)      # exp on the EUP slot
    mu_ref[...] = mu
    lv_ref[...] = lv
    z_ref[...] = z


def encode_head_reparam(h, w_heads, b_heads, eps):
    M, K = h.shape
    zdim = eps.shape[1]
    N = w_heads.shape[1]
    sd = jax.ShapeDtypeStruct((M, zdim), jnp.float32)
    row_spec = pl.BlockSpec((M, K), lambda i: (0, 0))
    zn_spec = pl.BlockSpec((M, zdim), lambda i: (0, 0))
    mu, lv, z = pl.pallas_call(
        _head_reparam_kernel,
        out_shape=(sd, sd, sd),
        grid=(1,),
        in_specs=[row_spec,
                  pl.BlockSpec((K, N), lambda i: (0, 0)),
                  pl.BlockSpec((1, N), lambda i: (0, 0)),
                  zn_spec],
        out_specs=(zn_spec, zn_spec, zn_spec),
        compiler_params=_PARALLEL,
    )(h, w_heads, b_heads, eps)
    return mu, lv, z


# ----------------------------------------------------------------------------
# Fused final decoder kernel: dct3 (phase-decomposed stride-2 ConvTranspose)
# + ReLU + dct4 (1x1, 32->1 per phase, kept in f32) + sigmoid.
# The result is produced directly in transposed layout (4 phases, pixels) so
# every store is lane-dense (>=128 lanes); weights are pre-transposed so no
# in-kernel transpose is required:  y^T = W3^T @ cols^T,  z^T = W4^T @ relu(y^T).
# ----------------------------------------------------------------------------
def _decode_out_kernel(cT_ref, w3T_ref, b3_ref, w4T_ref, b4_ref, o_ref):
    y = jnp.dot(w3T_ref[...], cT_ref[...].astype(jnp.bfloat16),
                preferred_element_type=jnp.float32) + b3_ref[...]
    y = jnp.maximum(y, 0.0)                                   # dct3 ReLU
    z = jnp.dot(w4T_ref[...], y, preferred_element_type=jnp.float32) + b4_ref[...]
    o_ref[...] = jax.nn.sigmoid(z)                            # (4, tm) lane-dense


# ----------------------------------------------------------------------------
# Wrapper-side im2col (tiny: taps stacked along K; feeds the matmul kernels).
# ----------------------------------------------------------------------------
def _im2col(x, kh, kw, stride=1):
    B, H, W, C = x.shape
    oh = (H - kh) // stride + 1
    ow = (W - kw) // stride + 1
    cols = []
    for i in range(kh):
        for j in range(kw):
            cols.append(x[:, i:i + stride * oh:stride, j:j + stride * ow:stride, :])
    cols = jnp.concatenate(cols, axis=-1)            # (B, oh, ow, kh*kw*C)
    return cols.reshape(B * oh * ow, kh * kw * C), oh, ow


def conv2d(x, w_mat, b, kh, kw, stride, act, out_dtype):
    """Plain VALID conv, NHWC, as one batched im2col matmul."""
    B = x.shape[0]
    cout = w_mat.shape[1]
    cols, oh, ow = _im2col(x, kh, kw, stride)
    y = linear_act(cols, w_mat, b, act=act, out_dtype=out_dtype)
    return y.reshape(B, oh, ow, cout)


def conv_transpose2d(x, w_stacked, b_stacked, kh, stride, act, out_dtype):
    """Exact ConvTranspose2d (padding=0) via sub-pixel phase decomposition:
    pad by ceil(kh/stride)-1, one im2col, one matmul against the phase-stacked
    weights, then interleave the phases in the wrapper.  (stride=1 degenerates
    to the usual flipped-kernel full conv.)"""
    B, H, W, C = x.shape
    s = stride
    mmax = -(-kh // s)
    cout = w_stacked.shape[1] // (s * s)
    xp = jnp.pad(x, ((0, 0), (mmax - 1, mmax - 1), (mmax - 1, mmax - 1), (0, 0)))
    cols, q, r = _im2col(xp, mmax, mmax, 1)
    y = linear_act(cols, w_stacked, b_stacked, act=act, out_dtype=out_dtype)
    # Interleave phases: out[b, s*qi+py, s*ri+px, c] = y[b, qi, ri, (py,px), c].
    # Phases with fewer valid taps carry finite junk in their last row/col
    # (relu-bounded); it is sliced off below before any use.
    y = y.reshape(B, q, r, s, s, cout)
    y = jnp.transpose(y, (0, 1, 3, 2, 4, 5)).reshape(B, q * s, r * s, cout)
    oh = (H - 1) * s + kh
    return y[:, :oh, :oh, :]


def decode_output(x, w3T, b3, w4T, b4):
    """Fused dct3 (k=4, s=2 ConvTranspose, phase-decomposed) + ReLU + dct4
    (1x1, 32->1) + sigmoid.  x:(B,13,13,32) -> recon (B,784) f32."""
    B, H, W, C = x.shape
    s, kh, mmax = 2, 4, 2
    xp = jnp.pad(x, ((0, 0), (mmax - 1, mmax - 1), (mmax - 1, mmax - 1), (0, 0)))
    cols, q, r = _im2col(xp, mmax, mmax, 1)          # (B*14*14, 128)
    M, K = cols.shape
    tm = 128 if M <= 4096 else 512                   # lane-dense output tiles
    Mp = -(-M // tm) * tm
    # Zero-pad rows then transpose: padded columns are zeros -> sigmoid(bias-ish),
    # finite, and sliced off below (safe for the bounded epilogue).
    colsT = jnp.pad(cols, ((0, Mp - M), (0, 0))).T   # (K, Mp)
    N3 = w3T.shape[0]
    out = pl.pallas_call(
        _decode_out_kernel,
        out_shape=jax.ShapeDtypeStruct((s * s, Mp), jnp.float32),
        grid=(Mp // tm,),
        in_specs=[pl.BlockSpec((K, tm), lambda i: (0, i)),
                  pl.BlockSpec((N3, K), lambda i: (0, 0)),
                  pl.BlockSpec((N3, 1), lambda i: (0, 0)),
                  pl.BlockSpec((s * s, N3), lambda i: (0, 0)),
                  pl.BlockSpec((s * s, 1), lambda i: (0, 0))],
        out_specs=pl.BlockSpec((s * s, tm), lambda i: (0, i)),
        compiler_params=_PARALLEL,
    )(colsT, w3T, b3, w4T, b4)
    out = out[:, :M]                                 # drop padded junk pixels
    oh = (H - 1) * s + kh                            # 28
    y = out.reshape(s, s, B, q, r)                   # (py, px, b, qi, ri)
    y = jnp.transpose(y, (2, 3, 0, 4, 1)).reshape(B, q * s, r * s)
    return y[:, :oh, :oh].reshape(B, oh * oh)        # == torch .view(-1,784), C==1


# ----------------------------------------------------------------------------
# Parameters: torch-layout synthetic init + one-time layout preprocessing
# ----------------------------------------------------------------------------
def init_params(key, z_dim=Z_DIM):
    shapes = {
        # encoder
        "conv1_w": (32, 1, 3, 3),   "conv1_b": (32,),
        "conv2_w": (64, 32, 3, 3),  "conv2_b": (64,),
        "conv3_w": (64, 64, 3, 3),  "conv3_b": (64,),
        "enc_fc_w": (400, 1024),    "enc_fc_b": (400,),
        "fc21_w": (z_dim, 400),     "fc21_b": (z_dim,),
        "fc22_w": (z_dim, 400),     "fc22_b": (z_dim,),
        # decoder
        "pre_w": (64 * 4 * 4, z_dim), "pre_b": (64 * 4 * 4,),
        "dct1_w": (64, 64, 3, 3),   "dct1_b": (64,),
        "dct2_w": (64, 32, 3, 3),   "dct2_b": (32,),
        "dct3_w": (32, 32, 4, 4),   "dct3_b": (32,),
        "dct4_w": (32, 1, 1, 1),    "dct4_b": (1,),
    }
    keys = jax.random.split(key, len(shapes))
    return {name: 0.05 * jax.random.normal(k, shp, jnp.float32)
            for k, (name, shp) in zip(keys, sorted(shapes.items()))}


def prepare_params(p, z_dim=Z_DIM):
    """One-time hoisted weight-layout transforms + bf16 casts."""
    f32, bf16 = jnp.float32, jnp.bfloat16

    def conv_mat(w_oihw):          # -> (kh*kw*Cin, Cout), feature order [kh,kw,Cin]
        co, ci, kh, kw = w_oihw.shape
        return jnp.transpose(w_oihw, (2, 3, 1, 0)).reshape(kh * kw * ci, co).astype(bf16)

    def convT_phase_mat(w_icohw, stride):
        # ConvTranspose (Cin,Cout,kh,kw) -> phase-stacked stride-1 conv weights:
        # (mmax*mmax*Cin, stride*stride*Cout); phase order py-major, px-minor.
        ci, co, kh, kw = w_icohw.shape
        mmax = -(-kh // stride)
        blocks = []
        for py in range(stride):
            for px in range(stride):
                wp = jnp.zeros((mmax, mmax, ci, co), f32)
                for mp in range(mmax):
                    ky = stride * (mmax - 1 - mp) + py
                    if ky >= kh:
                        continue
                    for nq in range(mmax):
                        kx = stride * (mmax - 1 - nq) + px
                        if kx >= kw:
                            continue
                        wp = wp.at[mp, nq].set(w_icohw[:, :, ky, kx])
                blocks.append(wp.reshape(mmax * mmax * ci, co))
        return jnp.concatenate(blocks, axis=-1).astype(bf16)

    def row_bias(b):
        return b.reshape(1, -1).astype(f32)

    out = {}
    out["conv1_w"] = conv_mat(p["conv1_w"]); out["conv1_b"] = row_bias(p["conv1_b"])
    out["conv2_w"] = conv_mat(p["conv2_w"]); out["conv2_b"] = row_bias(p["conv2_b"])
    out["conv3_w"] = conv_mat(p["conv3_w"]); out["conv3_b"] = row_bias(p["conv3_b"])

    # enc_fc: torch Flatten is NCHW [c,h,w]; we feed NHWC-flattened [h,w,c],
    # so permute the weight rows once here.
    w_fc = p["enc_fc_w"].T.reshape(64, 4, 4, 400)                        # [c,h,w,:]
    out["enc_fc_w"] = jnp.transpose(w_fc, (1, 2, 0, 3)).reshape(1024, 400).astype(bf16)
    out["enc_fc_b"] = row_bias(p["enc_fc_b"])

    # fused mu|logvar heads: one (400, 2*z) matmul
    out["heads_w"] = jnp.concatenate([p["fc21_w"].T, p["fc22_w"].T], axis=1).astype(bf16)
    out["heads_b"] = jnp.concatenate([p["fc21_b"], p["fc22_b"]]).reshape(1, -1).astype(f32)

    # pre-decode: torch view(-1,64,4,4) is [c,h,w]; permute columns so the
    # Pallas linear directly emits NHWC [h,w,c] order.
    w_pre = p["pre_w"].T.reshape(z_dim, 64, 4, 4)                        # [:,c,h,w]
    out["pre_w"] = jnp.transpose(w_pre, (0, 2, 3, 1)).reshape(z_dim, 1024).astype(bf16)
    b_pre = p["pre_b"].reshape(64, 4, 4)
    out["pre_b"] = jnp.transpose(b_pre, (1, 2, 0)).reshape(1, 1024).astype(f32)

    out["dct1_w"] = convT_phase_mat(p["dct1_w"], 1)        # stride 1: flipped full kernel
    out["dct1_b"] = row_bias(p["dct1_b"])
    out["dct2_w"] = convT_phase_mat(p["dct2_w"], 2)        # (256, 4*32)
    out["dct2_b"] = jnp.tile(row_bias(p["dct2_b"]), (1, 4))

    # dct3 phase-stacked weights stored TRANSPOSED so the fused output kernel
    # computes y^T = W3^T @ cols^T (lane-dense result, no in-kernel transpose).
    w3 = convT_phase_mat(p["dct3_w"], 2)                    # (128, 128)
    out["dct3_wT"] = w3.T
    out["dct3_bT"] = jnp.tile(p["dct3_b"].astype(f32), 4).reshape(-1, 1)
    # dct4 (1x1 ConvTranspose 32->1) as a block-diagonal per-phase matvec, f32.
    co3 = p["dct3_w"].shape[1]
    w4 = p["dct4_w"].reshape(co3).astype(f32)
    w4T = jnp.zeros((4, 4 * co3), f32)
    for ph in range(4):
        w4T = w4T.at[ph, ph * co3:(ph + 1) * co3].set(w4)
    out["dct4_wT"] = w4T
    out["dct4_bT"] = jnp.full((4, 1), p["dct4_b"][0], f32)
    return out


# ----------------------------------------------------------------------------
# VAE forward (is_conv=True path)
# ----------------------------------------------------------------------------
def vae_forward(params, x, eps):
    """x: (B, 784) pixels, eps: (B, z_dim) ~ N(0,1).
    Returns (recon(B,784), mu(B,20), logvar(B,20), z(B,20))."""
    B = x.shape[0]
    act_dt = jnp.bfloat16   # hidden activations in bf16 (halves inter-layer HBM traffic)

    # ---- encode ----
    img = x.reshape(B, 28, 28, 1)                   # NHWC == NCHW view since C == 1
    h = conv2d(img, params["conv1_w"], params["conv1_b"], 3, 3, 2, "relu", act_dt)  # (B,13,13,32)
    h = conv2d(h, params["conv2_w"], params["conv2_b"], 3, 3, 2, "relu", act_dt)    # (B,6,6,64)
    h = conv2d(h, params["conv3_w"], params["conv3_b"], 3, 3, 1, "none", act_dt)    # (B,4,4,64)
    h = h.reshape(B, 64 * 4 * 4)                    # NHWC flatten; enc_fc weight pre-permuted
    h = linear_act(h, params["enc_fc_w"], params["enc_fc_b"], act="none",
                   out_dtype=act_dt)                                                 # (B,400)

    # ---- fused heads + reparameterize ----
    mu, logvar, z = encode_head_reparam(h, params["heads_w"], params["heads_b"], eps)

    # ---- decode ----
    d = linear_act(z, params["pre_w"], params["pre_b"], act="none", out_dtype=act_dt)  # (B,1024)
    d = d.reshape(B, 4, 4, 64)                      # pre_w pre-permuted to NHWC order
    d = conv_transpose2d(d, params["dct1_w"], params["dct1_b"], 3, 1, "relu", act_dt)  # (B,6,6,64)
    d = conv_transpose2d(d, params["dct2_w"], params["dct2_b"], 3, 2, "relu", act_dt)  # (B,13,13,32)
    recon = decode_output(d, params["dct3_wT"], params["dct3_bT"],
                          params["dct4_wT"], params["dct4_bT"])                        # (B,784)
    return recon, mu, logvar, z


# TODO(synk): nn.Dropout only exists in the non-conv (is_conv=False) branch and is
# not exercised by this forward pass; it is omitted.

if __name__ == "__main__":
    key = jax.random.PRNGKey(0)
    pkey, xkey, ekey = jax.random.split(key, 3)

    raw_params = init_params(pkey)
    params = prepare_params(raw_params)             # one-time layout/dtype preprocessing

    B = 2
    x = jax.random.uniform(xkey, (B, 784), jnp.float32)      # MNIST-like pixels in [0,1]
    eps = jax.random.normal(ekey, (B, Z_DIM), jnp.float32)   # reparameterization noise

    recon, mu, logvar, z = jax.jit(vae_forward)(params, x, eps)
    jax.block_until_ready((recon, mu, logvar, z))

    assert recon.shape == (B, 784) and recon.dtype == jnp.float32
    assert mu.shape == (B, Z_DIM) and logvar.shape == (B, Z_DIM) and z.shape == (B, Z_DIM)
    assert bool(jnp.all(jnp.isfinite(recon)))
    assert bool(jnp.all((recon >= 0) & (recon <= 1)))
    print("KERNEL_OK")
</pallas_src>

<mosaic_0001>
module attributes {stable_mosaic.version = 11 : i64} {
  func.func @_matmul_bias_act_kernel(%arg0: i32, %arg1: memref<176x9xf32, #tpu.memory_space<vmem>>, %arg2: memref<9x32xbf16, #tpu.memory_space<vmem>>, %arg3: memref<1x32xf32, #tpu.memory_space<vmem>>, %arg4: memref<176x32xbf16, #tpu.memory_space<vmem>>) attributes {dimension_semantics = [#tpu.dimension_semantics<parallel>], iteration_bounds = array<i64: 2>, scalar_prefetch = 0 : i64, scratch_operands = 0 : i64, tpu.core_type = #tpu.core_type<tc>, window_params = [{transform_indices = @transform_0, window_bounds = array<i64: 176, 9>}, {pipeline_mode = #tpu.pipeline_mode<synchronous>, transform_indices = @transform_1, window_bounds = array<i64: 9, 32>}, {pipeline_mode = #tpu.pipeline_mode<synchronous>, transform_indices = @transform_2, window_bounds = array<i64: 1, 32>}, {transform_indices = @transform_3, window_bounds = array<i64: 176, 32>}]} {
    %c0 = arith.constant 0 : index
    %c0_0 = arith.constant 0 : index
    %0 = vector.load %arg1[%c0, %c0_0] : memref<176x9xf32, #tpu.memory_space<vmem>>, vector<176x9xf32>
    %1 = arith.truncf %0 : vector<176x9xf32> to vector<176x9xbf16>
    %c0_1 = arith.constant 0 : index
    %c0_2 = arith.constant 0 : index
    %2 = vector.load %arg2[%c0_1, %c0_2] : memref<9x32xbf16, #tpu.memory_space<vmem>>, vector<9x32xbf16>
    %cst = arith.constant dense<0.000000e+00> : vector<176x32xf32>
    %3 = tpu.matmul %1, %2, %cst {dimension_numbers = #tpu.dot_dimension_numbers<[1], [0], [0], [1], [0, 0, 1, 1], [], []>} : vector<176x9xbf16>, vector<9x32xbf16>, vector<176x32xf32> -> vector<176x32xf32>
    %c0_3 = arith.constant 0 : index
    %c0_4 = arith.constant 0 : index
    %4 = vector.load %arg3[%c0_3, %c0_4] : memref<1x32xf32, #tpu.memory_space<vmem>>, vector<1x32xf32>
    %5 = vector.broadcast %4 : vector<1x32xf32> to vector<176x32xf32>
    %6 = arith.addf %3, %5 : vector<176x32xf32>
    %cst_5 = arith.constant 0.000000e+00 : f32
    %7 = vector.broadcast %cst_5 : f32 to vector<176x32xf32>
    %8 = arith.maximumf %6, %7 : vector<176x32xf32>
    %9 = arith.truncf %8 : vector<176x32xf32> to vector<176x32xbf16>
    %c0_6 = arith.constant 0 : index
    %c0_7 = arith.constant 0 : index
    %10 = vector.load %arg4[%c0_6, %c0_7] : memref<176x32xbf16, #tpu.memory_space<vmem>>, vector<176x32xbf16>
    tpu.vector_store %arg4[%c0_6, %c0_7], %9 {strides = array<i32>} : memref<176x32xbf16, #tpu.memory_space<vmem>>, vector<176x32xbf16>,
    return
  }
  func.func @transform_0(%arg0: i32) -> (i32, i32) {
    %c0_i32 = arith.constant 0 : i32
    %c0_i32_0 = arith.constant 0 : i32
    return %arg0, %c0_i32 : i32, i32
  }
  func.func @transform_1(%arg0: i32) -> (i32, i32) {
    %c0_i32 = arith.constant 0 : i32
    %c0_i32_0 = arith.constant 0 : i32
    %c0_i32_1 = arith.constant 0 : i32
    return %c0_i32, %c0_i32_0 : i32, i32
  }
  func.func @transform_2(%arg0: i32) -> (i32, i32) {
    %c0_i32 = arith.constant 0 : i32
    %c0_i32_0 = arith.constant 0 : i32
    %c0_i32_1 = arith.constant 0 : i32
    return %c0_i32, %c0_i32_0 : i32, i32
  }
  func.func @transform_3(%arg0: i32) -> (i32, i32) {
    %c0_i32 = arith.constant 0 : i32
    %c0_i32_0 = arith.constant 0 : i32
    return %arg0, %c0_i32 : i32, i32
  }
}

module attributes {stable_mosaic.version = 11 : i64} {
  func.func @_matmul_bias_act_kernel(%arg0: i32, %arg1: memref<48x288xbf16, #tpu.memory_space<vmem>>, %arg2: memref<288x64xbf16, #tpu.memory_space<vmem>>, %arg3: memref<1x64xf32, #tpu.memory_space<vmem>>, %arg4: memref<48x64xbf16, #tpu.memory_space<vmem>>) attributes {dimension_semantics = [#tpu.dimension_semantics<parallel>], iteration_bounds = array<i64: 2>, scalar_prefetch = 0 : i64, scratch_operands = 0 : i64, tpu.core_type = #tpu.core_type<tc>, window_params = [{transform_indices = @transform_0, window_bounds = array<i64: 48, 288>}, {pipeline_mode = #tpu.pipeline_mode<synchronous>, transform_indices = @transform_1, window_bounds = array<i64: 288, 64>}, {pipeline_mode = #tpu.pipeline_mode<synchronous>, transform_indices = @transform_2, window_bounds = array<i64: 1, 64>}, {transform_indices = @transform_3, window_bounds = array<i64: 48, 64>}]} {
    %c0 = arith.constant 0 : index
    %c0_0 = arith.constant 0 : index
    %0 = vector.load %arg1[%c0, %c0_0] : memref<48x288xbf16, #tpu.memory_space<vmem>>, vector<48x288xbf16>
    %c0_1 = arith.constant 0 : index
    %c0_2 = arith.constant 0 : index
    %1 = vector.load %arg2[%c0_1, %c0_2] : memref<288x64xbf16, #tpu.memory_space<vmem>>, vector<288x64xbf16>
    %cst = arith.constant dense<0.000000e+00> : vector<48x64xf32>
    %2 = tpu.matmul %0, %1, %cst {dimension_numbers = #tpu.dot_dimension_numbers<[1], [0], [0], [1], [0, 0, 1, 1], [], []>} : vector<48x288xbf16>, vector<288x64xbf16>, vector<48x64xf32> -> vector<48x64xf32>
    %c0_3 = arith.constant 0 : index
    %c0_4 = arith.constant 0 : index
    %3 = vector.load %arg3[%c0_3, %c0_4] : memref<1x64xf32, #tpu.memory_space<vmem>>, vector<1x64xf32>
    %4 = vector.broadcast %3 : vector<1x64xf32> to vector<48x64xf32>
    %5 = arith.addf %2, %4 : vector<48x64xf32>
    %cst_5 = arith.constant 0.000000e+00 : f32
    %6 = vector.broadcast %cst_5 : f32 to vector<48x64xf32>
    %7 = arith.maximumf %5, %6 : vector<48x64xf32>
    %8 = arith.truncf %7 : vector<48x64xf32> to vector<48x64xbf16>
    %c0_6 = arith.constant 0 : index
    %c0_7 = arith.constant 0 : index
    %9 = vector.load %arg4[%c0_6, %c0_7] : memref<48x64xbf16, #tpu.memory_space<vmem>>, vector<48x64xbf16>
    tpu.vector_store %arg4[%c0_6, %c0_7], %8 {strides = array<i32>} : memref<48x64xbf16, #tpu.memory_space<vmem>>, vector<48x64xbf16>,
    return
  }
  func.func @transform_0(%arg0: i32) -> (i32, i32) {
    %c0_i32 = arith.constant 0 : i32
    %c0_i32_0 = arith.constant 0 : i32
    return %arg0, %c0_i32 : i32, i32
  }
  func.func @transform_1(%arg0: i32) -> (i32, i32) {
    %c0_i32 = arith.constant 0 : i32
    %c0_i32_0 = arith.constant 0 : i32
    %c0_i32_1 = arith.constant 0 : i32
    return %c0_i32, %c0_i32_0 : i32, i32
  }
  func.func @transform_2(%arg0: i32) -> (i32, i32) {
    %c0_i32 = arith.constant 0 : i32
    %c0_i32_0 = arith.constant 0 : i32
    %c0_i32_1 = arith.constant 0 : i32
    return %c0_i32, %c0_i32_0 : i32, i32
  }
  func.func @transform_3(%arg0: i32) -> (i32, i32) {
    %c0_i32 = arith.constant 0 : i32
    %c0_i32_0 = arith.constant 0 : i32
    return %arg0, %c0_i32 : i32, i32
  }
}

module attributes {stable_mosaic.version = 11 : i64} {
  func.func @_matmul_bias_act_kernel(%arg0: i32, %arg1: memref<16x576xbf16, #tpu.memory_space<vmem>>, %arg2: memref<576x64xbf16, #tpu.memory_space<vmem>>, %arg3: memref<1x64xf32, #tpu.memory_space<vmem>>, %arg4: memref<16x64xbf16, #tpu.memory_space<vmem>>) attributes {dimension_semantics = [#tpu.dimension_semantics<parallel>], iteration_bounds = array<i64: 2>, scalar_prefetch = 0 : i64, scratch_operands = 0 : i64, tpu.core_type = #tpu.core_type<tc>, window_params = [{transform_indices = @transform_0, window_bounds = array<i64: 16, 576>}, {pipeline_mode = #tpu.pipeline_mode<synchronous>, transform_indices = @transform_1, window_bounds = array<i64: 576, 64>}, {pipeline_mode = #tpu.pipeline_mode<synchronous>, transform_indices = @transform_2, window_bounds = array<i64: 1, 64>}, {transform_indices = @transform_3, window_bounds = array<i64: 16, 64>}]} {
    %c0 = arith.constant 0 : index
    %c0_0 = arith.constant 0 : index
    %0 = vector.load %arg1[%c0, %c0_0] : memref<16x576xbf16, #tpu.memory_space<vmem>>, vector<16x576xbf16>
    %c0_1 = arith.constant 0 : index
    %c0_2 = arith.constant 0 : index
    %1 = vector.load %arg2[%c0_1, %c0_2] : memref<576x64xbf16, #tpu.memory_space<vmem>>, vector<576x64xbf16>
    %cst = arith.constant dense<0.000000e+00> : vector<16x64xf32>
    %2 = tpu.matmul %0, %1, %cst {dimension_numbers = #tpu.dot_dimension_numbers<[1], [0], [0], [1], [0, 0, 1, 1], [], []>} : vector<16x576xbf16>, vector<576x64xbf16>, vector<16x64xf32> -> vector<16x64xf32>
    %c0_3 = arith.constant 0 : index
    %c0_4 = arith.constant 0 : index
    %3 = vector.load %arg3[%c0_3, %c0_4] : memref<1x64xf32, #tpu.memory_space<vmem>>, vector<1x64xf32>
    %4 = vector.broadcast %3 : vector<1x64xf32> to vector<16x64xf32>
    %5 = arith.addf %2, %4 : vector<16x64xf32>
    %6 = arith.truncf %5 : vector<16x64xf32> to vector<16x64xbf16>
    %c0_5 = arith.constant 0 : index
    %c0_6 = arith.constant 0 : index
    %7 = vector.load %arg4[%c0_5, %c0_6] : memref<16x64xbf16, #tpu.memory_space<vmem>>, vector<16x64xbf16>
    tpu.vector_store %arg4[%c0_5, %c0_6], %6 {strides = array<i32>} : memref<16x64xbf16, #tpu.memory_space<vmem>>, vector<16x64xbf16>,
    return
  }
  func.func @transform_0(%arg0: i32) -> (i32, i32) {
    %c0_i32 = arith.constant 0 : i32
    %c0_i32_0 = arith.constant 0 : i32
    return %arg0, %c0_i32 : i32, i32
  }
  func.func @transform_1(%arg0: i32) -> (i32, i32) {
    %c0_i32 = arith.constant 0 : i32
    %c0_i32_0 = arith.constant 0 : i32
    %c0_i32_1 = arith.constant 0 : i32
    return %c0_i32, %c0_i32_0 : i32, i32
  }
  func.func @transform_2(%arg0: i32) -> (i32, i32) {
    %c0_i32 = arith.constant 0 : i32
    %c0_i32_0 = arith.constant 0 : i32
    %c0_i32_1 = arith.constant 0 : i32
    return %c0_i32, %c0_i32_0 : i32, i32
  }
  func.func @transform_3(%arg0: i32) -> (i32, i32) {
    %c0_i32 = arith.constant 0 : i32
    %c0_i32_0 = arith.constant 0 : i32
    return %arg0, %c0_i32 : i32, i32
  }
}

module attributes {stable_mosaic.version = 11 : i64} {
  func.func @_matmul_bias_act_kernel(%arg0: i32, %arg1: memref<2x1024xbf16, #tpu.memory_space<vmem>>, %arg2: memref<1024x400xbf16, #tpu.memory_space<vmem>>, %arg3: memref<1x400xf32, #tpu.memory_space<vmem>>, %arg4: memref<2x400xbf16, #tpu.memory_space<vmem>>) attributes {dimension_semantics = [#tpu.dimension_semantics<parallel>], iteration_bounds = array<i64: 1>, scalar_prefetch = 0 : i64, scratch_operands = 0 : i64, tpu.core_type = #tpu.core_type<tc>, window_params = [{transform_indices = @transform_0, window_bounds = array<i64: 2, 1024>}, {pipeline_mode = #tpu.pipeline_mode<synchronous>, transform_indices = @transform_1, window_bounds = array<i64: 1024, 400>}, {pipeline_mode = #tpu.pipeline_mode<synchronous>, transform_indices = @transform_2, window_bounds = array<i64: 1, 400>}, {transform_indices = @transform_3, window_bounds = array<i64: 2, 400>}]} {
    %c0 = arith.constant 0 : index
    %c0_0 = arith.constant 0 : index
    %0 = vector.load %arg1[%c0, %c0_0] : memref<2x1024xbf16, #tpu.memory_space<vmem>>, vector<2x1024xbf16>
    %c0_1 = arith.constant 0 : index
    %c0_2 = arith.constant 0 : index
    %1 = vector.load %arg2[%c0_1, %c0_2] : memref<1024x400xbf16, #tpu.memory_space<vmem>>, vector<1024x400xbf16>
    %cst = arith.constant dense<0.000000e+00> : vector<2x400xf32>
    %2 = tpu.matmul %0, %1, %cst {dimension_numbers = #tpu.dot_dimension_numbers<[1], [0], [0], [1], [0, 0, 1, 1], [], []>} : vector<2x1024xbf16>, vector<1024x400xbf16>, vector<2x400xf32> -> vector<2x400xf32>
    %c0_3 = arith.constant 0 : index
    %c0_4 = arith.constant 0 : index
    %3 = vector.load %arg3[%c0_3, %c0_4] : memref<1x400xf32, #tpu.memory_space<vmem>>, vector<1x400xf32>
    %4 = vector.broadcast %3 : vector<1x400xf32> to vector<2x400xf32>
    %5 = arith.addf %2, %4 : vector<2x400xf32>
    %6 = arith.truncf %5 : vector<2x400xf32> to vector<2x400xbf16>
    %c0_5 = arith.constant 0 : index
    %c0_6 = arith.constant 0 : index
    %7 = vector.load %arg4[%c0_5, %c0_6] : memref<2x400xbf16, #tpu.memory_space<vmem>>, vector<2x400xbf16>
    tpu.vector_store %arg4[%c0_5, %c0_6], %6 {strides = array<i32>} : memref<2x400xbf16, #tpu.memory_space<vmem>>, vector<2x400xbf16>,
    return
  }
  func.func @transform_0(%arg0: i32) -> (i32, i32) {
    %c0_i32 = arith.constant 0 : i32
    %c0_i32_0 = arith.constant 0 : i32
    return %arg0, %c0_i32 : i32, i32
  }
  func.func @transform_1(%arg0: i32) -> (i32, i32) {
    %c0_i32 = arith.constant 0 : i32
    %c0_i32_0 = arith.constant 0 : i32
    %c0_i32_1 = arith.constant 0 : i32
    return %c0_i32, %c0_i32_0 : i32, i32
  }
  func.func @transform_2(%arg0: i32) -> (i32, i32) {
    %c0_i32 = arith.constant 0 : i32
    %c0_i32_0 = arith.constant 0 : i32
    %c0_i32_1 = arith.constant 0 : i32
    return %c0_i32, %c0_i32_0 : i32, i32
  }
  func.func @transform_3(%arg0: i32) -> (i32, i32) {
    %c0_i32 = arith.constant 0 : i32
    %c0_i32_0 = arith.constant 0 : i32
    return %arg0, %c0_i32 : i32, i32
  }
}

module attributes {stable_mosaic.version = 11 : i64} {
  func.func @_head_reparam_kernel(%arg0: i32, %arg1: memref<2x400xbf16, #tpu.memory_space<vmem>>, %arg2: memref<400x40xbf16, #tpu.memory_space<vmem>>, %arg3: memref<1x40xf32, #tpu.memory_space<vmem>>, %arg4: memref<2x20xf32, #tpu.memory_space<vmem>>, %arg5: memref<2x20xf32, #tpu.memory_space<vmem>>, %arg6: memref<2x20xf32, #tpu.memory_space<vmem>>, %arg7: memref<2x20xf32, #tpu.memory_space<vmem>>) attributes {dimension_semantics = [#tpu.dimension_semantics<parallel>], iteration_bounds = array<i64: 1>, scalar_prefetch = 0 : i64, scratch_operands = 0 : i64, tpu.core_type = #tpu.core_type<tc>, window_params = [{pipeline_mode = #tpu.pipeline_mode<synchronous>, transform_indices = @transform_0, window_bounds = array<i64: 2, 400>}, {pipeline_mode = #tpu.pipeline_mode<synchronous>, transform_indices = @transform_1, window_bounds = array<i64: 400, 40>}, {pipeline_mode = #tpu.pipeline_mode<synchronous>, transform_indices = @transform_2, window_bounds = array<i64: 1, 40>}, {pipeline_mode = #tpu.pipeline_mode<synchronous>, transform_indices = @transform_3, window_bounds = array<i64: 2, 20>}, {pipeline_mode = #tpu.pipeline_mode<synchronous>, transform_indices = @transform_4, window_bounds = array<i64: 2, 20>}, {pipeline_mode = #tpu.pipeline_mode<synchronous>, transform_indices = @transform_5, window_bounds = array<i64: 2, 20>}, {pipeline_mode = #tpu.pipeline_mode<synchronous>, transform_indices = @transform_6, window_bounds = array<i64: 2, 20>}]} {
    %c0 = arith.constant 0 : index
    %c0_0 = arith.constant 0 : index
    %0 = vector.load %arg1[%c0, %c0_0] : memref<2x400xbf16, #tpu.memory_space<vmem>>, vector<2x400xbf16>
    %c0_1 = arith.constant 0 : index
    %c0_2 = arith.constant 0 : index
    %1 = vector.load %arg2[%c0_1, %c0_2] : memref<400x40xbf16, #tpu.memory_space<vmem>>, vector<400x40xbf16>
    %cst = arith.constant dense<0.000000e+00> : vector<2x40xf32>
    %2 = tpu.matmul %0, %1, %cst {dimension_numbers = #tpu.dot_dimension_numbers<[1], [0], [0], [1], [0, 0, 1, 1], [], []>} : vector<2x400xbf16>, vector<400x40xbf16>, vector<2x40xf32> -> vector<2x40xf32>
    %c0_3 = arith.constant 0 : index
    %c0_4 = arith.constant 0 : index
    %3 = vector.load %arg3[%c0_3, %c0_4] : memref<1x40xf32, #tpu.memory_space<vmem>>, vector<1x40xf32>
    %4 = vector.broadcast %3 : vector<1x40xf32> to vector<2x40xf32>
    %5 = arith.addf %2, %4 : vector<2x40xf32>
    %6 = vector.extract_strided_slice %5 {offsets = [0, 0], sizes = [2, 20], strides = [1, 1]} : vector<2x40xf32> to vector<2x20xf32>
    %7 = vector.extract_strided_slice %5 {offsets = [0, 20], sizes = [2, 20], strides = [1, 1]} : vector<2x40xf32> to vector<2x20xf32>
    %c0_5 = arith.constant 0 : index
    %c0_6 = arith.constant 0 : index
    %8 = vector.load %arg4[%c0_5, %c0_6] : memref<2x20xf32, #tpu.memory_space<vmem>>, vector<2x20xf32>
    %cst_7 = arith.constant 5.000000e-01 : f32
    %9 = vector.broadcast %cst_7 : f32 to vector<2x20xf32>
    %10 = arith.mulf %9, %7 : vector<2x20xf32>
    %11 = math.exp %10 : vector<2x20xf32>
    %12 = arith.mulf %8, %11 : vector<2x20xf32>
    %13 = arith.addf %6, %12 : vector<2x20xf32>
    %c0_8 = arith.constant 0 : index
    %c0_9 = arith.constant 0 : index
    %14 = vector.load %arg5[%c0_8, %c0_9] : memref<2x20xf32, #tpu.memory_space<vmem>>, vector<2x20xf32>
    tpu.vector_store %arg5[%c0_8, %c0_9], %6 {strides = array<i32>} : memref<2x20xf32, #tpu.memory_space<vmem>>, vector<2x20xf32>,
    %c0_10 = arith.constant 0 : index
    %c0_11 = arith.constant 0 : index
    %15 = vector.load %arg6[%c0_10, %c0_11] : memref<2x20xf32, #tpu.memory_space<vmem>>, vector<2x20xf32>
    tpu.vector_store %arg6[%c0_10, %c0_11], %7 {strides = array<i32>} : memref<2x20xf32, #tpu.memory_space<vmem>>, vector<2x20xf32>,
    %c0_12 = arith.constant 0 : index
    %c0_13 = arith.constant 0 : index
    %16 = vector.load %arg7[%c0_12, %c0_13] : memref<2x20xf32, #tpu.memory_space<vmem>>, vector<2x20xf32>
    tpu.vector_store %arg7[%c0_12, %c0_13], %13 {strides = array<i32>} : memref<2x20xf32, #tpu.memory_space<vmem>>, vector<2x20xf32>,
    return
  }
  func.func @transform_0(%arg0: i32) -> (i32, i32) {
    %c0_i32 = arith.constant 0 : i32
    %c0_i32_0 = arith.constant 0 : i32
    %c0_i32_1 = arith.constant 0 : i32
    return %c0_i32, %c0_i32_0 : i32, i32
  }
  func.func @transform_1(%arg0: i32) -> (i32, i32) {
    %c0_i32 = arith.constant 0 : i32
    %c0_i32_0 = arith.constant 0 : i32
    %c0_i32_1 = arith.constant 0 : i32
    return %c0_i32, %c0_i32_0 : i32, i32
  }
  func.func @transform_2(%arg0: i32) -> (i32, i32) {
    %c0_i32 = arith.constant 0 : i32
    %c0_i32_0 = arith.constant 0 : i32
    %c0_i32_1 = arith.constant 0 : i32
    return %c0_i32, %c0_i32_0 : i32, i32
  }
  func.func @transform_3(%arg0: i32) -> (i32, i32) {
    %c0_i32 = arith.constant 0 : i32
    %c0_i32_0 = arith.constant 0 : i32
    %c0_i32_1 = arith.constant 0 : i32
    return %c0_i32, %c0_i32_0 : i32, i32
  }
  func.func @transform_4(%arg0: i32) -> (i32, i32) {
    %c0_i32 = arith.constant 0 : i32
    %c0_i32_0 = arith.constant 0 : i32
    %c0_i32_1 = arith.constant 0 : i32
    return %c0_i32, %c0_i32_0 : i32, i32
  }
  func.func @transform_5(%arg0: i32) -> (i32, i32) {
    %c0_i32 = arith.constant 0 : i32
    %c0_i32_0 = arith.constant 0 : i32
    %c0_i32_1 = arith.constant 0 : i32
    return %c0_i32, %c0_i32_0 : i32, i32
  }
  func.func @transform_6(%arg0: i32) -> (i32, i32) {
    %c0_i32 = arith.constant 0 : i32
    %c0_i32_0 = arith.constant 0 : i32
    %c0_i32_1 = arith.constant 0 : i32
    return %c0_i32, %c0_i32_0 : i32, i32
  }
}

module attributes {stable_mosaic.version = 11 : i64} {
  func.func @_matmul_bias_act_kernel(%arg0: i32, %arg1: memref<2x20xf32, #tpu.memory_space<vmem>>, %arg2: memref<20x1024xbf16, #tpu.memory_space<vmem>>, %arg3: memref<1x1024xf32, #tpu.memory_space<vmem>>, %arg4: memref<2x1024xbf16, #tpu.memory_space<vmem>>) attributes {dimension_semantics = [#tpu.dimension_semantics<parallel>], iteration_bounds = array<i64: 1>, scalar_prefetch = 0 : i64, scratch_operands = 0 : i64, tpu.core_type = #tpu.core_type<tc>, window_params = [{transform_indices = @transform_0, window_bounds = array<i64: 2, 20>}, {pipeline_mode = #tpu.pipeline_mode<synchronous>, transform_indices = @transform_1, window_bounds = array<i64: 20, 1024>}, {pipeline_mode = #tpu.pipeline_mode<synchronous>, transform_indices = @transform_2, window_bounds = array<i64: 1, 1024>}, {transform_indices = @transform_3, window_bounds = array<i64: 2, 1024>}]} {
    %c0 = arith.constant 0 : index
    %c0_0 = arith.constant 0 : index
    %0 = vector.load %arg1[%c0, %c0_0] : memref<2x20xf32, #tpu.memory_space<vmem>>, vector<2x20xf32>
    %1 = arith.truncf %0 : vector<2x20xf32> to vector<2x20xbf16>
    %c0_1 = arith.constant 0 : index
    %c0_2 = arith.constant 0 : index
    %2 = vector.load %arg2[%c0_1, %c0_2] : memref<20x1024xbf16, #tpu.memory_space<vmem>>, vector<20x1024xbf16>
    %cst = arith.constant dense<0.000000e+00> : vector<2x1024xf32>
    %3 = tpu.matmul %1, %2, %cst {dimension_numbers = #tpu.dot_dimension_numbers<[1], [0], [0], [1], [0, 0, 1, 1], [], []>} : vector<2x20xbf16>, vector<20x1024xbf16>, vector<2x1024xf32> -> vector<2x1024xf32>
    %c0_3 = arith.constant 0 : index
    %c0_4 = arith.constant 0 : index
    %4 = vector.load %arg3[%c0_3, %c0_4] : memref<1x1024xf32, #tpu.memory_space<vmem>>, vector<1x1024xf32>
    %5 = vector.broadcast %4 : vector<1x1024xf32> to vector<2x1024xf32>
    %6 = arith.addf %3, %5 : vector<2x1024xf32>
    %7 = arith.truncf %6 : vector<2x1024xf32> to vector<2x1024xbf16>
    %c0_5 = arith.constant 0 : index
    %c0_6 = arith.constant 0 : index
    %8 = vector.load %arg4[%c0_5, %c0_6] : memref<2x1024xbf16, #tpu.memory_space<vmem>>, vector<2x1024xbf16>
    tpu.vector_store %arg4[%c0_5, %c0_6], %7 {strides = array<i32>} : memref<2x1024xbf16, #tpu.memory_space<vmem>>, vector<2x1024xbf16>,
    return
  }
  func.func @transform_0(%arg0: i32) -> (i32, i32) {
    %c0_i32 = arith.constant 0 : i32
    %c0_i32_0 = arith.constant 0 : i32
    return %arg0, %c0_i32 : i32, i32
  }
  func.func @transform_1(%arg0: i32) -> (i32, i32) {
    %c0_i32 = arith.constant 0 : i32
    %c0_i32_0 = arith.constant 0 : i32
    %c0_i32_1 = arith.constant 0 : i32
    return %c0_i32, %c0_i32_0 : i32, i32
  }
  func.func @transform_2(%arg0: i32) -> (i32, i32) {
    %c0_i32 = arith.constant 0 : i32
    %c0_i32_0 = arith.constant 0 : i32
    %c0_i32_1 = arith.constant 0 : i32
    return %c0_i32, %c0_i32_0 : i32, i32
  }
  func.func @transform_3(%arg0: i32) -> (i32, i32) {
    %c0_i32 = arith.constant 0 : i32
    %c0_i32_0 = arith.constant 0 : i32
    return %arg0, %c0_i32 : i32, i32
  }
}

module attributes {stable_mosaic.version = 11 : i64} {
  func.func @_matmul_bias_act_kernel(%arg0: i32, %arg1: memref<48x576xbf16, #tpu.memory_space<vmem>>, %arg2: memref<576x64xbf16, #tpu.memory_space<vmem>>, %arg3: memref<1x64xf32, #tpu.memory_space<vmem>>, %arg4: memref<48x64xbf16, #tpu.memory_space<vmem>>) attributes {dimension_semantics = [#tpu.dimension_semantics<parallel>], iteration_bounds = array<i64: 2>, scalar_prefetch = 0 : i64, scratch_operands = 0 : i64, tpu.core_type = #tpu.core_type<tc>, window_params = [{transform_indices = @transform_0, window_bounds = array<i64: 48, 576>}, {pipeline_mode = #tpu.pipeline_mode<synchronous>, transform_indices = @transform_1, window_bounds = array<i64: 576, 64>}, {pipeline_mode = #tpu.pipeline_mode<synchronous>, transform_indices = @transform_2, window_bounds = array<i64: 1, 64>}, {transform_indices = @transform_3, window_bounds = array<i64: 48, 64>}]} {
    %c0 = arith.constant 0 : index
    %c0_0 = arith.constant 0 : index
    %0 = vector.load %arg1[%c0, %c0_0] : memref<48x576xbf16, #tpu.memory_space<vmem>>, vector<48x576xbf16>
    %c0_1 = arith.constant 0 : index
    %c0_2 = arith.constant 0 : index
    %1 = vector.load %arg2[%c0_1, %c0_2] : memref<576x64xbf16, #tpu.memory_space<vmem>>, vector<576x64xbf16>
    %cst = arith.constant dense<0.000000e+00> : vector<48x64xf32>
    %2 = tpu.matmul %0, %1, %cst {dimension_numbers = #tpu.dot_dimension_numbers<[1], [0], [0], [1], [0, 0, 1, 1], [], []>} : vector<48x576xbf16>, vector<576x64xbf16>, vector<48x64xf32> -> vector<48x64xf32>
    %c0_3 = arith.constant 0 : index
    %c0_4 = arith.constant 0 : index
    %3 = vector.load %arg3[%c0_3, %c0_4] : memref<1x64xf32, #tpu.memory_space<vmem>>, vector<1x64xf32>
    %4 = vector.broadcast %3 : vector<1x64xf32> to vector<48x64xf32>
    %5 = arith.addf %2, %4 : vector<48x64xf32>
    %cst_5 = arith.constant 0.000000e+00 : f32
    %6 = vector.broadcast %cst_5 : f32 to vector<48x64xf32>
    %7 = arith.maximumf %5, %6 : vector<48x64xf32>
    %8 = arith.truncf %7 : vector<48x64xf32> to vector<48x64xbf16>
    %c0_6 = arith.constant 0 : index
    %c0_7 = arith.constant 0 : index
    %9 = vector.load %arg4[%c0_6, %c0_7] : memref<48x64xbf16, #tpu.memory_space<vmem>>, vector<48x64xbf16>
    tpu.vector_store %arg4[%c0_6, %c0_7], %8 {strides = array<i32>} : memref<48x64xbf16, #tpu.memory_space<vmem>>, vector<48x64xbf16>,
    return
  }
  func.func @transform_0(%arg0: i32) -> (i32, i32) {
    %c0_i32 = arith.constant 0 : i32
    %c0_i32_0 = arith.constant 0 : i32
    return %arg0, %c0_i32 : i32, i32
  }
  func.func @transform_1(%arg0: i32) -> (i32, i32) {
    %c0_i32 = arith.constant 0 : i32
    %c0_i32_0 = arith.constant 0 : i32
    %c0_i32_1 = arith.constant 0 : i32
    return %c0_i32, %c0_i32_0 : i32, i32
  }
  func.func @transform_2(%arg0: i32) -> (i32, i32) {
    %c0_i32 = arith.constant 0 : i32
    %c0_i32_0 = arith.constant 0 : i32
    %c0_i32_1 = arith.constant 0 : i32
    return %c0_i32, %c0_i32_0 : i32, i32
  }
  func.func @transform_3(%arg0: i32) -> (i32, i32) {
    %c0_i32 = arith.constant 0 : i32
    %c0_i32_0 = arith.constant 0 : i32
    return %arg0, %c0_i32 : i32, i32
  }
}

module attributes {stable_mosaic.version = 11 : i64} {
  func.func @_matmul_bias_act_kernel(%arg0: i32, %arg1: memref<64x256xbf16, #tpu.memory_space<vmem>>, %arg2: memref<256x128xbf16, #tpu.memory_space<vmem>>, %arg3: memref<1x128xf32, #tpu.memory_space<vmem>>, %arg4: memref<64x128xbf16, #tpu.memory_space<vmem>>) attributes {dimension_semantics = [#tpu.dimension_semantics<parallel>], iteration_bounds = array<i64: 2>, scalar_prefetch = 0 : i64, scratch_operands = 0 : i64, tpu.core_type = #tpu.core_type<tc>, window_params = [{transform_indices = @transform_0, window_bounds = array<i64: 64, 256>}, {pipeline_mode = #tpu.pipeline_mode<synchronous>, transform_indices = @transform_1, window_bounds = array<i64: 256, 128>}, {pipeline_mode = #tpu.pipeline_mode<synchronous>, transform_indices = @transform_2, window_bounds = array<i64: 1, 128>}, {transform_indices = @transform_3, window_bounds = array<i64: 64, 128>}]} {
    %c0 = arith.constant 0 : index
    %c0_0 = arith.constant 0 : index
    %0 = vector.load %arg1[%c0, %c0_0] : memref<64x256xbf16, #tpu.memory_space<vmem>>, vector<64x256xbf16>
    %c0_1 = arith.constant 0 : index
    %c0_2 = arith.constant 0 : index
    %1 = vector.load %arg2[%c0_1, %c0_2] : memref<256x128xbf16, #tpu.memory_space<vmem>>, vector<256x128xbf16>
    %cst = arith.constant dense<0.000000e+00> : vector<64x128xf32>
    %2 = tpu.matmul %0, %1, %cst {dimension_numbers = #tpu.dot_dimension_numbers<[1], [0], [0], [1], [0, 0, 1, 1], [], []>} : vector<64x256xbf16>, vector<256x128xbf16>, vector<64x128xf32> -> vector<64x128xf32>
    %c0_3 = arith.constant 0 : index
    %c0_4 = arith.constant 0 : index
    %3 = vector.load %arg3[%c0_3, %c0_4] : memref<1x128xf32, #tpu.memory_space<vmem>>, vector<1x128xf32>
    %4 = vector.broadcast %3 : vector<1x128xf32> to vector<64x128xf32>
    %5 = arith.addf %2, %4 : vector<64x128xf32>
    %cst_5 = arith.constant 0.000000e+00 : f32
    %6 = vector.broadcast %cst_5 : f32 to vector<64x128xf32>
    %7 = arith.maximumf %5, %6 : vector<64x128xf32>
    %8 = arith.truncf %7 : vector<64x128xf32> to vector<64x128xbf16>
    %c0_6 = arith.constant 0 : index
    %c0_7 = arith.constant 0 : index
    %9 = vector.load %arg4[%c0_6, %c0_7] : memref<64x128xbf16, #tpu.memory_space<vmem>>, vector<64x128xbf16>
    tpu.vector_store %arg4[%c0_6, %c0_7], %8 {strides = array<i32>} : memref<64x128xbf16, #tpu.memory_space<vmem>>, vector<64x128xbf16>,
    return
  }
  func.func @transform_0(%arg0: i32) -> (i32, i32) {
    %c0_i32 = arith.constant 0 : i32
    %c0_i32_0 = arith.constant 0 : i32
    return %arg0, %c0_i32 : i32, i32
  }
  func.func @transform_1(%arg0: i32) -> (i32, i32) {
    %c0_i32 = arith.constant 0 : i32
    %c0_i32_0 = arith.constant 0 : i32
    %c0_i32_1 = arith.constant 0 : i32
    return %c0_i32, %c0_i32_0 : i32, i32
  }
  func.func @transform_2(%arg0: i32) -> (i32, i32) {
    %c0_i32 = arith.constant 0 : i32
    %c0_i32_0 = arith.constant 0 : i32
    %c0_i32_1 = arith.constant 0 : i32
    return %c0_i32, %c0_i32_0 : i32, i32
  }
  func.func @transform_3(%arg0: i32) -> (i32, i32) {
    %c0_i32 = arith.constant 0 : i32
    %c0_i32_0 = arith.constant 0 : i32
    return %arg0, %c0_i32 : i32, i32
  }
}

module attributes {stable_mosaic.version = 11 : i64} {
  func.func @_decode_out_kernel(%arg0: i32, %arg1: memref<128x128xbf16, #tpu.memory_space<vmem>>, %arg2: memref<128x128xbf16, #tpu.memory_space<vmem>>, %arg3: memref<128x1xf32, #tpu.memory_space<vmem>>, %arg4: memref<4x128xf32, #tpu.memory_space<vmem>>, %arg5: memref<4x1xf32, #tpu.memory_space<vmem>>, %arg6: memref<4x128xf32, #tpu.memory_space<vmem>>) attributes {dimension_semantics = [#tpu.dimension_semantics<parallel>], iteration_bounds = array<i64: 4>, scalar_prefetch = 0 : i64, scratch_operands = 0 : i64, tpu.core_type = #tpu.core_type<tc>, window_params = [{transform_indices = @transform_0, window_bounds = array<i64: 128, 128>}, {pipeline_mode = #tpu.pipeline_mode<synchronous>, transform_indices = @transform_1, window_bounds = array<i64: 128, 128>}, {pipeline_mode = #tpu.pipeline_mode<synchronous>, transform_indices = @transform_2, window_bounds = array<i64: 128, 1>}, {pipeline_mode = #tpu.pipeline_mode<synchronous>, transform_indices = @transform_3, window_bounds = array<i64: 4, 128>}, {pipeline_mode = #tpu.pipeline_mode<synchronous>, transform_indices = @transform_4, window_bounds = array<i64: 4, 1>}, {transform_indices = @transform_5, window_bounds = array<i64: 4, 128>}]} {
    %c0 = arith.constant 0 : index
    %c0_0 = arith.constant 0 : index
    %0 = vector.load %arg2[%c0, %c0_0] : memref<128x128xbf16, #tpu.memory_space<vmem>>, vector<128x128xbf16>
    %c0_1 = arith.constant 0 : index
    %c0_2 = arith.constant 0 : index
    %1 = vector.load %arg1[%c0_1, %c0_2] : memref<128x128xbf16, #tpu.memory_space<vmem>>, vector<128x128xbf16>
    %cst = arith.constant dense<0.000000e+00> : vector<128x128xf32>
    %2 = tpu.matmul %0, %1, %cst {dimension_numbers = #tpu.dot_dimension_numbers<[1], [0], [0], [1], [0, 0, 1, 1], [], []>} : vector<128x128xbf16>, vector<128x128xbf16>, vector<128x128xf32> -> vector<128x128xf32>
    %c0_3 = arith.constant 0 : index
    %c0_4 = arith.constant 0 : index
    %3 = vector.load %arg3[%c0_3, %c0_4] : memref<128x1xf32, #tpu.memory_space<vmem>>, vector<128x1xf32>
    %4 = vector.broadcast %3 : vector<128x1xf32> to vector<128x128xf32>
    %5 = arith.addf %2, %4 : vector<128x128xf32>
    %cst_5 = arith.constant 0.000000e+00 : f32
    %6 = vector.broadcast %cst_5 : f32 to vector<128x128xf32>
    %7 = arith.maximumf %5, %6 : vector<128x128xf32>
    %c0_6 = arith.constant 0 : index
    %c0_7 = arith.constant 0 : index
    %8 = vector.load %arg4[%c0_6, %c0_7] : memref<4x128xf32, #tpu.memory_space<vmem>>, vector<4x128xf32>
    %cst_8 = arith.constant dense<0.000000e+00> : vector<4x128xf32>
    %9 = tpu.matmul %8, %7, %cst_8 {dimension_numbers = #tpu.dot_dimension_numbers<[1], [0], [0], [1], [0, 0, 1, 1], [], []>} : vector<4x128xf32>, vector<128x128xf32>, vector<4x128xf32> -> vector<4x128xf32>
    %c0_9 = arith.constant 0 : index
    %c0_10 = arith.constant 0 : index
    %10 = vector.load %arg5[%c0_9, %c0_10] : memref<4x1xf32, #tpu.memory_space<vmem>>, vector<4x1xf32>
    %11 = vector.broadcast %10 : vector<4x1xf32> to vector<4x128xf32>
    %12 = arith.addf %9, %11 : vector<4x128xf32>
    %13 = arith.negf %12 : vector<4x128xf32>
    %14 = math.exp %13 : vector<4x128xf32>
    %cst_11 = arith.constant 1.000000e+00 : f32
    %15 = vector.broadcast %cst_11 : f32 to vector<4x128xf32>
    %16 = arith.addf %15, %14 : vector<4x128xf32>
    %17 = arith.divf %15, %16 : vector<4x128xf32>
    %c0_12 = arith.constant 0 : index
    %c0_13 = arith.constant 0 : index
    %18 = vector.load %arg6[%c0_12, %c0_13] : memref<4x128xf32, #tpu.memory_space<vmem>>, vector<4x128xf32>
    tpu.vector_store %arg6[%c0_12, %c0_13], %17 {strides = array<i32>} : memref<4x128xf32, #tpu.memory_space<vmem>>, vector<4x128xf32>,
    return
  }
  func.func @transform_0(%arg0: i32) -> (i32, i32) {
    %c0_i32 = arith.constant 0 : i32
    %c0_i32_0 = arith.constant 0 : i32
    return %c0_i32, %arg0 : i32, i32
  }
  func.func @transform_1(%arg0: i32) -> (i32, i32) {
    %c0_i32 = arith.constant 0 : i32
    %c0_i32_0 = arith.constant 0 : i32
    %c0_i32_1 = arith.constant 0 : i32
    return %c0_i32, %c0_i32_0 : i32, i32
  }
  func.func @transform_2(%arg0: i32) -> (i32, i32) {
    %c0_i32 = arith.constant 0 : i32
    %c0_i32_0 = arith.constant 0 : i32
    %c0_i32_1 = arith.constant 0 : i32
    return %c0_i32, %c0_i32_0 : i32, i32
  }
  func.func @transform_3(%arg0: i32) -> (i32, i32) {
    %c0_i32 = arith.constant 0 : i32
    %c0_i32_0 = arith.constant 0 : i32
    %c0_i32_1 = arith.constant 0 : i32
    return %c0_i32, %c0_i32_0 : i32, i32
  }
  func.func @transform_4(%arg0: i32) -> (i32, i32) {
    %c0_i32 = arith.constant 0 : i32
    %c0_i32_0 = arith.constant 0 : i32
    %c0_i32_1 = arith.constant 0 : i32
    return %c0_i32, %c0_i32_0 : i32, i32
  }
  func.func @transform_5(%arg0: i32) -> (i32, i32) {
    %c0_i32 = arith.constant 0 : i32
    %c0_i32_0 = arith.constant 0 : i32
    return %c0_i32, %arg0 : i32, i32
  }
}

</mosaic_0001>

<bundles_post_ra>
// kernel: vae_forward.9
= control target key start
LH: loop header
LB: loop body
LE: loop exit
PB: predicated region body
PF: predicated region fallthrough
CT: control target
= control target key end

     0   :  { %s742_s12 = smov 0   ;;  %s898_s0 = inlined_call_operand.vmem [shape: f32[352,9], index: 0, kind: input, shape index: {}]   ;;  %s899_s1 = inlined_call_operand.vmem [shape: bf16[9,32], index: 1, kind: input, shape index: {}]   ;;  %s900_s2 = inlined_call_operand.vmem [shape: f32[1,32], index: 2, kind: input, shape index: {}]   ;;  %s901_s3 = inlined_call_operand.vmem [shape: bf16[352,32], index: 3, kind: output, shape index: {}]  }
   0x1 LB: > { %s573_s13 = sadd.s32 4294967295, %s717_s12   ;;  %p577_p0 = scmp.ge.s32.totalorder %s717_s12, 1  ;;  %s717_s12 = sphi %s742_s12, %s13_s12  }
   0x2   : > { %p138_p1 = scmp.lt.s32.totalorder %s717_s12, 3 }
   0x4   : > { %p139_p2 = pnand %p577_p0, %p138_p1 }
   0x5   : > { %vm256_vm0 = vcmask (!%p139_p2), 1043456   ;;  %v719_v0 = vmov (!%p139_p2), 0.0   ;;  %v710_v1 = vld [vmem:[%s899_s1] sm:$0x1f] (!%p139_p2)   ;;  %vm257_vm1 = vcmask (!%p139_p2), 1044480   ;;  %s162_s16 = smul.u32 (!%p139_p2), 22, %s573_s13 }
   0x6   : > { %142 = sbr.rel (%p139_p2) target bundleno = 280 (0x118), region = 32  ;;  %651 = vmatprep.subr.bf16.mxu0 (!%p139_p2), %v719_v0  ;;  %697 = vmatprep.subr.bf16.mxu1 (!%p139_p2), %v719_v0  ;;  %v720_v2 = vmov (!%p139_p2), 65535   ;;  %vm721_vm2 = vmmov (!%p139_p2), 0   ;;  %vm222_vm3 = vcmask (!%p139_p2), 72704   ;;  %v821_v39 = vld [vmem:[%s900_s2] ss:$0 sm:$0xff] (!%p139_p2) }
   0x7   : > { %v258_v3 = vsel (!%p139_p2), %vm256_vm0, 4294967295, %v720_v2  ;;  %653 = vmatprep.mubr.msk.bf16.mxu0 (!%p139_p2), %vm721_vm2, %v719_v0  ;;  %677 = vmatprep.mubr.msk.bf16.mxu1 (!%p139_p2), %vm721_vm2, %v719_v0  ;;  %p163_p3 = scmp.lt.s32.totalorder (!%p139_p2), %s162_s16, 43  ;;  %vm494_vm4 = vcmask (!%p139_p2), 257024  }
   0x8   : > { %v259_v4 = vsel (!%p139_p2), %vm257_vm1, %v258_v3, 0 }
   0x9   : > { %v261_v5 = vand.u32 (!%p139_p2), %v710_v1, %v259_v4 }
   0xb   : > { %652 = vmatpush3.bf16.msra.mxu0 (!%p139_p2), %v261_v5  ;;  %698 = vmatpush3.bf16.msra.mxu1 (!%p139_p2), %v261_v5 }
   0xd   : > { %s903_s16 = smov (!%p163_p3, %s162_s16), 43 }
   0xe   : > { %s578_s17 = sshll.u32 %s903_s16, 3  ;;  %s579_s23 = sshll.u32 %s903_s16, 2 }
   0xf   : > { %s765_s20 = scalar_lea.vmem %s898_s0, %s578_s17  ;;  %s830_s26 = scalar_lea.vmem %s901_s3, %s579_s23 }
  0x10   : > { %v175_v6 = vld [vmem:[%s765_s20] sm:$0xff]  ;;  %v176_v7 = vld [vmem:[%s765_s20 + $0x8] sm:$0xff]  ;;  %v177_v12 = vld [vmem:[%s765_s20 + $0x10] sm:$0xff] }
  0x11   : > { %v187_v8 = vld [vmem:[%s765_s20 + $0x60] sm:$0xff]  ;;  %v197_v9 = vpack.c.bf16 %v176_v7, %v175_v6  ;;  %v188_v10 = vld [vmem:[%s765_s20 + $0x68] sm:$0xff]  ;;  %v178_v13 = vld [vmem:[%s765_s20 + $0x18] sm:$0xff] }
  0x12   : > { %v203_v11 = vpack.c.bf16 %v188_v10, %v187_v8  ;;  %v189_v14 = vld [vmem:[%s765_s20 + $0x70] sm:$0xff]  ;;  %v190_v15 = vld [vmem:[%s765_s20 + $0x78] sm:$0xff]  ;;  %v198_v16 = vpack.c.bf16 %v178_v13, %v177_v12  ;;  %v179_v18 = vld [vmem:[%s765_s20 + $0x20] sm:$0xff] }
  0x13   : > { %654 = vmatmul.mubr.msk.bf16.vlgmr.msra.gmra.mrb[0].mxu0 %vm222_vm3, %v197_v9  ;;  %v204_v17 = vpack.c.bf16 %v190_v15, %v189_v14  ;;  %v180_v19 = vld [vmem:[%s765_s20 + $0x28] sm:$0xff]  ;;  %v191_v20 = vld [vmem:[%s765_s20 + $0x80] sm:$0xff]  ;;  %v181_v24 = vld [vmem:[%s765_s20 + $0x30] sm:$0xff] }
  0x14   : > { %678 = vmatmul.mubr.msk.bf16.vlgmr.msra.gmra.mrb[0].mxu1 %vm222_vm3, %v203_v11  ;;  %657 = vmatprep.mubr.msk.bf16.mxu0 %vm721_vm2, %v719_v0  ;;  %v192_v21 = vld [vmem:[%s765_s20 + $0x88] sm:$0xff]  ;;  %v199_v22 = vpack.c.bf16 %v180_v19, %v179_v18  ;;  %v182_v25 = vld [vmem:[%s765_s20 + $0x38] sm:$0xff]  ;;  %v193_v26 = vld [vmem:[%s765_s20 + $0x90] sm:$0xff] }
  0x15   : > { %681 = vmatprep.mubr.msk.bf16.mxu1 %vm721_vm2, %v719_v0  ;;  %v205_v23 = vpack.c.bf16 %v192_v21, %v191_v20  ;;  %v194_v27 = vld [vmem:[%s765_s20 + $0x98] sm:$0xff]  ;;  %v200_v28 = vpack.c.bf16 %v182_v25, %v181_v24  ;;  %v183_v30 = vld [vmem:[%s765_s20 + $0x40] sm:$0xff]  ;;  %v184_v31 = vld [vmem:[%s765_s20 + $0x48] sm:$0xff] }
  0x16   : > { %v206_v29 = vpack.c.bf16 %v194_v27, %v193_v26  ;;  %v195_v32 = vld [vmem:[%s765_s20 + $0xa0] sm:$0xff]  ;;  %v196_v33 = vld [vmem:[%s765_s20 + $0xa8] sm:$0xff]  ;;  %v201_v34 = vpack.c.bf16 %v184_v31, %v183_v30  ;;  %v185_v36 = vld [vmem:[%s765_s20 + $0x50] sm:$0xff] }
  0x17   : > { %v207_v35 = vpack.c.bf16 %v196_v33, %v195_v32  ;;  %v186_v37 = vld [vmem:[%s765_s20 + $0x58] sm:$0xff] }
  0x18   : > { %v202_v38 = vpack.c.bf16 %v186_v37, %v185_v36 }
  0x1b   : > { %658 = vmatmul.mubr.msk.bf16.gmra.mrb[4].mxu0 %vm222_vm3, %v198_v16 }
  0x1c   : > { %682 = vmatmul.mubr.msk.bf16.gmra.mrb[4].mxu1 %vm222_vm3, %v204_v17  ;;  %661 = vmatprep.mubr.msk.bf16.mxu0 %vm721_vm2, %v719_v0 }
  0x1d   : > { %685 = vmatprep.mubr.msk.bf16.mxu1 %vm721_vm2, %v719_v0 }
  0x23   : > { %662 = vmatmul.mubr.msk.bf16.gmra.mrb[8].mxu0 %vm222_vm3, %v199_v22 }
  0x24   : > { %686 = vmatmul.mubr.msk.bf16.gmra.mrb[8].mxu1 %vm222_vm3, %v205_v23  ;;  %665 = vmatprep.mubr.msk.bf16.mxu0 %vm721_vm2, %v719_v0 }
  0x25   : > { %689 = vmatprep.mubr.msk.bf16.mxu1 %vm721_vm2, %v719_v0 }
  0x2b   : > { %666 = vmatmul.mubr.msk.bf16.gmra.mrb[12].mxu0 %vm222_vm3, %v200_v28 }
  0x2c   : > { %690 = vmatmul.mubr.msk.bf16.gmra.mrb[12].mxu1 %vm222_vm3, %v206_v29  ;;  %669 = vmatprep.mubr.msk.bf16.mxu0 %vm721_vm2, %v719_v0 }
  0x2d   : > { %693 = vmatprep.mubr.msk.bf16.mxu1 %vm721_vm2, %v719_v0 }
  0x33   : > { %670 = vmatmul.mubr.msk.bf16.gmra.mrb[16].mxu0 %vm222_vm3, %v201_v34 }
  0x34   : > { %694 = vmatmul.mubr.msk.bf16.gmra.mrb[16].mxu1 %vm222_vm3, %v207_v35  ;;  %673 = vmatprep.mubr.msk.bf16.mxu0 %vm721_vm2, %v719_v0 }
  0x3b   : > { %674 = vmatmul.mubr.msk.bf16.gmra.mrb[20].mxu0 %vm222_vm3, %v202_v38 }
  0xe6   : > { %v297_v40 = vpop.f32.mrb[0].mxu0 }
  0xe7   : > { %v298_v41 = vadd.f32 %v821_v39, %v297_v40  ;;  %v655_v42 = vpop.f32.mrb[1].mxu0  ;;  %v345_v43 = vpop.f32.mrb[0].mxu1 }
  0xe8   : > { %v300_v44 = vpop.f32.mrb[2].mxu0  ;;  %v346_v45 = vadd.f32 %v821_v39, %v345_v43  ;;  %v679_v46 = vpop.f32.mrb[1].mxu1 }
  0xe9   : > { %v384_v47 = vmax.f32 %v298_v41, 0.0  ;;  %v301_v48 = vadd.f32 %v821_v39, %v300_v44  ;;  %v656_v49 = vpop.f32.mrb[3].mxu0  ;;  %v348_v50 = vpop.f32.mrb[2].mxu1 }
  0xea   : > { %v396_v51 = vmax.f32 %v346_v45, 0.0  ;;  %v349_v52 = vadd.f32 %v821_v39, %v348_v50  ;;  %v680_v53 = vpop.f32.mrb[3].mxu1 }
  0xeb   : > { %v617_v54 = vpack.c.bf16 %v384_v47, %v384_v47  ;;  %v385_v55 = vmax.f32 %v301_v48, 0.0 }
  0xec   : > { %v629_v56 = vpack.c.bf16 %v396_v51, %v396_v51  ;;  %v397_v57 = vmax.f32 %v349_v52, 0.0 }
  0xed   : > { %495 = vst.msk [vmem:[%s830_s26] sm:$0xf] %vm494_vm4, %v617_v54  ;;  %v618_v58 = vpack.c.bf16 %v385_v55, %v385_v55 }
  0xee   : > { %507 = vst.msk [vmem:[%s830_s26 + $0x30] sm:$0xf] %vm494_vm4, %v629_v56  ;;  %v630_v59 = vpack.c.bf16 %v397_v57, %v397_v57  ;;  %v305_v60 = vpop.f32.mrb[4].mxu0 }
  0xef   : > { %496 = vst.msk [vmem:[%s830_s26 + $0x4] sm:$0xf] %vm494_vm4, %v618_v58  ;;  %v306_v61 = vadd.f32 %v821_v39, %v305_v60  ;;  %v659_v62 = vpop.f32.mrb[5].mxu0  ;;  %v353_v63 = vpop.f32.mrb[4].mxu1 }
  0xf0   : > { %508 = vst.msk [vmem:[%s830_s26 + $0x34] sm:$0xf] %vm494_vm4, %v630_v59  ;;  %v308_v0 = vpop.f32.mrb[6].mxu0  ;;  %v354_v1 = vadd.f32 %v821_v39, %v353_v63  ;;  %v683_v2 = vpop.f32.mrb[5].mxu1 }
  0xf1   : > { %v386_v3 = vmax.f32 %v306_v61, 0.0  ;;  %v309_v4 = vadd.f32 %v821_v39, %v308_v0  ;;  %v660_v5 = vpop.f32.mrb[7].mxu0  ;;  %v356_v6 = vpop.f32.mrb[6].mxu1 }
  0xf2   : > { %v398_v7 = vmax.f32 %v354_v1, 0.0  ;;  %v357_v8 = vadd.f32 %v821_v39, %v356_v6  ;;  %v684_v9 = vpop.f32.mrb[7].mxu1 }
  0xf3   : > { %v619_v10 = vpack.c.bf16 %v386_v3, %v386_v3  ;;  %v387_v11 = vmax.f32 %v309_v4, 0.0 }
  0xf4   : > { %v631_v12 = vpack.c.bf16 %v398_v7, %v398_v7  ;;  %v399_v13 = vmax.f32 %v357_v8, 0.0 }
  0xf5   : > { %497 = vst.msk [vmem:[%s830_s26 + $0x8] sm:$0xf] %vm494_vm4, %v619_v10  ;;  %v620_v14 = vpack.c.bf16 %v387_v11, %v387_v11 }
  0xf6   : > { %509 = vst.msk [vmem:[%s830_s26 + $0x38] sm:$0xf] %vm494_vm4, %v631_v12  ;;  %v632_v15 = vpack.c.bf16 %v399_v13, %v399_v13  ;;  %v313_v16 = vpop.f32.mrb[8].mxu0 }
  0xf7   : > { %498 = vst.msk [vmem:[%s830_s26 + $0xc] sm:$0xf] %vm494_vm4, %v620_v14  ;;  %v314_v17 = vadd.f32 %v821_v39, %v313_v16  ;;  %v663_v18 = vpop.f32.mrb[9].mxu0  ;;  %v361_v19 = vpop.f32.mrb[8].mxu1 }
  0xf8   : > { %510 = vst.msk [vmem:[%s830_s26 + $0x3c] sm:$0xf] %vm494_vm4, %v632_v15  ;;  %v316_v20 = vpop.f32.mrb[10].mxu0  ;;  %v362_v21 = vadd.f32 %v821_v39, %v361_v19  ;;  %v687_v22 = vpop.f32.mrb[9].mxu1 }
  0xf9   : > { %v388_v23 = vmax.f32 %v314_v17, 0.0  ;;  %v317_v24 = vadd.f32 %v821_v39, %v316_v20  ;;  %v664_v25 = vpop.f32.mrb[11].mxu0  ;;  %v364_v26 = vpop.f32.mrb[10].mxu1 }
  0xfa   : > { %v400_v27 = vmax.f32 %v362_v21, 0.0  ;;  %v365_v28 = vadd.f32 %v821_v39, %v364_v26  ;;  %v688_v29 = vpop.f32.mrb[11].mxu1 }
  0xfb   : > { %v621_v30 = vpack.c.bf16 %v388_v23, %v388_v23  ;;  %v389_v31 = vmax.f32 %v317_v24, 0.0 }
  0xfc   : > { %v633_v32 = vpack.c.bf16 %v400_v27, %v400_v27  ;;  %v401_v33 = vmax.f32 %v365_v28, 0.0 }
  0xfd   : > { %499 = vst.msk [vmem:[%s830_s26 + $0x10] sm:$0xf] %vm494_vm4, %v621_v30  ;;  %v622_v34 = vpack.c.bf16 %v389_v31, %v389_v31 }
  0xfe   : > { %511 = vst.msk [vmem:[%s830_s26 + $0x40] sm:$0xf] %vm494_vm4, %v633_v32  ;;  %v634_v35 = vpack.c.bf16 %v401_v33, %v401_v33  ;;  %v321_v36 = vpop.f32.mrb[12].mxu0 }
  0xff   : > { %500 = vst.msk [vmem:[%s830_s26 + $0x14] sm:$0xf] %vm494_vm4, %v622_v34  ;;  %v322_v37 = vadd.f32 %v821_v39, %v321_v36  ;;  %v667_v38 = vpop.f32.mrb[13].mxu0  ;;  %v369_v40 = vpop.f32.mrb[12].mxu1 }
 0x100   : > { %512 = vst.msk [vmem:[%s830_s26 + $0x44] sm:$0xf] %vm494_vm4, %v634_v35  ;;  %v324_v41 = vpop.f32.mrb[14].mxu0  ;;  %v370_v42 = vadd.f32 %v821_v39, %v369_v40  ;;  %v691_v43 = vpop.f32.mrb[13].mxu1 }
 0x101   : > { %v390_v44 = vmax.f32 %v322_v37, 0.0  ;;  %v325_v45 = vadd.f32 %v821_v39, %v324_v41  ;;  %v668_v46 = vpop.f32.mrb[15].mxu0  ;;  %v372_v47 = vpop.f32.mrb[14].mxu1 }
 0x102   : > { %v402_v48 = vmax.f32 %v370_v42, 0.0  ;;  %v373_v49 = vadd.f32 %v821_v39, %v372_v47  ;;  %v692_v50 = vpop.f32.mrb[15].mxu1 }
 0x103   : > { %v623_v51 = vpack.c.bf16 %v390_v44, %v390_v44  ;;  %v391_v52 = vmax.f32 %v325_v45, 0.0 }
 0x104   : > { %v635_v53 = vpack.c.bf16 %v402_v48, %v402_v48  ;;  %v403_v54 = vmax.f32 %v373_v49, 0.0 }
 0x105   : > { %501 = vst.msk [vmem:[%s830_s26 + $0x18] sm:$0xf] %vm494_vm4, %v623_v51  ;;  %v624_v55 = vpack.c.bf16 %v391_v52, %v391_v52 }
 0x106   : > { %513 = vst.msk [vmem:[%s830_s26 + $0x48] sm:$0xf] %vm494_vm4, %v635_v53  ;;  %v636_v56 = vpack.c.bf16 %v403_v54, %v403_v54  ;;  %v329_v57 = vpop.f32.mrb[16].mxu0 }
 0x107   : > { %502 = vst.msk [vmem:[%s830_s26 + $0x1c] sm:$0xf] %vm494_vm4, %v624_v55  ;;  %v330_v58 = vadd.f32 %v821_v39, %v329_v57  ;;  %v671_v59 = vpop.f32.mrb[17].mxu0  ;;  %v377_v60 = vpop.f32.mrb[16].mxu1 }
 0x108   : > { %514 = vst.msk [vmem:[%s830_s26 + $0x4c] sm:$0xf] %vm494_vm4, %v636_v56  ;;  %v332_v61 = vpop.f32.mrb[18].mxu0  ;;  %v378_v62 = vadd.f32 %v821_v39, %v377_v60  ;;  %v695_v63 = vpop.f32.mrb[17].mxu1 }
 0x109   : > { %v392_v0 = vmax.f32 %v330_v58, 0.0  ;;  %v333_v1 = vadd.f32 %v821_v39, %v332_v61  ;;  %v672_v2 = vpop.f32.mrb[19].mxu0  ;;  %v380_v3 = vpop.f32.mrb[18].mxu1 }
 0x10a   : > { %v404_v4 = vmax.f32 %v378_v62, 0.0  ;;  %v381_v5 = vadd.f32 %v821_v39, %v380_v3  ;;  %v696_v6 = vpop.f32.mrb[19].mxu1 }
 0x10b   : > { %v625_v7 = vpack.c.bf16 %v392_v0, %v392_v0  ;;  %v393_v8 = vmax.f32 %v333_v1, 0.0 }
 0x10c   : > { %v637_v9 = vpack.c.bf16 %v404_v4, %v404_v4  ;;  %v405_v10 = vmax.f32 %v381_v5, 0.0 }
 0x10d   : > { %503 = vst.msk [vmem:[%s830_s26 + $0x20] sm:$0xf] %vm494_vm4, %v625_v7  ;;  %v626_v11 = vpack.c.bf16 %v393_v8, %v393_v8 }
 0x10e   : > { %515 = vst.msk [vmem:[%s830_s26 + $0x50] sm:$0xf] %vm494_vm4, %v637_v9  ;;  %v638_v12 = vpack.c.bf16 %v405_v10, %v405_v10  ;;  %v337_v13 = vpop.f32.mrb[20].mxu0 }
 0x10f   : > { %504 = vst.msk [vmem:[%s830_s26 + $0x24] sm:$0xf] %vm494_vm4, %v626_v11  ;;  %v338_v14 = vadd.f32 %v821_v39, %v337_v13  ;;  %v675_v15 = vpop.f32.mrb[21].mxu0 }
 0x110   : > { %516 = vst.msk [vmem:[%s830_s26 + $0x54] sm:$0xf] %vm494_vm4, %v638_v12  ;;  %v340_v16 = vpop.f32.mrb[22].mxu0 }
 0x111   : > { %v394_v17 = vmax.f32 %v338_v14, 0.0  ;;  %v341_v18 = vadd.f32 %v821_v39, %v340_v16  ;;  %v676_v19 = vpop.f32.mrb[23].mxu0 }
 0x113   : > { %v627_v20 = vpack.c.bf16 %v394_v17, %v394_v17  ;;  %v395_v21 = vmax.f32 %v341_v18, 0.0 }
 0x115   : > { %505 = vst.msk [vmem:[%s830_s26 + $0x28] sm:$0xf] %vm494_vm4, %v627_v20  ;;  %v628_v22 = vpack.c.bf16 %v395_v21, %v395_v21 }
 0x117   : > { %506 = vst.msk [vmem:[%s830_s26 + $0x2c] sm:$0xf] %vm494_vm4, %v628_v22 }
 0x118 PF: > { %s13_s12 = sadd.s32 1, %s717_s12  }
 0x119   : > { %p10_p4 = scmp.ge.s32.totalorder %s13_s12, 4  }
 0x11b   :  { %12 = sbr.rel (!%p10_p4) target bundleno = 1 (0x1), region = 62 }

// kernel: vae_forward.10
= control target key start
LH: loop header
LB: loop body
LE: loop exit
PB: predicated region body
PF: predicated region fallthrough
CT: control target
= control target key end

     0   :  { %s781_s12 = smov 0   ;;  %s890_s0 = inlined_call_operand.vmem [shape: bf16[96,288], index: 0, kind: input, shape index: {}]   ;;  %s891_s1 = inlined_call_operand.vmem [shape: bf16[288,64], index: 1, kind: input, shape index: {}]   ;;  %s892_s2 = inlined_call_operand.vmem [shape: f32[1,64], index: 2, kind: input, shape index: {}]   ;;  %s893_s3 = inlined_call_operand.vmem [shape: bf16[96,64], index: 3, kind: output, shape index: {}]  }
   0x1 LB: > { %s603_s13 = sadd.s32 4294967295, %s757_s12   ;;  %p607_p0 = scmp.ge.s32.totalorder %s757_s12, 1  ;;  %s757_s12 = sphi %s781_s12, %s13_s12  }
   0x2   : > { %p139_p1 = scmp.lt.s32.totalorder %s757_s12, 3 }
   0x4   : > { %p140_p2 = pnand %p607_p0, %p139_p1 }
   0x5   : > { %v721_v0 = vld [vmem:[%s891_s1 + $0x40] sm:$0xff] (!%p140_p2)   ;;  %v759_v2 = vmov (!%p140_p2), 0.0   ;;  %s164_s18 = smul.u32 (!%p140_p2), 6, %s603_s13  ;;  %v723_v3 = vld [vmem:[%s891_s1 + $0x48] sm:$0xff] (!%p140_p2)   ;;  %vm760_vm0 = vmmov (!%p140_p2), 0   ;;  %v725_v5 = vld [vmem:[%s891_s1 + $0x50] sm:$0xff] (!%p140_p2)  }
   0x6   : > { %143 = sbr.rel (%p140_p2) target bundleno = 280 (0x118), region = 32  ;;  %v722_v1 = vld [vmem:[%s891_s1] sm:$0xff] (!%p140_p2)   ;;  %694 = vmatprep.subr.bf16.mxu1 (!%p140_p2), %v759_v2  ;;  %655 = vmatprep.subr.bf16.mxu0 (!%p140_p2), %v721_v0  ;;  %v724_v4 = vld [vmem:[%s891_s1 + $0x8] sm:$0xff] (!%p140_p2)   ;;  %v726_v6 = vld [vmem:[%s891_s1 + $0x10] sm:$0xff] (!%p140_p2)   ;;  %vm386_vm1 = vcmask (!%p140_p2), 261120   ;;  %vm540_vm2 = vcmask (!%p140_p2), 519168  }
   0x7   : > { %656 = vmatpush3.bf16.msra.mxu0 (!%p140_p2), %v722_v1  ;;  %p165_p3 = scmp.lt.s32.totalorder (!%p140_p2), %s164_s18, 11  ;;  %698 = vmatprep.mubr.msk.bf16.mxu1 (!%p140_p2), %vm760_vm0, %v759_v2  ;;  %v727_v7 = vld [vmem:[%s891_s1 + $0x58] sm:$0xff] (!%p140_p2)   ;;  %v729_v9 = vld [vmem:[%s891_s1 + $0x60] sm:$0xff] (!%p140_p2)   ;;  %v731_v12 = vld [vmem:[%s891_s1 + $0x68] sm:$0xff] (!%p140_p2)  }
   0x8   : > { %657 = vmatprep.subr.bf16.mxu0 (!%p140_p2), %v723_v3  ;;  %v728_v8 = vld [vmem:[%s891_s1 + $0x18] sm:$0xff] (!%p140_p2)   ;;  %v735_v10 = vld [vmem:[%s891_s1 + $0x80] sm:$0xff] (!%p140_p2)   ;;  %v732_v13 = vld [vmem:[%s891_s1 + $0x28] sm:$0xff] (!%p140_p2)  }
   0x9   : > { %v730_v11 = vld [vmem:[%s891_s1 + $0x20] sm:$0xff] (!%p140_p2)   ;;  %695 = vmatpush3.bf16.msra.mxu1 (!%p140_p2), %v735_v10  ;;  %v733_v14 = vld [vmem:[%s891_s1 + $0x70] sm:$0xff] (!%p140_p2)   ;;  %v741_v16 = vld [vmem:[%s891_s1 + $0x88] sm:$0xff] (!%p140_p2)  }
   0xa   : > { %696 = vmatprep.subr.bf16.mxu1 (!%p140_p2), %v759_v2  ;;  %v734_v18 = vld [vmem:[%s891_s1 + $0x30] sm:$0xff] (!%p140_p2)   ;;  %v736_v19 = vld [vmem:[%s891_s1 + $0x78] sm:$0xff] (!%p140_p2)   ;;  %v610_v37 = vld [vmem:[%s892_s2] ss:$0 sm:$0xff] (!%p140_p2) }
   0xb   : > { %658 = vmatpush3.bf16.msra.mxu0 (!%p140_p2), %v724_v4  ;;  %v737_v20 = vld [vmem:[%s891_s1 + $0x38] sm:$0xff] (!%p140_p2)  }
   0xc   : > { %659 = vmatprep.subr.bf16.mxu0 (!%p140_p2), %v725_v5 }
   0xd   : > { %s895_s18 = smov (!%p165_p3, %s164_s18), 11  ;;  %697 = vmatpush3.bf16.msra.mxu1 %v741_v16 }
   0xe   : > { %s710_s4 = smul.u32 12, %s895_s18  ;;  %s609_s5 = sshll.u32 %s895_s18, 2 }
   0xf   : > { %660 = vmatpush3.bf16.msra.mxu0 %v726_v6  ;;  %s873_s8 = scalar_lea.vmem %s893_s3, %s609_s5 }
  0x10   : > { %661 = vmatprep.subr.bf16.mxu0 %v727_v7  ;;  %s829_s14 = scalar_lea.vmem %s890_s0, %s710_s4 }
  0x11   : > { %v740_v15 = vld [vmem:[%s829_s14 + $0x4] ss:$12 sps:$4 sm:$0xff]   ;;  %v742_v17 = vld [vmem:[%s829_s14 + $0x8] ss:$12 sps:$4 sm:$0xff]   ;;  %v746_v21 = vld [vmem:[%s829_s14 + $0x20] ss:$12 sps:$4 sm:$0xff]  }
  0x12   : > { %428 = vmatprep.mubr.bf16.mxu0 %v740_v15  ;;  %699 = vmatmul.mubr.msk.bf16.vlgmr.msra.gmra.mrb[0].mxu1 %vm386_vm1, %v742_v17  ;;  %v738_v22 = vld [vmem:[%s829_s14] ss:$12 sps:$4 sm:$0xff]   ;;  %v743_v23 = vld [vmem:[%s829_s14 + $0x1c] ss:$12 sps:$4 sm:$0xff]   ;;  %v750_v24 = vld [vmem:[%s829_s14 + $0x38] ss:$12 sps:$4 sm:$0xff]  }
  0x13   : > { %662 = vmatpush3.bf16.msra.mxu0 %v728_v8  ;;  %702 = vmatprep.mubr.msk.bf16.mxu1 %vm760_vm0, %v759_v2  ;;  %v745_v25 = vld [vmem:[%s829_s14 + $0x18] ss:$12 sps:$4 sm:$0xff]   ;;  %v747_v26 = vld [vmem:[%s829_s14 + $0x34] ss:$12 sps:$4 sm:$0xff]   ;;  %v749_v27 = vld [vmem:[%s829_s14 + $0x30] ss:$12 sps:$4 sm:$0xff]  }
  0x14   : > { %663 = vmatprep.subr.bf16.mxu0 %v729_v9 }
  0x17   : > { %664 = vmatpush3.bf16.msra.mxu0 %v730_v11 }
  0x18   : > { %665 = vmatprep.subr.bf16.mxu0 %v731_v12 }
  0x1a   : > { %703 = vmatmul.mubr.msk.bf16.gmra.mrb[4].mxu1 %vm386_vm1, %v746_v21 }
  0x1b   : > { %666 = vmatpush3.bf16.msra.mxu0 %v732_v13  ;;  %706 = vmatprep.mubr.msk.bf16.mxu1 %vm760_vm0, %v759_v2 }
  0x1c   : > { %667 = vmatprep.subr.bf16.mxu0 %v733_v14 }
  0x1f   : > { %668 = vmatpush3.bf16.msra.mxu0 %v734_v18 }
  0x20   : > { %669 = vmatprep.subr.bf16.mxu0 %v736_v19 }
  0x22   : > { %707 = vmatmul.mubr.msk.bf16.gmra.mrb[8].mxu1 %vm386_vm1, %v750_v24 }
  0x23   : > { %670 = vmatpush3.bf16.msra.mxu0 %v737_v20 }
  0x26   : > { %429 = vmatmul.mubr.bf16.vlgmr.msra.gmra.mrb[0].mxu0 %v738_v22 }
  0x27   : > { %436 = vmatprep.mubr.bf16.mxu0 %v743_v23 }
  0x2e   : > { %437 = vmatmul.mubr.bf16.gmra.mrb[4].mxu0 %v745_v25 }
  0x2f   : > { %444 = vmatprep.mubr.bf16.mxu0 %v747_v26 }
  0x36   : > { %445 = vmatmul.mubr.bf16.gmra.mrb[8].mxu0 %v749_v27 }
  0xe5   : > { %v487_v28 = vpop.f32.mrb[0].mxu1 }
  0xe6   : > { %v700_v29 = vpop.f32.mrb[1].mxu1 }
  0xe7   : > { %v490_v30 = vpop.f32.mrb[2].mxu1 }
  0xe8   : > { %v701_v31 = vpop.f32.mrb[3].mxu1 }
  0xed   : > { %v495_v32 = vpop.f32.mrb[4].mxu1 }
  0xee   : > { %v704_v33 = vpop.f32.mrb[5].mxu1 }
  0xef   : > { %v498_v35 = vpop.f32.mrb[6].mxu1 }
  0xf0   : > { %v705_v38 = vpop.f32.mrb[7].mxu1 }
  0xf5   : > { %v503_v46 = vpop.f32.mrb[8].mxu1 }
  0xf6   : > { %v708_v47 = vpop.f32.mrb[9].mxu1 }
  0xf7   : > { %v506_v51 = vpop.f32.mrb[10].mxu1 }
  0xf8   : > { %v709_v53 = vpop.f32.mrb[11].mxu1 }
  0xf9   : > { %v671_v34 = vpop.f32.mrb[0].mxu0 }
  0xfa   : > { %v672_v36 = vpop.f32.mrb[1].mxu0 }
  0xfb   : > { %v673_v39 = vadd.f32 %v672_v36, %v671_v34  ;;  %v674_v40 = vpop.f32.mrb[2].mxu0 }
  0xfc   : > { %v675_v41 = vpop.f32.mrb[3].mxu0 }
  0xfd   : > { %v431_v42 = vadd.f32 %v673_v39, %v610_v37  ;;  %v676_v43 = vadd.f32 %v675_v41, %v674_v40 }
  0xff   : > { %v488_v44 = vadd.f32 %v487_v28, %v431_v42  ;;  %v434_v45 = vadd.f32 %v676_v43, %v610_v37 }
 0x101   : > { %v510_v48 = vmax.f32 %v488_v44, 0.0  ;;  %v491_v49 = vadd.f32 %v490_v30, %v434_v45  ;;  %v677_v50 = vpop.f32.mrb[4].mxu0 }
 0x102   : > { %v678_v52 = vpop.f32.mrb[5].mxu0 }
 0x103   : > { %v649_v54 = vpack.c.bf16 %v510_v48, %v510_v48  ;;  %v511_v55 = vmax.f32 %v491_v49, 0.0  ;;  %v679_v56 = vadd.f32 %v678_v52, %v677_v50  ;;  %v680_v57 = vpop.f32.mrb[6].mxu0 }
 0x104   : > { %v681_v58 = vpop.f32.mrb[7].mxu0 }
 0x105   : > { %541 = vst.msk [vmem:[%s873_s8] sm:$0xf] %vm540_vm2, %v649_v54  ;;  %v650_v59 = vpack.c.bf16 %v511_v55, %v511_v55  ;;  %v439_v60 = vadd.f32 %v679_v56, %v610_v37  ;;  %v682_v61 = vadd.f32 %v681_v58, %v680_v57 }
 0x107   : > { %542 = vst.msk [vmem:[%s873_s8 + $0x4] sm:$0xf] %vm540_vm2, %v650_v59  ;;  %v496_v62 = vadd.f32 %v495_v32, %v439_v60  ;;  %v442_v63 = vadd.f32 %v682_v61, %v610_v37 }
 0x109   : > { %v512_v0 = vmax.f32 %v496_v62, 0.0  ;;  %v499_v1 = vadd.f32 %v498_v35, %v442_v63  ;;  %v683_v2 = vpop.f32.mrb[8].mxu0 }
 0x10a   : > { %v684_v3 = vpop.f32.mrb[9].mxu0 }
 0x10b   : > { %v651_v4 = vpack.c.bf16 %v512_v0, %v512_v0  ;;  %v513_v5 = vmax.f32 %v499_v1, 0.0  ;;  %v685_v6 = vadd.f32 %v684_v3, %v683_v2  ;;  %v686_v7 = vpop.f32.mrb[10].mxu0 }
 0x10c   : > { %v687_v8 = vpop.f32.mrb[11].mxu0 }
 0x10d   : > { %543 = vst.msk [vmem:[%s873_s8 + $0x8] sm:$0xf] %vm540_vm2, %v651_v4  ;;  %v652_v9 = vpack.c.bf16 %v513_v5, %v513_v5  ;;  %v447_v10 = vadd.f32 %v685_v6, %v610_v37  ;;  %v688_v11 = vadd.f32 %v687_v8, %v686_v7 }
 0x10f   : > { %544 = vst.msk [vmem:[%s873_s8 + $0xc] sm:$0xf] %vm540_vm2, %v652_v9  ;;  %v504_v12 = vadd.f32 %v503_v46, %v447_v10  ;;  %v450_v13 = vadd.f32 %v688_v11, %v610_v37 }
 0x111   : > { %v514_v14 = vmax.f32 %v504_v12, 0.0  ;;  %v507_v15 = vadd.f32 %v506_v51, %v450_v13 }
 0x113   : > { %v653_v16 = vpack.c.bf16 %v514_v14, %v514_v14  ;;  %v515_v17 = vmax.f32 %v507_v15, 0.0 }
 0x115   : > { %545 = vst.msk [vmem:[%s873_s8 + $0x10] sm:$0xf] %vm540_vm2, %v653_v16  ;;  %v654_v18 = vpack.c.bf16 %v515_v17, %v515_v17 }
 0x117   : > { %546 = vst.msk [vmem:[%s873_s8 + $0x14] sm:$0xf] %vm540_vm2, %v654_v18 }
 0x118 PF: > { %s13_s12 = sadd.s32 1, %s757_s12  }
 0x119   : > { %p10_p4 = scmp.ge.s32.totalorder %s13_s12, 4  }
 0x11b   :  { %12 = sbr.rel (!%p10_p4) target bundleno = 1 (0x1), region = 62 }

// kernel: vae_forward.11
= control target key start
LH: loop header
LB: loop body
LE: loop exit
PB: predicated region body
PF: predicated region fallthrough
CT: control target
= control target key end

     0   :  { %s901_s12 = smov 0   ;;  %s1042_s0 = inlined_call_operand.vmem [shape: bf16[32,576], index: 0, kind: input, shape index: {}]   ;;  %s1043_s1 = inlined_call_operand.vmem [shape: bf16[576,64], index: 1, kind: input, shape index: {}]   ;;  %s1044_s2 = inlined_call_operand.vmem [shape: f32[1,64], index: 2, kind: input, shape index: {}]   ;;  %s1045_s3 = inlined_call_operand.vmem [shape: bf16[32,64], index: 3, kind: output, shape index: {}]  }
   0x1 LB: > { %s698_s13 = sadd.s32 4294967295, %s877_s12   ;;  %p702_p0 = scmp.ge.s32.totalorder %s877_s12, 1  ;;  %s877_s12 = sphi %s901_s12, %s13_s12  }
   0x2   : > { %p139_p1 = scmp.lt.s32.totalorder %s877_s12, 3 }
   0x4   : > { %p140_p2 = pnand %p702_p0, %p139_p1 }
   0x5   : > { %v828_v0 = vld [vmem:[%s1043_s1 + $0x40] sm:$0xff] (!%p140_p2)   ;;  %v832_v4 = vld [vmem:[%s1043_s1 + $0x48] sm:$0xff] (!%p140_p2)   ;;  %v836_v8 = vld [vmem:[%s1043_s1 + $0x50] sm:$0xff] (!%p140_p2)   ;;  %s703_s17 = sshll.u32 (!%p140_p2), %s698_s13, 1  ;;  %v879_v33 = vmov (!%p140_p2), 0.0   ;;  %vm880_vm0 = vmmov (!%p140_p2), 0  }
   0x6   : > { %143 = sbr.rel (%p140_p2) target bundleno = 273 (0x111), region = 32  ;;  %v829_v1 = vld [vmem:[%s1043_s1] sm:$0xff] (!%p140_p2)   ;;  %756 = vmatprep.subr.bf16.mxu0 (!%p140_p2), %v828_v0  ;;  %v833_v5 = vld [vmem:[%s1043_s1 + $0x8] sm:$0xff] (!%p140_p2)   ;;  %v837_v9 = vld [vmem:[%s1043_s1 + $0x10] sm:$0xff] (!%p140_p2)   ;;  %p165_p3 = scmp.lt.s32.totalorder (!%p140_p2), %s703_s17, 3  ;;  %vm504_vm1 = vcmask (!%p140_p2), 523264  }
   0x7   : > { %v830_v2 = vld [vmem:[%s1043_s1 + $0xc0] sm:$0xff] (!%p140_p2)   ;;  %757 = vmatpush3.bf16.msra.mxu0 (!%p140_p2), %v829_v1  ;;  %v834_v6 = vld [vmem:[%s1043_s1 + $0xc8] sm:$0xff] (!%p140_p2)   ;;  %v838_v10 = vld [vmem:[%s1043_s1 + $0xd0] sm:$0xff] (!%p140_p2)   ;;  %vm639_vm2 = vcmask (!%p140_p2), 519168  }
   0x8   : > { %v831_v3 = vld [vmem:[%s1043_s1 + $0x80] sm:$0xff] (!%p140_p2)   ;;  %778 = vmatprep.subr.bf16.mxu1 (!%p140_p2), %v830_v2  ;;  %758 = vmatprep.subr.bf16.mxu0 (!%p140_p2), %v832_v4  ;;  %v835_v7 = vld [vmem:[%s1043_s1 + $0x88] sm:$0xff] (!%p140_p2)   ;;  %v839_v11 = vld [vmem:[%s1043_s1 + $0x90] sm:$0xff] (!%p140_p2)  }
   0x9   : > { %779 = vmatpush3.bf16.msra.mxu1 (!%p140_p2), %v831_v3  ;;  %v840_v12 = vld [vmem:[%s1043_s1 + $0x58] sm:$0xff] (!%p140_p2)   ;;  %v844_v16 = vld [vmem:[%s1043_s1 + $0x60] sm:$0xff] (!%p140_p2)   ;;  %v848_v20 = vld [vmem:[%s1043_s1 + $0x68] sm:$0xff] (!%p140_p2)  }
   0xa   : > { %780 = vmatprep.subr.bf16.mxu1 (!%p140_p2), %v834_v6  ;;  %v841_v13 = vld [vmem:[%s1043_s1 + $0x18] sm:$0xff] (!%p140_p2)   ;;  %v845_v17 = vld [vmem:[%s1043_s1 + $0x20] sm:$0xff] (!%p140_p2)   ;;  %v849_v21 = vld [vmem:[%s1043_s1 + $0x28] sm:$0xff] (!%p140_p2)  }
   0xb   : > { %759 = vmatpush3.bf16.msra.mxu0 (!%p140_p2), %v833_v5  ;;  %v842_v14 = vld [vmem:[%s1043_s1 + $0xd8] sm:$0xff] (!%p140_p2)   ;;  %v846_v18 = vld [vmem:[%s1043_s1 + $0xe0] sm:$0xff] (!%p140_p2)   ;;  %v850_v22 = vld [vmem:[%s1043_s1 + $0xe8] sm:$0xff] (!%p140_p2)  }
   0xc   : > { %760 = vmatprep.subr.bf16.mxu0 (!%p140_p2), %v836_v8  ;;  %v843_v15 = vld [vmem:[%s1043_s1 + $0x98] sm:$0xff] (!%p140_p2)   ;;  %v847_v19 = vld [vmem:[%s1043_s1 + $0xa0] sm:$0xff] (!%p140_p2)   ;;  %v851_v23 = vld [vmem:[%s1043_s1 + $0xa8] sm:$0xff] (!%p140_p2)  }
   0xd   : > { %781 = vmatpush3.bf16.msra.mxu1 %v835_v7  ;;  %s1047_s17 = smov (!%p165_p3, %s703_s17), 3  ;;  %v852_v24 = vld [vmem:[%s1043_s1 + $0x70] sm:$0xff]   ;;  %v856_v28 = vld [vmem:[%s1043_s1 + $0x78] sm:$0xff]   ;;  %v866_v37 = vld [vmem:[%s1043_s1 + $0x100] sm:$0xff]  }
   0xe   : > { %782 = vmatprep.subr.bf16.mxu1 %v838_v10  ;;  %s817_s14 = smul.u32 20, %s1047_s17  ;;  %v853_v25 = vld [vmem:[%s1043_s1 + $0x30] sm:$0xff]   ;;  %v857_v29 = vld [vmem:[%s1043_s1 + $0x38] sm:$0xff]   ;;  %v867_v38 = vld [vmem:[%s1043_s1 + $0x108] sm:$0xff]   ;;  %s706_s18 = sshll.u32 %s1047_s17, 2 }
   0xf   : > { %761 = vmatpush3.bf16.msra.mxu0 %v837_v9  ;;  %v854_v26 = vld [vmem:[%s1043_s1 + $0xf0] sm:$0xff]   ;;  %v858_v30 = vld [vmem:[%s1043_s1 + $0xf8] sm:$0xff]   ;;  %v707_v43 = vld [vmem:[%s1044_s2] ss:$0 sm:$0xff]  ;;  %s175_s21 = scalar_lea.vmem %s1045_s3, %s706_s18 }
  0x10   : > { %762 = vmatprep.subr.bf16.mxu0 %v840_v12  ;;  %v855_v27 = vld [vmem:[%s1043_s1 + $0xb0] sm:$0xff]   ;;  %s1004_s13 = scalar_lea.vmem %s1042_s0, %s817_s14  ;;  %v862_v34 = vld [vmem:[%s1043_s1 + $0xb8] sm:$0xff]  }
  0x11   : > { %783 = vmatpush3.bf16.msra.mxu1 %v839_v11  ;;  %v859_v31 = vld [vmem:[%s1004_s13] ss:$20 sps:$4 sm:$0xff]   ;;  %v861_v32 = vld [vmem:[%s1004_s13 + $0x4] ss:$20 sps:$4 sm:$0xff]   ;;  %v863_v35 = vld [vmem:[%s1004_s13 + $0x8] ss:$20 sps:$4 sm:$0xff]  }
  0x12   : > { %784 = vmatprep.subr.bf16.mxu1 %v842_v14  ;;  %540 = vmatprep.mubr.bf16.mxu0 %v861_v32  ;;  %v865_v36 = vld [vmem:[%s1004_s13 + $0xc] ss:$20 sps:$4 sm:$0xff]   ;;  %v868_v39 = vld [vmem:[%s1043_s1 + $0x110] sm:$0xff]   ;;  %v869_v40 = vld [vmem:[%s1043_s1 + $0x118] sm:$0xff]  }
  0x13   : > { %763 = vmatpush3.bf16.msra.mxu0 %v841_v13  ;;  %581 = vmatprep.mubr.bf16.mxu1 %v865_v36  ;;  %v870_v41 = vld [vmem:[%s1004_s13 + $0x10] ss:$20 sps:$4 sm:$0xff]  }
  0x14   : > { %764 = vmatprep.subr.bf16.mxu0 %v844_v16 }
  0x15   : > { %785 = vmatpush3.bf16.msra.mxu1 %v843_v15 }
  0x16   : > { %786 = vmatprep.subr.bf16.mxu1 %v846_v18 }
  0x17   : > { %765 = vmatpush3.bf16.msra.mxu0 %v845_v17 }
  0x18   : > { %766 = vmatprep.subr.bf16.mxu0 %v848_v20 }
  0x19   : > { %787 = vmatpush3.bf16.msra.mxu1 %v847_v19 }
  0x1a   : > { %788 = vmatprep.subr.bf16.mxu1 %v850_v22 }
  0x1b   : > { %767 = vmatpush3.bf16.msra.mxu0 %v849_v21 }
  0x1c   : > { %768 = vmatprep.subr.bf16.mxu0 %v852_v24 }
  0x1d   : > { %789 = vmatpush3.bf16.msra.mxu1 %v851_v23 }
  0x1e   : > { %790 = vmatprep.subr.bf16.mxu1 %v854_v26 }
  0x1f   : > { %769 = vmatpush3.bf16.msra.mxu0 %v853_v25 }
  0x20   : > { %770 = vmatprep.subr.bf16.mxu0 %v856_v28 }
  0x21   : > { %791 = vmatpush3.bf16.msra.mxu1 %v855_v27 }
  0x22   : > { %792 = vmatprep.subr.bf16.mxu1 %v858_v30 }
  0x23   : > { %771 = vmatpush3.bf16.msra.mxu0 %v857_v29 }
  0x24   : > { %805 = vmatprep.subr.bf16.mxu0 %v879_v33 }
  0x25   : > { %793 = vmatpush3.bf16.msra.mxu1 %v862_v34 }
  0x26   : > { %541 = vmatmul.mubr.bf16.vlgmr.msra.gmra.mrb[0].mxu0 %v859_v31 }
  0x27   : > { %813 = vmatprep.mubr.msk.bf16.mxu0 %vm880_vm0, %v879_v33  ;;  %806 = vmatpush3.bf16.msra.mxu0 %v866_v37 }
  0x28   : > { %582 = vmatmul.mubr.bf16.vlgmr.msra.gmra.mrb[0].mxu1 %v863_v35  ;;  %807 = vmatprep.subr.bf16.mxu0 %v879_v33 }
  0x2b   : > { %808 = vmatpush3.bf16.msra.mxu0 %v867_v38 }
  0x2c   : > { %809 = vmatprep.subr.bf16.mxu0 %v879_v33 }
  0x2f   : > { %810 = vmatpush3.bf16.msra.mxu0 %v868_v39 }
  0x30   : > { %811 = vmatprep.subr.bf16.mxu0 %v879_v33 }
  0x33   : > { %812 = vmatpush3.bf16.msra.mxu0 %v869_v40 }
  0x36   : > { %814 = vmatmul.mubr.msk.bf16.vlgmr.msra.gmra.mrb[4].mxu0 %vm504_vm1, %v870_v41 }
  0xf9   : > { %v772_v42 = vpop.f32.mrb[0].mxu0 }
  0xfa   : > { %v773_v44 = vpop.f32.mrb[1].mxu0 }
  0xfb   : > { %v774_v45 = vadd.f32 %v773_v44, %v772_v42  ;;  %v775_v46 = vpop.f32.mrb[2].mxu0  ;;  %v794_v47 = vpop.f32.mrb[0].mxu1 }
  0xfc   : > { %v776_v48 = vpop.f32.mrb[3].mxu0  ;;  %v795_v51 = vpop.f32.mrb[1].mxu1 }
  0xfd   : > { %v543_v49 = vadd.f32 %v774_v45, %v707_v43  ;;  %v777_v50 = vadd.f32 %v776_v48, %v775_v46  ;;  %v796_v52 = vadd.f32 %v795_v51, %v794_v47  ;;  %v797_v53 = vpop.f32.mrb[2].mxu1 }
  0xfe   : > { %v798_v55 = vpop.f32.mrb[3].mxu1 }
  0xff   : > { %v546_v54 = vadd.f32 %v777_v50, %v707_v43  ;;  %v799_v56 = vadd.f32 %v798_v55, %v797_v53  ;;  %v584_v57 = vadd.f32 %v796_v52, %v543_v49 }
 0x101   : > { %v587_v58 = vadd.f32 %v799_v56, %v546_v54 }
 0x109   : > { %v624_v59 = vpop.f32.mrb[4].mxu0 }
 0x10a   : > { %v625_v60 = vadd.f32 %v624_v59, %v584_v57  ;;  %v815_v61 = vpop.f32.mrb[5].mxu0 }
 0x10b   : > { %v627_v62 = vpop.f32.mrb[6].mxu0 }
 0x10c   : > { %v754_v63 = vpack.c.bf16 %v625_v60, %v625_v60  ;;  %v628_v0 = vadd.f32 %v627_v62, %v587_v58  ;;  %v816_v1 = vpop.f32.mrb[7].mxu0 }
 0x10e   : > { %640 = vst.msk [vmem:[%s175_s21] sm:$0xf] %vm639_vm2, %v754_v63  ;;  %v755_v2 = vpack.c.bf16 %v628_v0, %v628_v0 }
 0x110   : > { %641 = vst.msk [vmem:[%s175_s21 + $0x4] sm:$0xf] %vm639_vm2, %v755_v2 }
 0x111 PF: > { %s13_s12 = sadd.s32 1, %s877_s12  }
 0x112   : > { %p10_p4 = scmp.ge.s32.totalorder %s13_s12, 4  }
 0x114   :  { %12 = sbr.rel (!%p10_p4) target bundleno = 1 (0x1), region = 62 }

// kernel: vae_forward.13
= control target key start
LH: loop header
LB: loop body
LE: loop exit
PB: predicated region body
PF: predicated region fallthrough
CT: control target
= control target key end

     0   :  { %12 = vsyncpa [#allocation3], 0  ;;  %v523_v1 = vmov 0   ;;  %v93_v20 = vlaneseq  ;;  %v524_v25 = vmov 1966171168   ;;  %s686_s0 = inlined_call_operand.vmem [shape: bf16[2,400], index: 0, kind: input, shape index: {}]   ;;  %s687_s1 = inlined_call_operand.vmem [shape: bf16[400,40], index: 1, kind: input, shape index: {}]   ;;  %s688_s2 = inlined_call_operand.vmem [shape: f32[1,40], index: 2, kind: input, shape index: {}]   ;;  %s689_s3 = inlined_call_operand.vmem [shape: f32[2,20], index: 3, kind: input, shape index: {}]   ;;  %s690_s4 = inlined_call_operand.hbm [shape: f32[2,20], index: 4, kind: output, shape index: {0}]   ;;  %s691_s5 = inlined_call_operand.hbm [shape: f32[2,20], index: 5, kind: output, shape index: {1}]   ;;  %s692_s6 = inlined_call_operand.vmem [shape: f32[2,20], index: 6, kind: output, shape index: {2}]  }
   0x1   :  { %v448_v0 = vld [vmem:[%s687_s1 + $0x40] sm:$0xff]   ;;  %303 = vmatprep.subr.bf16.mxu1 %v523_v1  ;;  %v451_v4 = vld [vmem:[%s687_s1 + $0x48] sm:$0xff]   ;;  %v454_v7 = vld [vmem:[%s687_s1 + $0x50] sm:$0xff]   ;;  %v91_v26 = vunpack.c.l.s4 %v524_v25 }
   0x2   :  { %v449_v2 = vld [vmem:[%s687_s1 + $0x80] sm:$0xff]   ;;  %421 = vmatprep.subr.bf16.mxu0 %v448_v0  ;;  %v452_v5 = vld [vmem:[%s687_s1 + $0x88] sm:$0xff]   ;;  %v455_v8 = vld [vmem:[%s687_s1 + $0x90] sm:$0xff]   ;;  %v94_v27 = vshrl.u32 %v93_v20, 7 }
   0x3   :  { %v450_v3 = vld [vmem:[%s687_s1] sm:$0xff]   ;;  %304 = vmatpush1.bf16.msra.mxu1 %v449_v2  ;;  %v453_v6 = vld [vmem:[%s687_s1 + $0x8] sm:$0xff]   ;;  %v456_v9 = vld [vmem:[%s687_s1 + $0x10] sm:$0xff]  }
   0x4   :  { %422 = vmatpush3.bf16.msra.mxu0 %v450_v3  ;;  %305 = vmatprep.subr.bf16.mxu1 %v523_v1  ;;  %v457_v10 = vld [vmem:[%s687_s1 + $0x58] sm:$0xff]   ;;  %v460_v13 = vld [vmem:[%s687_s1 + $0x60] sm:$0xff]   ;;  %v463_v16 = vld [vmem:[%s687_s1 + $0x68] sm:$0xff]  }
   0x5   :  { %423 = vmatprep.subr.bf16.mxu0 %v451_v4  ;;  %v458_v11 = vld [vmem:[%s687_s1 + $0x98] sm:$0xff]   ;;  %v461_v14 = vld [vmem:[%s687_s1 + $0xa0] sm:$0xff]   ;;  %v464_v17 = vld [vmem:[%s687_s1 + $0xa8] sm:$0xff]  }
   0x6   :  { %v459_v12 = vld [vmem:[%s687_s1 + $0x18] sm:$0xff]   ;;  %v462_v15 = vld [vmem:[%s687_s1 + $0x20] sm:$0xff]   ;;  %v465_v18 = vld [vmem:[%s687_s1 + $0x28] sm:$0xff]  }
   0x7   :  { %306 = vmatpush1.bf16.msra.mxu1 %v452_v5  ;;  %v466_v19 = vld [vmem:[%s687_s1 + $0x70] sm:$0xff]   ;;  %v394_v23 = vld.sshfl [vmem:[%s686_s0] sm:$0x33 pattern:$0x75316420]  ;;  %v469_v24 = vld [vmem:[%s687_s1 + $0x78] sm:$0xff]  }
   0x8   :  { %424 = vmatpush3.bf16.msra.mxu0 %v453_v6  ;;  %307 = vmatprep.subr.bf16.mxu1 %v523_v1  ;;  %v467_v21 = vld [vmem:[%s687_s1 + $0xb0] sm:$0xff]  }
   0x9   :  { %425 = vmatprep.subr.bf16.mxu0 %v454_v7  ;;  %v468_v22 = vld [vmem:[%s687_s1 + $0x30] sm:$0xff]  }
   0xb   :  { %308 = vmatpush1.bf16.msra.mxu1 %v455_v8 }
   0xc   :  { %426 = vmatpush3.bf16.msra.mxu0 %v456_v9  ;;  %309 = vmatprep.subr.bf16.mxu1 %v523_v1 }
   0xd   :  { %427 = vmatprep.subr.bf16.mxu0 %v457_v10 }
   0xf   :  { %310 = vmatpush1.bf16.msra.mxu1 %v458_v11 }
  0x10   :  { %428 = vmatpush3.bf16.msra.mxu0 %v459_v12  ;;  %311 = vmatprep.subr.bf16.mxu1 %v523_v1 }
  0x11   :  { %429 = vmatprep.subr.bf16.mxu0 %v460_v13 }
  0x13   :  { %312 = vmatpush1.bf16.msra.mxu1 %v461_v14 }
  0x14   :  { %430 = vmatpush3.bf16.msra.mxu0 %v462_v15  ;;  %313 = vmatprep.subr.bf16.mxu1 %v523_v1 }
  0x15   :  { %431 = vmatprep.subr.bf16.mxu0 %v463_v16 }
  0x17   :  { %314 = vmatpush1.bf16.msra.mxu1 %v464_v17 }
  0x18   :  { %432 = vmatpush3.bf16.msra.mxu0 %v465_v18  ;;  %315 = vmatprep.subr.bf16.mxu1 %v523_v1 }
  0x19   :  { %433 = vmatprep.subr.bf16.mxu0 %v466_v19 }
  0x1a   :  { %13 = vsyncpa [#allocation5], 0  ;;  %v470_v28 = vld [vmem:[%s687_s1 + $0xb8] sm:$0xff]   ;;  %v89_v29 = vcombine.high %v394_v23, %v394_v23  ;;  %v92_v30 = vunpack.c.0.s8 %v91_v26  ;;  %v472_v35 = vld [vmem:[%s687_s1 + $0xc0] sm:$0xff]   ;;  %vm259_vm0 = vcmask 130048   ;;  %vm353_vm1 = vcmask 156672  }
  0x1b   :  { %316 = vmatpush1.bf16.msra.mxu1 %v467_v21  ;;  %v471_v31 = vld [vmem:[%s687_s1 + $0x38] sm:$0xff]   ;;  %v393_v40 = vld [vmem:[%s688_s2] ss:$0 sm:$0xff]  ;;  %s525_s1 = smov [#allocation2]  }
  0x1c   :  { %434 = vmatpush3.bf16.msra.mxu0 %v468_v22  ;;  %317 = vmatprep.subr.bf16.mxu1 %v523_v1  ;;  %v95_v32 = vsub.s32 %v92_v30, %v94_v27  ;;  %s367_s26 = sshll.u32 %s525_s1, 4  ;;  %s368_s26 = int_to_ptr.vmem [resolvable:$true] %s367_s26 }
  0x1d   :  { %435 = vmatprep.subr.bf16.mxu0 %v469_v24  ;;  %s475_s27 = scalar_lea.vmem %s368_s26, 32  ;;  %p480_p1 = scmp.lt.s32.totalorder %s368_s26, %s368_s26 }
  0x1e   :  { %v103_v33 = vrot.slane %v89_v29, %v95_v32  ;;  %v96_v34 = vrot.slane %v394_v23, %v95_v32  ;;  %p476_p0 = scmp.ne.s32.totalorder %s368_s26, %s475_s27  ;;  %p481_p2 = scmp.lt.s32.totalorder %s475_s27, %s475_s27 }
  0x1f   :  { %318 = vmatpush1.bf16.msra.mxu1 %v470_v28 }
  0x20   :  { %436 = vmatpush3.bf16.msra.mxu0 %v471_v31  ;;  %319 = vmatprep.subr.bf16.mxu1 %v523_v1  ;;  %v105_v36 = vcombine.high %v103_v33, %v103_v33  ;;  %v104_v37 = vcombine.high %v96_v34, %v96_v34  ;;  %p482_p3 = por %p481_p2, %p480_p1 }
  0x21   :  { %295 = vmatprep.mubr.bf16.mxu0 %v103_v33 }
  0x22   :  { %420 = vmatprep.mubr.msk.bf16.mxu1 %vm259_vm0, %v105_v36  ;;  %p483_p4 = pnand %p482_p3, %p476_p0 }
  0x23   :  { %296 = vmatmul.mubr.bf16.vlgmr.msra.gmra.mrb[0].mxu0 %v96_v34  ;;  %320 = vmatpush1.bf16.msra.mxu1 %v472_v35 }
  0x26   :  { %336 = vmatmul.mubr.bf16.vlgmr.msra.gmra.mrb[0].mxu1 %v104_v37 }
  0xf6   :  { %v437_v38 = vpop.f32.mrb[0].mxu0 }
  0xf7   :  { %v438_v39 = vpop.f32.mrb[1].mxu0 }
  0xf8   :  { %v439_v41 = vadd.f32 %v438_v39, %v437_v38  ;;  %v440_v42 = vpop.f32.mrb[2].mxu0 }
  0xf9   :  { %v441_v43 = vpop.f32.mrb[3].mxu0  ;;  %v337_v44 = vpop.f32.mrb[0].mxu1 }
  0xfa   :  { %v298_v45 = vadd.f32 %v439_v41, %v393_v40  ;;  %v339_v46 = vpop.f32.mrb[1].mxu1 }
  0xfb   :  { %v340_v47 = vpop.f32.mrb[2].mxu1 }
  0xfc   :  { %v338_v48 = vadd.f32 %v337_v44, %v298_v45  ;;  %v341_v49 = vpop.f32.mrb[3].mxu1 }
  0xfe   :  { %v344_v50 = vmul.f32 0.5, %v338_v48  ;;  %354 = vst.msk [vmem:[#allocation2] sm:$0x3] %vm353_vm1, %v338_v48 }
 0x100   :  { %v345_v51 = vmul.f32 1.442695, %v344_v50 }
 0x102   :  { %473 = vpow2.f32 %v345_v51 }
 0x103   :  { %486 = shalt.err (!%p483_p4)
}
 0x104   :  { %s487_s29 = scalar_lea.hbm %s690_s4, 32 }
 0x105   :  { %p488_p5 = scmp.ne.s32.totalorder %s690_s4, %s487_s29  ;;  %p491_p6 = scmp.lt.u32.totalorder %s487_s29, %s690_s4 }
 0x107   :  { %p493_p7 = pnand %p491_p6, %p488_p5 }
 0x109   :  { %496 = shalt.err (!%p493_p7)
}
 0x10a   :  { %370 = dma.vmem_to_hbm [thread:$0]  %s368_s26, 32, %s690_s4, [#allocation3]   ;;  %v343_v53 = vld [vmem:[%s689_s3] sm:$0x3] }
 0x10b   :  { %s526_s12 = smov 108   ;;  %s527_s15 = smov [#allocation4]  }
 0x10c   :  { %v474_v52 = vpop.eup %473  ;;  %s377_s16 = sshll.u32 %s527_s15, 4  ;;  %s378_s16 = int_to_ptr.vmem [resolvable:$true] %s377_s16 }
 0x10d   :  { %348 = vrot.lane.b32.xlu0 %v474_v52, %s526_s12  ;;  %s497_s4 = scalar_lea.vmem %s378_s16, 32  ;;  %p502_p9 = scmp.lt.s32.totalorder %s378_s16, %s378_s16 }
 0x10e   :  { %p498_p8 = scmp.ne.s32.totalorder %s378_s16, %s497_s4  ;;  %p503_p10 = scmp.lt.s32.totalorder %s497_s4, %s497_s4 }
 0x110   :  { %p504_p11 = por %p503_p10, %p502_p9 }
 0x111   :  { %356 = vrot.lane.b32.xlu0 %v338_v48, %s526_s12 }
 0x112   :  { %p505_p12 = pnand %p504_p11, %p498_p8 }
 0x17f   :  { %v349_v54 = vpop.permute.xlu0 %348 }
 0x180   :  { %v351_v55 = vmul.f32 %v349_v54, %v343_v53 }
 0x182   :  { %v352_v56 = vadd.f32 %v351_v55, %v338_v48 }
 0x183   :  { %v357_v57 = vpop.permute.xlu0 %356 }
 0x184   :  { %360 = vst.msk [vmem:[%s692_s6] sm:$0x3] %vm353_vm1, %v352_v56  ;;  %359 = vst.msk [vmem:[#allocation4] sm:$0x3] %vm353_vm1, %v357_v57 }
 0x185   :  { %508 = shalt.err (!%p505_p12)
}
 0x186   :  { %s509_s20 = scalar_lea.hbm %s691_s5, 32 }
 0x187   :  { %p510_p13 = scmp.ne.s32.totalorder %s691_s5, %s509_s20  ;;  %p513_p0 = scmp.lt.u32.totalorder %s509_s20, %s691_s5 }
 0x189   :  { %p515_p1 = pnand %p513_p0, %p510_p13 }
 0x18b   :  { %518 = shalt.err (!%p515_p1)
}
 0x18c   :  { %380 = dma.vmem_to_hbm [thread:$0]  %s378_s16, 32, %s691_s5, [#allocation5]  }
 0x18d   :  { %519 = dma.done.wait [#allocation3], 32  }
 0x18e   :  { %520 = vsyncadd [#allocation3], 4294967264 }
 0x18f   :  { %521 = dma.done.wait [#allocation5], 32  }
 0x190   :  { %522 = vsyncadd [#allocation5], 4294967264 }
 0x191   :  { %391 = vsyncpa [#allocation3], 1 }
 0x192   :  { %392 = vsyncpa [#allocation5], 1 }

// kernel: vae_forward.14
= control target key start
LH: loop header
LB: loop body
LE: loop exit
PB: predicated region body
PF: predicated region fallthrough
CT: control target
= control target key end

     0   :  { %v433_v3 = vmov 0   ;;  %vm135_vm0 = vcmask 1041408   ;;  %vm131_vm1 = vcmask 162816   ;;  %v31_v35 = vlaneseq  ;;  %s512_s1 = inlined_call_operand.vmem [shape: bf16[20,1024], index: 1, kind: input, shape index: {}]   ;;  %s513_s0 = inlined_call_operand.vmem [shape: f32[2,20], index: 0, kind: input, shape index: {}]   ;;  %s514_s2 = inlined_call_operand.vmem [shape: f32[1,1024], index: 2, kind: input, shape index: {}]   ;;  %s515_s3 = inlined_call_operand.vmem [shape: bf16[2,1024], index: 3, kind: output, shape index: {}]  }
   0x1   :  { %v17_v0 = vld [vmem:[%s512_s1] sm:$0xff]  ;;  %v18_v2 = vld [vmem:[%s512_s1 + $0x8] sm:$0xff]  ;;  %192 = vmatprep.mubr.bf16.mxu0 %v433_v3  ;;  %233 = vmatprep.mubr.bf16.mxu1 %v433_v3  ;;  %v19_v13 = vld [vmem:[%s512_s1 + $0x10] sm:$0xff]  ;;  %v434_v38 = vmov 1966171168  }
   0x2   :  { %v21_v1 = vld [vmem:[%s512_s1 + $0x20] sm:$0xff]  ;;  %v22_v5 = vld [vmem:[%s512_s1 + $0x28] sm:$0xff]  ;;  %v23_v14 = vld [vmem:[%s512_s1 + $0x30] sm:$0xff]  ;;  %v32_v36 = vshrl.u32 %v31_v35, 7  ;;  %v345_v39 = vunpack.c.l.s4 %v434_v38 }
   0x3   :  { %v396_v4 = vcombine.high %v17_v0, %v21_v1  ;;  %v395_v6 = vcombine.low %v17_v0, %v21_v1  ;;  %v25_v7 = vld [vmem:[%s512_s1 + $0x40] sm:$0x33]  ;;  %v26_v8 = vld [vmem:[%s512_s1 + $0x48] sm:$0x33]  ;;  %v398_v9 = vcombine.high %v18_v2, %v22_v5  ;;  %v397_v10 = vcombine.low %v18_v2, %v22_v5  ;;  %v20_v17 = vld [vmem:[%s512_s1 + $0x18] sm:$0xff] }
   0x4   :  { %v404_v11 = vcombine.high %v25_v7, %v25_v7  ;;  %v406_v12 = vcombine.high %v26_v8, %v26_v8  ;;  %v403_v15 = vcombine.low %v25_v7, %v25_v7  ;;  %v405_v16 = vcombine.low %v26_v8, %v26_v8  ;;  %v24_v18 = vld [vmem:[%s512_s1 + $0x38] sm:$0xff]  ;;  %v15_v19 = vld [vmem:[%s513_s0] sm:$0x3]  ;;  %v27_v24 = vld [vmem:[%s512_s1 + $0x50] sm:$0x33] }
   0x5   :  { %160 = vmatprep.subr.bf16.mxu0 %v396_v4  ;;  %201 = vmatprep.subr.bf16.mxu1 %v398_v9  ;;  %v400_v21 = vcombine.high %v19_v13, %v23_v14  ;;  %v402_v23 = vcombine.high %v20_v17, %v24_v18  ;;  %v16_v25 = vpack.c.bf16 %v15_v19, %v15_v19  ;;  %v28_v26 = vld [vmem:[%s512_s1 + $0x58] sm:$0x33]  ;;  %v33_v37 = vsub.s32 0, %v32_v36  ;;  %v29_v40 = vld [vmem:[%s514_s2] sm:$0xff] }
   0x6   :  { %161 = vmatpush1.bf16.msra.mxu0 %v395_v6  ;;  %202 = vmatpush1.bf16.msra.mxu1 %v397_v10  ;;  %v137_v20 = vsel %vm135_vm0, %v403_v15, 0  ;;  %v143_v22 = vsel %vm135_vm0, %v405_v16, 0  ;;  %v399_v27 = vcombine.low %v19_v13, %v23_v14  ;;  %v401_v28 = vcombine.low %v20_v17, %v24_v18 }
   0x7   :  { %411 = vmatprep.subr.msk.bf16.mxu0 %vm135_vm0, %v404_v11  ;;  %413 = vmatprep.subr.msk.bf16.mxu1 %vm135_vm0, %v406_v12  ;;  %v408_v29 = vcombine.high %v27_v24, %v27_v24  ;;  %v407_v30 = vcombine.low %v27_v24, %v27_v24  ;;  %v410_v31 = vcombine.high %v28_v26, %v28_v26  ;;  %v41_v41 = vsub.s32 2, %v32_v36 }
   0x8   :  { %v409_v32 = vcombine.low %v28_v26, %v28_v26  ;;  %v37_v42 = vsub.s32 1, %v32_v36  ;;  %v45_v43 = vsub.s32 3, %v32_v36  ;;  %v34_v44 = vrot.slane %v29_v40, %v33_v37 }
   0x9   :  { %v149_v33 = vsel %vm135_vm0, %v407_v30, 0  ;;  %v346_v45 = vunpack.c.0.s8 %v345_v39  ;;  %v42_v46 = vrot.slane %v29_v40, %v41_v41  ;;  %v49_v54 = vsub.s32 4, %v32_v36 }
   0xa   :  { %163 = vmatpush1.bf16.msra.mxu0 %v137_v20  ;;  %204 = vmatpush1.bf16.msra.mxu1 %v143_v22  ;;  %v155_v34 = vsel %vm135_vm0, %v409_v32, 0  ;;  %v38_v47 = vrot.slane %v29_v40, %v37_v42  ;;  %v46_v48 = vrot.slane %v29_v40, %v45_v43  ;;  %v57_v59 = vsub.s32 6, %v32_v36 }
   0xb   :  { %242 = vmatprep.subr.bf16.mxu0 %v400_v21  ;;  %283 = vmatprep.subr.bf16.mxu1 %v402_v23  ;;  %v349_v53 = vsub.s32 %v346_v45, %v32_v36  ;;  %v53_v60 = vsub.s32 5, %v32_v36  ;;  %v61_v0 = vsub.s32 7, %v32_v36  ;;  %v50_v4 = vrot.slane %v29_v40, %v49_v54 }
   0xc   :  { %v58_v6 = vrot.slane %v29_v40, %v57_v59 }
   0xd   :  { %412 = vmatmul.mubr.msk.bf16.vlgmr.msra.gmra.mrb[0].mxu0 %vm131_vm1, %v16_v25  ;;  %414 = vmatmul.mubr.msk.bf16.vlgmr.msra.gmra.mrb[0].mxu1 %vm131_vm1, %v16_v25  ;;  %v54_v7 = vrot.slane %v29_v40, %v53_v60  ;;  %v62_v9 = vrot.slane %v29_v40, %v61_v0 }
   0xe   :  { %243 = vmatpush1.bf16.msra.mxu0 %v399_v27  ;;  %284 = vmatpush1.bf16.msra.mxu1 %v401_v28 }
   0xf   :  { %415 = vmatprep.subr.msk.bf16.mxu0 %vm135_vm0, %v408_v29  ;;  %417 = vmatprep.subr.msk.bf16.mxu1 %vm135_vm0, %v410_v31 }
  0x10   :  { %274 = vmatprep.mubr.bf16.mxu0 %v433_v3  ;;  %315 = vmatprep.mubr.bf16.mxu1 %v433_v3 }
  0x12   :  { %245 = vmatpush1.bf16.msra.mxu0 %v149_v33  ;;  %286 = vmatpush1.bf16.msra.mxu1 %v155_v34 }
  0x15   :  { %416 = vmatmul.mubr.msk.bf16.vlgmr.msra.gmra.mrb[4].mxu0 %vm131_vm1, %v16_v25  ;;  %418 = vmatmul.mubr.msk.bf16.vlgmr.msra.gmra.mrb[4].mxu1 %vm131_vm1, %v16_v25 }
  0xe0   :  { %v194_v49 = vpop.f32.mrb[0].mxu0  ;;  %v235_v51 = vpop.f32.mrb[0].mxu1 }
  0xe1   :  { %v195_v50 = vadd.f32 %v194_v49, %v34_v44  ;;  %v196_v52 = vpop.f32.mrb[1].mxu0  ;;  %v236_v55 = vadd.f32 %v235_v51, %v42_v46  ;;  %v237_v57 = vpop.f32.mrb[1].mxu1 }
  0xe2   :  { %v197_v56 = vadd.f32 %v196_v52, %v38_v47  ;;  %v198_v58 = vpop.f32.mrb[2].mxu0  ;;  %v238_v61 = vadd.f32 %v237_v57, %v46_v48  ;;  %v239_v62 = vpop.f32.mrb[2].mxu1 }
  0xe3   :  { %v199_v63 = vpop.f32.mrb[3].mxu0  ;;  %v240_v2 = vpop.f32.mrb[3].mxu1 }
  0xe4   :  { %v419_v1 = vpack.c.bf16 %v197_v56, %v195_v50  ;;  %v420_v3 = vpack.c.bf16 %v238_v61, %v236_v55 }
  0xe6   :  { %v350_v5 = vrot.slane %v419_v1, %v349_v53  ;;  %v357_v8 = vrot.slane %v420_v3, %v349_v53 }
  0xe8   :  { %v276_v10 = vpop.f32.mrb[4].mxu0  ;;  %v372_v11 = vcombine.low %v350_v5, %v357_v8  ;;  %v317_v13 = vpop.f32.mrb[4].mxu1 }
  0xe9   :  { %v277_v12 = vadd.f32 %v276_v10, %v50_v4  ;;  %v278_v14 = vpop.f32.mrb[5].mxu0  ;;  %v318_v15 = vadd.f32 %v317_v13, %v58_v6  ;;  %v319_v17 = vpop.f32.mrb[5].mxu1 }
  0xea   :  { %v279_v16 = vadd.f32 %v278_v14, %v54_v7  ;;  %v280_v18 = vpop.f32.mrb[6].mxu0  ;;  %v320_v19 = vadd.f32 %v319_v17, %v62_v9  ;;  %v321_v20 = vpop.f32.mrb[6].mxu1  ;;  %v380_v28 = vrot.slane %v372_v11, %v349_v53 }
  0xeb   :  { %v281_v21 = vpop.f32.mrb[7].mxu0  ;;  %v322_v23 = vpop.f32.mrb[7].mxu1 }
  0xec   :  { %v421_v22 = vpack.c.bf16 %v279_v16, %v277_v12  ;;  %v422_v24 = vpack.c.bf16 %v320_v19, %v318_v15 }
  0xee   :  { %v364_v25 = vrot.slane %v421_v22, %v349_v53  ;;  %v371_v26 = vrot.slane %v422_v24, %v349_v53 }
  0xf0   :  { %v373_v27 = vcombine.low %v364_v25, %v371_v26 }
  0xf2   :  { %v387_v29 = vrot.slane %v373_v27, %v349_v53 }
  0xf4   :  { %v388_v30 = vcombine.low %v380_v28, %v387_v29 }
  0xf6   :  { %390 = vst [vmem:[%s515_s3] sm:$0xff] %v388_v30 }

// kernel: vae_forward.12
= control target key start
LH: loop header
LB: loop body
LE: loop exit
PB: predicated region body
PF: predicated region fallthrough
CT: control target
= control target key end

     0   :  { %v273_v36 = vlaneseq  ;;  %v2676_v37 = vmov 1966171168   ;;  %vm1992_vm0 = vcmask 1040384   ;;  %vm1993_vm1 = vcmask 1041409   ;;  %s3520_s1 = inlined_call_operand.vmem [shape: bf16[1024,400], index: 1, kind: input, shape index: {}]   ;;  %s3521_s0 = inlined_call_operand.vmem [shape: bf16[2,1024], index: 0, kind: input, shape index: {}]   ;;  %s3522_s2 = inlined_call_operand.vmem [shape: f32[1,400], index: 2, kind: input, shape index: {}]   ;;  %s3523_s3 = inlined_call_operand.vmem [shape: bf16[2,400], index: 3, kind: output, shape index: {}]  }
   0x1   :  { %v2291_v0 = vld [vmem:[%s3520_s1 + $0x4] ss:$16 sps:$4 sm:$0xff]   ;;  %v2293_v1 = vld [vmem:[%s3520_s1 + $0xc] ss:$16 sps:$4 sm:$0xff]   ;;  %v2295_v2 = vld [vmem:[%s3520_s1] ss:$16 sps:$4 sm:$0xff]   ;;  %v296_v38 = vunpack.c.l.s4 %v2676_v37 }
   0x2   :  { %1631 = vmatprep.subr.bf16.mxu0 %v2291_v0  ;;  %v2296_v3 = vld [vmem:[%s3520_s1 + $0x8] ss:$16 sps:$4 sm:$0xff]   ;;  %1795 = vmatprep.subr.bf16.mxu1 %v2293_v1  ;;  %v2297_v4 = vld [vmem:[%s3520_s1 + $0x24] ss:$16 sps:$4 sm:$0xff]   ;;  %v2299_v5 = vld [vmem:[%s3520_s1 + $0x2c] ss:$16 sps:$4 sm:$0xff]  }
   0x3   :  { %1632 = vmatpush1.bf16.msra.mxu0 %v2295_v2  ;;  %1796 = vmatpush1.bf16.msra.mxu1 %v2296_v3  ;;  %v2301_v6 = vld [vmem:[%s3520_s1 + $0x20] ss:$16 sps:$4 sm:$0xff]   ;;  %v2302_v7 = vld [vmem:[%s3520_s1 + $0x28] ss:$16 sps:$4 sm:$0xff]   ;;  %v2303_v8 = vld [vmem:[%s3520_s1 + $0x44] ss:$16 sps:$4 sm:$0xff]   ;;  %v297_v43 = vunpack.c.0.s8 %v296_v38 }
   0x4   :  { %1633 = vmatprep.subr.bf16.mxu0 %v2297_v4  ;;  %1797 = vmatprep.subr.bf16.mxu1 %v2299_v5  ;;  %v2305_v9 = vld [vmem:[%s3520_s1 + $0x4c] ss:$16 sps:$4 sm:$0xff]   ;;  %v2307_v10 = vld [vmem:[%s3520_s1 + $0x40] ss:$16 sps:$4 sm:$0xff]   ;;  %v2308_v11 = vld [vmem:[%s3520_s1 + $0x48] ss:$16 sps:$4 sm:$0xff]  }
   0x5   :  { %v2309_v12 = vld [vmem:[%s3520_s1 + $0x64] ss:$16 sps:$4 sm:$0xff]   ;;  %v2311_v13 = vld [vmem:[%s3520_s1 + $0x6c] ss:$16 sps:$4 sm:$0xff]   ;;  %v2313_v14 = vld [vmem:[%s3520_s1 + $0x60] ss:$16 sps:$4 sm:$0xff]  }
   0x6   :  { %v2314_v15 = vld [vmem:[%s3520_s1 + $0x68] ss:$16 sps:$4 sm:$0xff]   ;;  %v2315_v16 = vld [vmem:[%s3520_s1 + $0x84] ss:$16 sps:$4 sm:$0xff]   ;;  %v2317_v17 = vld [vmem:[%s3520_s1 + $0x8c] ss:$16 sps:$4 sm:$0xff]  }
   0x7   :  { %1634 = vmatpush1.bf16.msra.mxu0 %v2301_v6  ;;  %1798 = vmatpush1.bf16.msra.mxu1 %v2302_v7  ;;  %v2319_v18 = vld [vmem:[%s3520_s1 + $0x80] ss:$16 sps:$4 sm:$0xff]   ;;  %v2320_v19 = vld [vmem:[%s3520_s1 + $0x88] ss:$16 sps:$4 sm:$0xff]   ;;  %v2321_v20 = vld [vmem:[%s3520_s1 + $0xa4] ss:$16 sps:$4 sm:$0xff]  }
   0x8   :  { %1635 = vmatprep.subr.bf16.mxu0 %v2303_v8  ;;  %1799 = vmatprep.subr.bf16.mxu1 %v2305_v9  ;;  %v2323_v21 = vld [vmem:[%s3520_s1 + $0xac] ss:$16 sps:$4 sm:$0xff]   ;;  %v2325_v22 = vld [vmem:[%s3520_s1 + $0xa0] ss:$16 sps:$4 sm:$0xff]   ;;  %v2326_v23 = vld [vmem:[%s3520_s1 + $0xa8] ss:$16 sps:$4 sm:$0xff]  }
   0x9   :  { %v2327_v24 = vld [vmem:[%s3520_s1 + $0xc4] ss:$16 sps:$4 sm:$0xff]   ;;  %v2329_v25 = vld [vmem:[%s3520_s1 + $0xcc] ss:$16 sps:$4 sm:$0xff]   ;;  %v2331_v26 = vld [vmem:[%s3520_s1 + $0xc0] ss:$16 sps:$4 sm:$0xff]  }
   0xa   :  { %v2332_v27 = vld [vmem:[%s3520_s1 + $0xc8] ss:$16 sps:$4 sm:$0xff]   ;;  %v2333_v28 = vld [vmem:[%s3520_s1 + $0xe4] ss:$16 sps:$4 sm:$0xff]   ;;  %v2335_v29 = vld [vmem:[%s3520_s1 + $0xec] ss:$16 sps:$4 sm:$0xff]  }
   0xb   :  { %1636 = vmatpush1.bf16.msra.mxu0 %v2307_v10  ;;  %1800 = vmatpush1.bf16.msra.mxu1 %v2308_v11  ;;  %v2337_v30 = vld [vmem:[%s3520_s1 + $0xe0] ss:$16 sps:$4 sm:$0xff]   ;;  %v2338_v31 = vld [vmem:[%s3520_s1 + $0xe8] ss:$16 sps:$4 sm:$0xff]   ;;  %v2339_v32 = vld [vmem:[%s3520_s1 + $0x104] ss:$16 sps:$4 sm:$0xff]  }
   0xc   :  { %1637 = vmatprep.subr.bf16.mxu0 %v2309_v12  ;;  %1801 = vmatprep.subr.bf16.mxu1 %v2311_v13  ;;  %v2341_v33 = vld [vmem:[%s3520_s1 + $0x10c] ss:$16 sps:$4 sm:$0xff]   ;;  %v2343_v34 = vld [vmem:[%s3520_s1 + $0x100] ss:$16 sps:$4 sm:$0xff]   ;;  %v2344_v35 = vld [vmem:[%s3520_s1 + $0x108] ss:$16 sps:$4 sm:$0xff]  }
   0xd   :  { %v2345_v39 = vld [vmem:[%s3520_s1 + $0x124] ss:$16 sps:$4 sm:$0xff]   ;;  %v2347_v40 = vld [vmem:[%s3520_s1 + $0x12c] ss:$16 sps:$4 sm:$0xff]   ;;  %v2349_v41 = vld [vmem:[%s3520_s1 + $0x120] ss:$16 sps:$4 sm:$0xff]  }
   0xe   :  { %v2814_v42 = vshrl.u32 %v273_v36, 7  ;;  %v2350_v44 = vld [vmem:[%s3520_s1 + $0x128] ss:$16 sps:$4 sm:$0xff]   ;;  %v2351_v45 = vld [vmem:[%s3520_s1 + $0x144] ss:$16 sps:$4 sm:$0xff]   ;;  %vm1994_vm2 = vmor %vm1993_vm1, %vm1992_vm0  ;;  %vm1995_vm3 = vcmask 1042434  }
   0xf   :  { %1638 = vmatpush1.bf16.msra.mxu0 %v2313_v14  ;;  %1802 = vmatpush1.bf16.msra.mxu1 %v2314_v15  ;;  %v2353_v46 = vld [vmem:[%s3520_s1 + $0x14c] ss:$16 sps:$4 sm:$0xff]   ;;  %v2355_v47 = vld [vmem:[%s3520_s1 + $0x140] ss:$16 sps:$4 sm:$0xff]   ;;  %v2356_v48 = vld [vmem:[%s3520_s1 + $0x148] ss:$16 sps:$4 sm:$0xff]  }
  0x10   :  { %1639 = vmatprep.subr.bf16.mxu0 %v2315_v16  ;;  %1803 = vmatprep.subr.bf16.mxu1 %v2317_v17  ;;  %v2832_v49 = vsub.s32 %v297_v43, %v2814_v42  ;;  %v2357_v50 = vld [vmem:[%s3520_s1 + $0x164] ss:$16 sps:$4 sm:$0xff]   ;;  %v2359_v51 = vld [vmem:[%s3520_s1 + $0x16c] ss:$16 sps:$4 sm:$0xff]   ;;  %v2361_v53 = vld [vmem:[%s3520_s1 + $0x160] ss:$16 sps:$4 sm:$0xff]  }
  0x11   :  { %v2843_v52 = vld [vmem:[%s3521_s0] sm:$0xff]  ;;  %v2362_v55 = vld [vmem:[%s3520_s1 + $0x168] ss:$16 sps:$4 sm:$0xff]   ;;  %v2365_v57 = vld [vmem:[%s3520_s1 + $0x18c] ss:$16 sps:$4 sm:$0xff]   ;;  %vm1997_vm5 = vcmask 125955  }
  0x12   :  { %v301_v54 = vrot.slane %v2843_v52, %v2832_v49  ;;  %v2363_v56 = vld [vmem:[%s3520_s1 + $0x184] ss:$16 sps:$4 sm:$0xff]   ;;  %v2367_v59 = vld [vmem:[%s3520_s1 + $0x180] ss:$16 sps:$4 sm:$0xff]   ;;  %v2368_v61 = vld [vmem:[%s3520_s1 + $0x188] ss:$16 sps:$4 sm:$0xff]  }
  0x13   :  { %1640 = vmatpush1.bf16.msra.mxu0 %v2319_v18  ;;  %1804 = vmatpush1.bf16.msra.mxu1 %v2320_v19  ;;  %v2369_v62 = vld [vmem:[%s3520_s1 + $0x1a4] ss:$16 sps:$4 sm:$0xff]   ;;  %v2371_v63 = vld [vmem:[%s3520_s1 + $0x1ac] ss:$16 sps:$4 sm:$0xff]   ;;  %v2373_v0 = vld [vmem:[%s3520_s1 + $0x1a0] ss:$16 sps:$4 sm:$0xff]  }
  0x14   :  { %1641 = vmatprep.subr.bf16.mxu0 %v2321_v20  ;;  %1805 = vmatprep.subr.bf16.mxu1 %v2323_v21  ;;  %v309_v58 = vcombine.high %v301_v54, %v301_v54  ;;  %v2374_v1 = vld [vmem:[%s3520_s1 + $0x1a8] ss:$16 sps:$4 sm:$0xff]   ;;  %v2375_v2 = vld [vmem:[%s3520_s1 + $0x1c4] ss:$16 sps:$4 sm:$0xff]   ;;  %v2377_v3 = vld [vmem:[%s3520_s1 + $0x1cc] ss:$16 sps:$4 sm:$0xff]   ;;  %v2912_v13 = vrot.slane %v301_v54, %v2832_v49 }
  0x15   :  { %v2379_v4 = vld [vmem:[%s3520_s1 + $0x1c0] ss:$16 sps:$4 sm:$0xff]   ;;  %v2380_v5 = vld [vmem:[%s3520_s1 + $0x1c8] ss:$16 sps:$4 sm:$0xff]   ;;  %v2381_v6 = vld [vmem:[%s3520_s1 + $0x1e4] ss:$16 sps:$4 sm:$0xff]  }
  0x16   :  { %v331_v60 = vrot.slane %v309_v58, %v2832_v49  ;;  %v2383_v7 = vld [vmem:[%s3520_s1 + $0x1ec] ss:$16 sps:$4 sm:$0xff]   ;;  %v2385_v8 = vld [vmem:[%s3520_s1 + $0x1e0] ss:$16 sps:$4 sm:$0xff]   ;;  %v2386_v9 = vld [vmem:[%s3520_s1 + $0x1e8] ss:$16 sps:$4 sm:$0xff]  }
  0x17   :  { %1642 = vmatpush1.bf16.msra.mxu0 %v2325_v22  ;;  %1806 = vmatpush1.bf16.msra.mxu1 %v2326_v23  ;;  %v2389_v10 = vld [vmem:[%s3520_s1 + $0x204] ss:$16 sps:$4 sm:$0xff]   ;;  %v2392_v11 = vld [vmem:[%s3520_s1 + $0x20c] ss:$16 sps:$4 sm:$0xff]   ;;  %v2387_v12 = vld [vmem:[%s3520_s1 + $0x200] ss:$16 sps:$4 sm:$0xff]  }
  0x18   :  { %1643 = vmatprep.subr.bf16.mxu0 %v2327_v24  ;;  %1807 = vmatprep.subr.bf16.mxu1 %v2329_v25  ;;  %v2390_v14 = vld [vmem:[%s3520_s1 + $0x208] ss:$16 sps:$4 sm:$0xff]   ;;  %v2395_v15 = vld [vmem:[%s3520_s1 + $0x224] ss:$16 sps:$4 sm:$0xff]   ;;  %v2398_v16 = vld [vmem:[%s3520_s1 + $0x22c] ss:$16 sps:$4 sm:$0xff]   ;;  %v341_v17 = vcombine.high %v331_v60, %v331_v60 }
  0x19   :  { %1663 = vmatprep.mubr.bf16.mxu0 %v331_v60  ;;  %1827 = vmatprep.mubr.bf16.mxu1 %v331_v60  ;;  %v2393_v18 = vld [vmem:[%s3520_s1 + $0x220] ss:$16 sps:$4 sm:$0xff]   ;;  %v2396_v19 = vld [vmem:[%s3520_s1 + $0x228] ss:$16 sps:$4 sm:$0xff]   ;;  %v2401_v20 = vld [vmem:[%s3520_s1 + $0x244] ss:$16 sps:$4 sm:$0xff]  }
  0x1a   :  { %v2404_v21 = vld [vmem:[%s3520_s1 + $0x24c] ss:$16 sps:$4 sm:$0xff]   ;;  %v2399_v22 = vld [vmem:[%s3520_s1 + $0x240] ss:$16 sps:$4 sm:$0xff]   ;;  %v2402_v23 = vld [vmem:[%s3520_s1 + $0x248] ss:$16 sps:$4 sm:$0xff]  }
  0x1b   :  { %1644 = vmatpush1.bf16.msra.mxu0 %v2331_v26  ;;  %1808 = vmatpush1.bf16.msra.mxu1 %v2332_v27  ;;  %v2407_v24 = vld [vmem:[%s3520_s1 + $0x264] ss:$16 sps:$4 sm:$0xff]   ;;  %v2410_v25 = vld [vmem:[%s3520_s1 + $0x26c] ss:$16 sps:$4 sm:$0xff]   ;;  %v2405_v26 = vld [vmem:[%s3520_s1 + $0x260] ss:$16 sps:$4 sm:$0xff]  }
  0x1c   :  { %1645 = vmatprep.subr.bf16.mxu0 %v2333_v28  ;;  %1809 = vmatprep.subr.bf16.mxu1 %v2335_v29  ;;  %v2408_v27 = vld [vmem:[%s3520_s1 + $0x268] ss:$16 sps:$4 sm:$0xff]   ;;  %v2413_v28 = vld [vmem:[%s3520_s1 + $0x284] ss:$16 sps:$4 sm:$0xff]   ;;  %v2416_v29 = vld [vmem:[%s3520_s1 + $0x28c] ss:$16 sps:$4 sm:$0xff]  }
  0x1d   :  { %v2425_v36 = vld [vmem:[%s3520_s1 + $0x2c4] ss:$16 sps:$4 sm:$0xff]   ;;  %v2428_v37 = vld [vmem:[%s3520_s1 + $0x2cc] ss:$16 sps:$4 sm:$0xff]   ;;  %v2423_v38 = vld [vmem:[%s3520_s1 + $0x2c0] ss:$16 sps:$4 sm:$0xff]  }
  0x1e   :  { %v2429_v43 = vld [vmem:[%s3520_s1 + $0x2e0] ss:$16 sps:$4 sm:$0xff]   ;;  %v2444_v54 = vld [vmem:[%s3520_s1 + $0x328] ss:$16 sps:$4 sm:$0xff]   ;;  %v2458_v60 = vld [vmem:[%s3520_s1 + $0x36c] ss:$16 sps:$4 sm:$0xff]  }
  0x1f   :  { %1646 = vmatpush1.bf16.msra.mxu0 %v2337_v30  ;;  %1810 = vmatpush1.bf16.msra.mxu1 %v2338_v31  ;;  %v2411_v30 = vld [vmem:[%s3520_s1 + $0x280] ss:$16 sps:$4 sm:$0xff]   ;;  %v2414_v31 = vld [vmem:[%s3520_s1 + $0x288] ss:$16 sps:$4 sm:$0xff]   ;;  %vm1996_vm4 = vmor %vm1995_vm3, %vm1994_vm2 }
  0x20   :  { %1647 = vmatprep.subr.bf16.mxu0 %v2339_v32  ;;  %1811 = vmatprep.subr.bf16.mxu1 %v2341_v33  ;;  %v2419_v32 = vld [vmem:[%s3520_s1 + $0x2a4] ss:$16 sps:$4 sm:$0xff]   ;;  %v2422_v33 = vld [vmem:[%s3520_s1 + $0x2ac] ss:$16 sps:$4 sm:$0xff]   ;;  %v2450_v58 = vld [vmem:[%s3520_s1 + $0x348] ss:$16 sps:$4 sm:$0xff]  }
  0x21   :  { %vm1998_vm6 = vmor %vm1997_vm5, %vm1996_vm4 }
  0x23   :  { %1648 = vmatpush1.bf16.msra.mxu0 %v2343_v34  ;;  %1812 = vmatpush1.bf16.msra.mxu1 %v2344_v35  ;;  %v2417_v34 = vld [vmem:[%s3520_s1 + $0x2a0] ss:$16 sps:$4 sm:$0xff]   ;;  %v2420_v35 = vld [vmem:[%s3520_s1 + $0x2a8] ss:$16 sps:$4 sm:$0xff]  }
  0x24   :  { %1649 = vmatprep.subr.bf16.mxu0 %v2345_v39  ;;  %1813 = vmatprep.subr.bf16.mxu1 %v2347_v40  ;;  %v2426_v39 = vld [vmem:[%s3520_s1 + $0x2c8] ss:$16 sps:$4 sm:$0xff]   ;;  %v2431_v40 = vld [vmem:[%s3520_s1 + $0x2e4] ss:$16 sps:$4 sm:$0xff]  }
  0x27   :  { %1650 = vmatpush1.bf16.msra.mxu0 %v2349_v41  ;;  %1814 = vmatpush1.bf16.msra.mxu1 %v2350_v44  ;;  %v2434_v41 = vld [vmem:[%s3520_s1 + $0x2ec] ss:$16 sps:$4 sm:$0xff]   ;;  %v2432_v44 = vld [vmem:[%s3520_s1 + $0x2e8] ss:$16 sps:$4 sm:$0xff]  }
  0x28   :  { %1651 = vmatprep.subr.bf16.mxu0 %v2351_v45  ;;  %1815 = vmatprep.subr.bf16.mxu1 %v2353_v46  ;;  %v2437_v45 = vld [vmem:[%s3520_s1 + $0x304] ss:$16 sps:$4 sm:$0xff]   ;;  %v2440_v46 = vld [vmem:[%s3520_s1 + $0x30c] ss:$16 sps:$4 sm:$0xff]  }
  0x2b   :  { %1652 = vmatpush1.bf16.msra.mxu0 %v2355_v47  ;;  %1816 = vmatpush1.bf16.msra.mxu1 %v2356_v48  ;;  %v2435_v47 = vld [vmem:[%s3520_s1 + $0x300] ss:$16 sps:$4 sm:$0xff]   ;;  %v2438_v48 = vld [vmem:[%s3520_s1 + $0x308] ss:$16 sps:$4 sm:$0xff]  }
  0x2c   :  { %1653 = vmatprep.subr.bf16.mxu0 %v2357_v50  ;;  %1817 = vmatprep.subr.bf16.mxu1 %v2359_v51  ;;  %v2443_v50 = vld [vmem:[%s3520_s1 + $0x324] ss:$16 sps:$4 sm:$0xff]   ;;  %v2446_v51 = vld [vmem:[%s3520_s1 + $0x32c] ss:$16 sps:$4 sm:$0xff]  }
  0x2f   :  { %1654 = vmatpush1.bf16.msra.mxu0 %v2361_v53  ;;  %1818 = vmatpush1.bf16.msra.mxu1 %v2362_v55  ;;  %v2441_v53 = vld [vmem:[%s3520_s1 + $0x320] ss:$16 sps:$4 sm:$0xff]   ;;  %v2449_v55 = vld [vmem:[%s3520_s1 + $0x344] ss:$16 sps:$4 sm:$0xff]  }
  0x30   :  { %1655 = vmatprep.subr.bf16.mxu0 %v2363_v56  ;;  %1819 = vmatprep.subr.bf16.mxu1 %v2365_v57  ;;  %v2452_v56 = vld [vmem:[%s3520_s1 + $0x34c] ss:$16 sps:$4 sm:$0xff]   ;;  %v2447_v57 = vld [vmem:[%s3520_s1 + $0x340] ss:$16 sps:$4 sm:$0xff]  }
  0x33   :  { %1656 = vmatpush1.bf16.msra.mxu0 %v2367_v59  ;;  %1820 = vmatpush1.bf16.msra.mxu1 %v2368_v61  ;;  %v2455_v59 = vld [vmem:[%s3520_s1 + $0x364] ss:$16 sps:$4 sm:$0xff]   ;;  %v2453_v61 = vld [vmem:[%s3520_s1 + $0x360] ss:$16 sps:$4 sm:$0xff]  }
  0x34   :  { %1657 = vmatprep.subr.bf16.mxu0 %v2369_v62  ;;  %1821 = vmatprep.subr.bf16.mxu1 %v2371_v63  ;;  %v2456_v62 = vld [vmem:[%s3520_s1 + $0x368] ss:$16 sps:$4 sm:$0xff]   ;;  %v2461_v63 = vld [vmem:[%s3520_s1 + $0x384] ss:$16 sps:$4 sm:$0xff]  }
  0x37   :  { %1658 = vmatpush1.bf16.msra.mxu0 %v2373_v0  ;;  %1822 = vmatpush1.bf16.msra.mxu1 %v2374_v1  ;;  %v2464_v0 = vld [vmem:[%s3520_s1 + $0x38c] ss:$16 sps:$4 sm:$0xff]   ;;  %v2459_v1 = vld [vmem:[%s3520_s1 + $0x380] ss:$16 sps:$4 sm:$0xff]  }
  0x38   :  { %1659 = vmatprep.subr.bf16.mxu0 %v2375_v2  ;;  %1823 = vmatprep.subr.bf16.mxu1 %v2377_v3  ;;  %v2462_v2 = vld [vmem:[%s3520_s1 + $0x388] ss:$16 sps:$4 sm:$0xff]   ;;  %v2467_v3 = vld [vmem:[%s3520_s1 + $0x3a4] ss:$16 sps:$4 sm:$0xff]  }
  0x3b   :  { %1660 = vmatpush1.bf16.msra.mxu0 %v2379_v4  ;;  %1824 = vmatpush1.bf16.msra.mxu1 %v2380_v5  ;;  %v2470_v4 = vld [vmem:[%s3520_s1 + $0x3ac] ss:$16 sps:$4 sm:$0xff]   ;;  %v2465_v5 = vld [vmem:[%s3520_s1 + $0x3a0] ss:$16 sps:$4 sm:$0xff]  }
  0x3c   :  { %1661 = vmatprep.subr.bf16.mxu0 %v2381_v6  ;;  %1825 = vmatprep.subr.bf16.mxu1 %v2383_v7  ;;  %v2468_v6 = vld [vmem:[%s3520_s1 + $0x3a8] ss:$16 sps:$4 sm:$0xff]   ;;  %v2473_v7 = vld [vmem:[%s3520_s1 + $0x3c4] ss:$16 sps:$4 sm:$0xff]  }
  0x3f   :  { %1662 = vmatpush1.bf16.msra.mxu0 %v2385_v8  ;;  %1826 = vmatpush1.bf16.msra.mxu1 %v2386_v9  ;;  %v2476_v8 = vld [vmem:[%s3520_s1 + $0x3cc] ss:$16 sps:$4 sm:$0xff]   ;;  %v294_v9 = vcombine.high %v2843_v52, %v2843_v52 }
  0x40   :  { %1672 = vmatprep.subr.bf16.mxu0 %v2389_v10  ;;  %1836 = vmatprep.subr.bf16.mxu1 %v2392_v11  ;;  %v2471_v10 = vld [vmem:[%s3520_s1 + $0x3c0] ss:$16 sps:$4 sm:$0xff]   ;;  %v2474_v11 = vld [vmem:[%s3520_s1 + $0x3c8] ss:$16 sps:$4 sm:$0xff]   ;;  %v2482_v52 = vld [vmem:[%s3520_s1 + $0x3ec] ss:$16 sps:$4 sm:$0xff]  }
  0x42   :  { %1664 = vmatmul.mubr.bf16.vlgmr.msra.gmra.mrb[0].mxu0 %v2912_v13  ;;  %1828 = vmatmul.mubr.bf16.vlgmr.msra.gmra.mrb[0].mxu1 %v2912_v13 }
  0x43   :  { %1673 = vmatpush1.bf16.msra.mxu0 %v2387_v12  ;;  %1837 = vmatpush1.bf16.msra.mxu1 %v2390_v14  ;;  %v2479_v12 = vld [vmem:[%s3520_s1 + $0x3e4] ss:$16 sps:$4 sm:$0xff]   ;;  %v3096_v14 = vrot.slane %v294_v9, %v2832_v49  ;;  %v2558_v9 = vld [vmem:[%s3520_s1 + $0x588] ss:$16 sps:$4 sm:$0xff]  }
  0x44   :  { %1674 = vmatprep.subr.bf16.mxu0 %v2395_v15  ;;  %1838 = vmatprep.subr.bf16.mxu1 %v2398_v16  ;;  %v2477_v15 = vld [vmem:[%s3520_s1 + $0x3e0] ss:$16 sps:$4 sm:$0xff]   ;;  %v2480_v16 = vld [vmem:[%s3520_s1 + $0x3e8] ss:$16 sps:$4 sm:$0xff]  }
  0x45   :  { %1704 = vmatprep.mubr.bf16.mxu0 %v341_v17  ;;  %1868 = vmatprep.mubr.bf16.mxu1 %v341_v17  ;;  %v2485_v17 = vld [vmem:[%s3520_s1 + $0x404] ss:$16 sps:$4 sm:$0xff]  }
  0x47   :  { %1675 = vmatpush1.bf16.msra.mxu0 %v2393_v18  ;;  %1839 = vmatpush1.bf16.msra.mxu1 %v2396_v19  ;;  %v2488_v18 = vld [vmem:[%s3520_s1 + $0x40c] ss:$16 sps:$4 sm:$0xff]   ;;  %v310_v19 = vcombine.high %v3096_v14, %v3096_v14 }
  0x48   :  { %1676 = vmatprep.subr.bf16.mxu0 %v2401_v20  ;;  %1840 = vmatprep.subr.bf16.mxu1 %v2404_v21  ;;  %v2483_v20 = vld [vmem:[%s3520_s1 + $0x400] ss:$16 sps:$4 sm:$0xff]   ;;  %v339_v21 = vcombine.high %v2912_v13, %v2912_v13 }
  0x49   :  { %v2489_v13 = vld [vmem:[%s3520_s1 + $0x420] ss:$16 sps:$4 sm:$0xff]  }
  0x4b   :  { %1677 = vmatpush1.bf16.msra.mxu0 %v2399_v22  ;;  %1841 = vmatpush1.bf16.msra.mxu1 %v2402_v23  ;;  %v2486_v22 = vld [vmem:[%s3520_s1 + $0x408] ss:$16 sps:$4 sm:$0xff]   ;;  %v2491_v23 = vld [vmem:[%s3520_s1 + $0x424] ss:$16 sps:$4 sm:$0xff]  }
  0x4c   :  { %1678 = vmatprep.subr.bf16.mxu0 %v2407_v24  ;;  %1842 = vmatprep.subr.bf16.mxu1 %v2410_v25  ;;  %v2494_v24 = vld [vmem:[%s3520_s1 + $0x42c] ss:$16 sps:$4 sm:$0xff]   ;;  %v3127_v25 = vrot.slane %v310_v19, %v2832_v49  ;;  %v2575_v19 = vld [vmem:[%s3520_s1 + $0x5e4] ss:$16 sps:$4 sm:$0xff]  }
  0x4f   :  { %1679 = vmatpush1.bf16.msra.mxu0 %v2405_v26  ;;  %1843 = vmatpush1.bf16.msra.mxu1 %v2408_v27  ;;  %v2492_v26 = vld [vmem:[%s3520_s1 + $0x428] ss:$16 sps:$4 sm:$0xff]   ;;  %v2497_v27 = vld [vmem:[%s3520_s1 + $0x444] ss:$16 sps:$4 sm:$0xff]  }
  0x50   :  { %1680 = vmatprep.subr.bf16.mxu0 %v2413_v28  ;;  %1844 = vmatprep.subr.bf16.mxu1 %v2416_v29  ;;  %v2500_v28 = vld [vmem:[%s3520_s1 + $0x44c] ss:$16 sps:$4 sm:$0xff]   ;;  %v2495_v29 = vld [vmem:[%s3520_s1 + $0x440] ss:$16 sps:$4 sm:$0xff]  }
  0x53   :  { %1681 = vmatpush1.bf16.msra.mxu0 %v2411_v30  ;;  %1845 = vmatpush1.bf16.msra.mxu1 %v2414_v31  ;;  %v2498_v30 = vld [vmem:[%s3520_s1 + $0x448] ss:$16 sps:$4 sm:$0xff]   ;;  %v2503_v31 = vld [vmem:[%s3520_s1 + $0x464] ss:$16 sps:$4 sm:$0xff]  }
  0x54   :  { %1682 = vmatprep.subr.bf16.mxu0 %v2419_v32  ;;  %1846 = vmatprep.subr.bf16.mxu1 %v2422_v33  ;;  %v2506_v32 = vld [vmem:[%s3520_s1 + $0x46c] ss:$16 sps:$4 sm:$0xff]   ;;  %v2501_v33 = vld [vmem:[%s3520_s1 + $0x460] ss:$16 sps:$4 sm:$0xff]  }
  0x57   :  { %1683 = vmatpush1.bf16.msra.mxu0 %v2417_v34  ;;  %1847 = vmatpush1.bf16.msra.mxu1 %v2420_v35  ;;  %v2504_v34 = vld [vmem:[%s3520_s1 + $0x468] ss:$16 sps:$4 sm:$0xff]   ;;  %v2509_v35 = vld [vmem:[%s3520_s1 + $0x484] ss:$16 sps:$4 sm:$0xff]  }
  0x58   :  { %1684 = vmatprep.subr.bf16.mxu0 %v2425_v36  ;;  %1848 = vmatprep.subr.bf16.mxu1 %v2428_v37  ;;  %v2512_v36 = vld [vmem:[%s3520_s1 + $0x48c] ss:$16 sps:$4 sm:$0xff]   ;;  %v2507_v37 = vld [vmem:[%s3520_s1 + $0x480] ss:$16 sps:$4 sm:$0xff]  }
  0x5b   :  { %1685 = vmatpush1.bf16.msra.mxu0 %v2423_v38  ;;  %1849 = vmatpush1.bf16.msra.mxu1 %v2426_v39  ;;  %v2510_v38 = vld [vmem:[%s3520_s1 + $0x488] ss:$16 sps:$4 sm:$0xff]   ;;  %v2515_v39 = vld [vmem:[%s3520_s1 + $0x4a4] ss:$16 sps:$4 sm:$0xff]  }
  0x5c   :  { %1686 = vmatprep.subr.bf16.mxu0 %v2431_v40  ;;  %1850 = vmatprep.subr.bf16.mxu1 %v2434_v41  ;;  %v2518_v40 = vld [vmem:[%s3520_s1 + $0x4ac] ss:$16 sps:$4 sm:$0xff]   ;;  %v2513_v41 = vld [vmem:[%s3520_s1 + $0x4a0] ss:$16 sps:$4 sm:$0xff]  }
  0x5f   :  { %1687 = vmatpush1.bf16.msra.mxu0 %v2429_v43  ;;  %1851 = vmatpush1.bf16.msra.mxu1 %v2432_v44  ;;  %v2516_v43 = vld [vmem:[%s3520_s1 + $0x4a8] ss:$16 sps:$4 sm:$0xff]   ;;  %v2521_v44 = vld [vmem:[%s3520_s1 + $0x4c4] ss:$16 sps:$4 sm:$0xff]  }
  0x60   :  { %1688 = vmatprep.subr.bf16.mxu0 %v2437_v45  ;;  %1852 = vmatprep.subr.bf16.mxu1 %v2440_v46  ;;  %v2524_v45 = vld [vmem:[%s3520_s1 + $0x4cc] ss:$16 sps:$4 sm:$0xff]   ;;  %v2519_v46 = vld [vmem:[%s3520_s1 + $0x4c0] ss:$16 sps:$4 sm:$0xff]  }
  0x63   :  { %1689 = vmatpush1.bf16.msra.mxu0 %v2435_v47  ;;  %1853 = vmatpush1.bf16.msra.mxu1 %v2438_v48  ;;  %v2522_v47 = vld [vmem:[%s3520_s1 + $0x4c8] ss:$16 sps:$4 sm:$0xff]   ;;  %v2527_v48 = vld [vmem:[%s3520_s1 + $0x4e4] ss:$16 sps:$4 sm:$0xff]  }
  0x64   :  { %1690 = vmatprep.subr.bf16.mxu0 %v2443_v50  ;;  %1854 = vmatprep.subr.bf16.mxu1 %v2446_v51  ;;  %v2530_v50 = vld [vmem:[%s3520_s1 + $0x4ec] ss:$16 sps:$4 sm:$0xff]   ;;  %v2525_v51 = vld [vmem:[%s3520_s1 + $0x4e0] ss:$16 sps:$4 sm:$0xff]  }
  0x67   :  { %1691 = vmatpush1.bf16.msra.mxu0 %v2441_v53  ;;  %1855 = vmatpush1.bf16.msra.mxu1 %v2444_v54  ;;  %v2528_v53 = vld [vmem:[%s3520_s1 + $0x4e8] ss:$16 sps:$4 sm:$0xff]   ;;  %v2533_v54 = vld [vmem:[%s3520_s1 + $0x504] ss:$16 sps:$4 sm:$0xff]  }
  0x68   :  { %1692 = vmatprep.subr.bf16.mxu0 %v2449_v55  ;;  %1856 = vmatprep.subr.bf16.mxu1 %v2452_v56  ;;  %v2536_v55 = vld [vmem:[%s3520_s1 + $0x50c] ss:$16 sps:$4 sm:$0xff]   ;;  %v2531_v56 = vld [vmem:[%s3520_s1 + $0x500] ss:$16 sps:$4 sm:$0xff]  }
  0x6b   :  { %1693 = vmatpush1.bf16.msra.mxu0 %v2447_v57  ;;  %1857 = vmatpush1.bf16.msra.mxu1 %v2450_v58  ;;  %v2534_v57 = vld [vmem:[%s3520_s1 + $0x508] ss:$16 sps:$4 sm:$0xff]   ;;  %v2539_v58 = vld [vmem:[%s3520_s1 + $0x524] ss:$16 sps:$4 sm:$0xff]  }
  0x6c   :  { %1694 = vmatprep.subr.bf16.mxu0 %v2455_v59  ;;  %1858 = vmatprep.subr.bf16.mxu1 %v2458_v60  ;;  %v2542_v59 = vld [vmem:[%s3520_s1 + $0x52c] ss:$16 sps:$4 sm:$0xff]   ;;  %v2537_v60 = vld [vmem:[%s3520_s1 + $0x520] ss:$16 sps:$4 sm:$0xff]  }
  0x6f   :  { %1695 = vmatpush1.bf16.msra.mxu0 %v2453_v61  ;;  %1859 = vmatpush1.bf16.msra.mxu1 %v2456_v62  ;;  %v2540_v61 = vld [vmem:[%s3520_s1 + $0x528] ss:$16 sps:$4 sm:$0xff]   ;;  %v2545_v62 = vld [vmem:[%s3520_s1 + $0x544] ss:$16 sps:$4 sm:$0xff]  }
  0x70   :  { %1696 = vmatprep.subr.bf16.mxu0 %v2461_v63  ;;  %1860 = vmatprep.subr.bf16.mxu1 %v2464_v0  ;;  %v2548_v63 = vld [vmem:[%s3520_s1 + $0x54c] ss:$16 sps:$4 sm:$0xff]   ;;  %v2543_v0 = vld [vmem:[%s3520_s1 + $0x540] ss:$16 sps:$4 sm:$0xff]  }
  0x73   :  { %1697 = vmatpush1.bf16.msra.mxu0 %v2459_v1  ;;  %1861 = vmatpush1.bf16.msra.mxu1 %v2462_v2  ;;  %v2546_v1 = vld [vmem:[%s3520_s1 + $0x548] ss:$16 sps:$4 sm:$0xff]   ;;  %v2551_v2 = vld [vmem:[%s3520_s1 + $0x564] ss:$16 sps:$4 sm:$0xff]  }
  0x74   :  { %1698 = vmatprep.subr.bf16.mxu0 %v2467_v3  ;;  %1862 = vmatprep.subr.bf16.mxu1 %v2470_v4  ;;  %v2554_v3 = vld [vmem:[%s3520_s1 + $0x56c] ss:$16 sps:$4 sm:$0xff]   ;;  %v2549_v4 = vld [vmem:[%s3520_s1 + $0x560] ss:$16 sps:$4 sm:$0xff]  }
  0x77   :  { %1699 = vmatpush1.bf16.msra.mxu0 %v2465_v5  ;;  %1863 = vmatpush1.bf16.msra.mxu1 %v2468_v6  ;;  %v2552_v5 = vld [vmem:[%s3520_s1 + $0x568] ss:$16 sps:$4 sm:$0xff]   ;;  %v2557_v6 = vld [vmem:[%s3520_s1 + $0x584] ss:$16 sps:$4 sm:$0xff]  }
  0x78   :  { %1700 = vmatprep.subr.bf16.mxu0 %v2473_v7  ;;  %1864 = vmatprep.subr.bf16.mxu1 %v2476_v8  ;;  %v2560_v7 = vld [vmem:[%s3520_s1 + $0x58c] ss:$16 sps:$4 sm:$0xff]   ;;  %v2555_v8 = vld [vmem:[%s3520_s1 + $0x580] ss:$16 sps:$4 sm:$0xff]  }
  0x7b   :  { %1701 = vmatpush1.bf16.msra.mxu0 %v2471_v10  ;;  %1865 = vmatpush1.bf16.msra.mxu1 %v2474_v11  ;;  %v2563_v10 = vld [vmem:[%s3520_s1 + $0x5a4] ss:$16 sps:$4 sm:$0xff]   ;;  %v2566_v11 = vld [vmem:[%s3520_s1 + $0x5ac] ss:$16 sps:$4 sm:$0xff]  }
  0x7c   :  { %1702 = vmatprep.subr.bf16.mxu0 %v2479_v12  ;;  %1866 = vmatprep.subr.bf16.mxu1 %v2482_v52  ;;  %v2561_v12 = vld [vmem:[%s3520_s1 + $0x5a0] ss:$16 sps:$4 sm:$0xff]   ;;  %v2564_v52 = vld [vmem:[%s3520_s1 + $0x5a8] ss:$16 sps:$4 sm:$0xff]  }
  0x7f   :  { %1703 = vmatpush1.bf16.msra.mxu0 %v2477_v15  ;;  %1867 = vmatpush1.bf16.msra.mxu1 %v2480_v16  ;;  %v2569_v15 = vld [vmem:[%s3520_s1 + $0x5c4] ss:$16 sps:$4 sm:$0xff]   ;;  %v2572_v16 = vld [vmem:[%s3520_s1 + $0x5cc] ss:$16 sps:$4 sm:$0xff]  }
  0x80   :  { %1713 = vmatprep.subr.bf16.mxu0 %v2485_v17  ;;  %1877 = vmatprep.subr.bf16.mxu1 %v2488_v18  ;;  %v2567_v17 = vld [vmem:[%s3520_s1 + $0x5c0] ss:$16 sps:$4 sm:$0xff]   ;;  %v2570_v18 = vld [vmem:[%s3520_s1 + $0x5c8] ss:$16 sps:$4 sm:$0xff]  }
  0x82   :  { %1705 = vmatmul.mubr.bf16.vlgmr.msra.gmra.mrb[0].mxu0 %v339_v21  ;;  %1869 = vmatmul.mubr.bf16.vlgmr.msra.gmra.mrb[0].mxu1 %v339_v21  ;;  %v2573_v21 = vld [vmem:[%s3520_s1 + $0x5e0] ss:$16 sps:$4 sm:$0xff]  }
  0x83   :  { %1714 = vmatpush1.bf16.msra.mxu0 %v2483_v20  ;;  %1878 = vmatpush1.bf16.msra.mxu1 %v2486_v22  ;;  %v2578_v20 = vld [vmem:[%s3520_s1 + $0x5ec] ss:$16 sps:$4 sm:$0xff]   ;;  %v2576_v22 = vld [vmem:[%s3520_s1 + $0x5e8] ss:$16 sps:$4 sm:$0xff]  }
  0x84   :  { %1715 = vmatprep.subr.bf16.mxu0 %v2491_v23  ;;  %1879 = vmatprep.subr.bf16.mxu1 %v2494_v24  ;;  %v2582_v23 = vld [vmem:[%s3520_s1 + $0x604] ss:$16 sps:$4 sm:$0xff]   ;;  %v2585_v24 = vld [vmem:[%s3520_s1 + $0x60c] ss:$16 sps:$4 sm:$0xff]  }
  0x85   :  { %1745 = vmatprep.mubr.bf16.mxu0 %v3127_v25  ;;  %1909 = vmatprep.mubr.bf16.mxu1 %v3127_v25 }
  0x87   :  { %1716 = vmatpush1.bf16.msra.mxu0 %v2489_v13  ;;  %1880 = vmatpush1.bf16.msra.mxu1 %v2492_v26  ;;  %v3313_v13 = vrot.slane %v3096_v14, %v2832_v49  ;;  %v2580_v26 = vld [vmem:[%s3520_s1 + $0x600] ss:$16 sps:$4 sm:$0xff]   ;;  %v2591_v14 = vld [vmem:[%s3520_s1 + $0x62c] ss:$16 sps:$4 sm:$0xff]  }
  0x88   :  { %1717 = vmatprep.subr.bf16.mxu0 %v2497_v27  ;;  %1881 = vmatprep.subr.bf16.mxu1 %v2500_v28  ;;  %v2583_v27 = vld [vmem:[%s3520_s1 + $0x608] ss:$16 sps:$4 sm:$0xff]   ;;  %v2588_v28 = vld [vmem:[%s3520_s1 + $0x624] ss:$16 sps:$4 sm:$0xff]  }
  0x8b   :  { %1718 = vmatpush1.bf16.msra.mxu0 %v2495_v29  ;;  %1882 = vmatpush1.bf16.msra.mxu1 %v2498_v30  ;;  %v342_v29 = vcombine.high %v3127_v25, %v3127_v25  ;;  %v2586_v30 = vld [vmem:[%s3520_s1 + $0x620] ss:$16 sps:$4 sm:$0xff]   ;;  %v2594_v25 = vld [vmem:[%s3520_s1 + $0x644] ss:$16 sps:$4 sm:$0xff]  }
  0x8c   :  { %1719 = vmatprep.subr.bf16.mxu0 %v2503_v31  ;;  %1883 = vmatprep.subr.bf16.mxu1 %v2506_v32  ;;  %v2589_v31 = vld [vmem:[%s3520_s1 + $0x628] ss:$16 sps:$4 sm:$0xff]   ;;  %v2597_v32 = vld [vmem:[%s3520_s1 + $0x64c] ss:$16 sps:$4 sm:$0xff]  }
  0x8f   :  { %1720 = vmatpush1.bf16.msra.mxu0 %v2501_v33  ;;  %1884 = vmatpush1.bf16.msra.mxu1 %v2504_v34  ;;  %v2592_v33 = vld [vmem:[%s3520_s1 + $0x640] ss:$16 sps:$4 sm:$0xff]   ;;  %v2595_v34 = vld [vmem:[%s3520_s1 + $0x648] ss:$16 sps:$4 sm:$0xff]  }
  0x90   :  { %1721 = vmatprep.subr.bf16.mxu0 %v2509_v35  ;;  %1885 = vmatprep.subr.bf16.mxu1 %v2512_v36  ;;  %v2600_v35 = vld [vmem:[%s3520_s1 + $0x664] ss:$16 sps:$4 sm:$0xff]   ;;  %v2603_v36 = vld [vmem:[%s3520_s1 + $0x66c] ss:$16 sps:$4 sm:$0xff]  }
  0x93   :  { %1722 = vmatpush1.bf16.msra.mxu0 %v2507_v37  ;;  %1886 = vmatpush1.bf16.msra.mxu1 %v2510_v38  ;;  %v2598_v37 = vld [vmem:[%s3520_s1 + $0x660] ss:$16 sps:$4 sm:$0xff]   ;;  %v2601_v38 = vld [vmem:[%s3520_s1 + $0x668] ss:$16 sps:$4 sm:$0xff]  }
  0x94   :  { %1723 = vmatprep.subr.bf16.mxu0 %v2515_v39  ;;  %1887 = vmatprep.subr.bf16.mxu1 %v2518_v40  ;;  %v2606_v39 = vld [vmem:[%s3520_s1 + $0x684] ss:$16 sps:$4 sm:$0xff]   ;;  %v2609_v40 = vld [vmem:[%s3520_s1 + $0x68c] ss:$16 sps:$4 sm:$0xff]  }
  0x97   :  { %1724 = vmatpush1.bf16.msra.mxu0 %v2513_v41  ;;  %1888 = vmatpush1.bf16.msra.mxu1 %v2516_v43  ;;  %v2604_v41 = vld [vmem:[%s3520_s1 + $0x680] ss:$16 sps:$4 sm:$0xff]   ;;  %v2607_v43 = vld [vmem:[%s3520_s1 + $0x688] ss:$16 sps:$4 sm:$0xff]  }
  0x98   :  { %1725 = vmatprep.subr.bf16.mxu0 %v2521_v44  ;;  %1889 = vmatprep.subr.bf16.mxu1 %v2524_v45  ;;  %v2612_v44 = vld [vmem:[%s3520_s1 + $0x6a4] ss:$16 sps:$4 sm:$0xff]   ;;  %v2615_v45 = vld [vmem:[%s3520_s1 + $0x6ac] ss:$16 sps:$4 sm:$0xff]  }
  0x9b   :  { %1726 = vmatpush1.bf16.msra.mxu0 %v2519_v46  ;;  %1890 = vmatpush1.bf16.msra.mxu1 %v2522_v47  ;;  %v2610_v46 = vld [vmem:[%s3520_s1 + $0x6a0] ss:$16 sps:$4 sm:$0xff]   ;;  %v2613_v47 = vld [vmem:[%s3520_s1 + $0x6a8] ss:$16 sps:$4 sm:$0xff]  }
  0x9c   :  { %1727 = vmatprep.subr.bf16.mxu0 %v2527_v48  ;;  %1891 = vmatprep.subr.bf16.mxu1 %v2530_v50  ;;  %v2618_v48 = vld [vmem:[%s3520_s1 + $0x6c4] ss:$16 sps:$4 sm:$0xff]   ;;  %v2621_v50 = vld [vmem:[%s3520_s1 + $0x6cc] ss:$16 sps:$4 sm:$0xff]  }
  0x9f   :  { %1728 = vmatpush1.bf16.msra.mxu0 %v2525_v51  ;;  %1892 = vmatpush1.bf16.msra.mxu1 %v2528_v53  ;;  %v2616_v51 = vld [vmem:[%s3520_s1 + $0x6c0] ss:$16 sps:$4 sm:$0xff]   ;;  %v2619_v53 = vld [vmem:[%s3520_s1 + $0x6c8] ss:$16 sps:$4 sm:$0xff]  }
  0xa0   :  { %1729 = vmatprep.subr.bf16.mxu0 %v2533_v54  ;;  %1893 = vmatprep.subr.bf16.mxu1 %v2536_v55  ;;  %v2624_v54 = vld [vmem:[%s3520_s1 + $0x6e4] ss:$16 sps:$4 sm:$0xff]   ;;  %v2627_v55 = vld [vmem:[%s3520_s1 + $0x6ec] ss:$16 sps:$4 sm:$0xff]  }
  0xa3   :  { %1730 = vmatpush1.bf16.msra.mxu0 %v2531_v56  ;;  %1894 = vmatpush1.bf16.msra.mxu1 %v2534_v57  ;;  %v2622_v56 = vld [vmem:[%s3520_s1 + $0x6e0] ss:$16 sps:$4 sm:$0xff]   ;;  %v2625_v57 = vld [vmem:[%s3520_s1 + $0x6e8] ss:$16 sps:$4 sm:$0xff]  }
  0xa4   :  { %1731 = vmatprep.subr.bf16.mxu0 %v2539_v58  ;;  %1895 = vmatprep.subr.bf16.mxu1 %v2542_v59  ;;  %v2630_v58 = vld [vmem:[%s3520_s1 + $0x704] ss:$16 sps:$4 sm:$0xff]   ;;  %v2633_v59 = vld [vmem:[%s3520_s1 + $0x70c] ss:$16 sps:$4 sm:$0xff]  }
  0xa7   :  { %1732 = vmatpush1.bf16.msra.mxu0 %v2537_v60  ;;  %1896 = vmatpush1.bf16.msra.mxu1 %v2540_v61  ;;  %v2628_v60 = vld [vmem:[%s3520_s1 + $0x700] ss:$16 sps:$4 sm:$0xff]   ;;  %v2631_v61 = vld [vmem:[%s3520_s1 + $0x708] ss:$16 sps:$4 sm:$0xff]  }
  0xa8   :  { %1733 = vmatprep.subr.bf16.mxu0 %v2545_v62  ;;  %1897 = vmatprep.subr.bf16.mxu1 %v2548_v63  ;;  %v2636_v62 = vld [vmem:[%s3520_s1 + $0x724] ss:$16 sps:$4 sm:$0xff]   ;;  %v2639_v63 = vld [vmem:[%s3520_s1 + $0x72c] ss:$16 sps:$4 sm:$0xff]  }
  0xab   :  { %1734 = vmatpush1.bf16.msra.mxu0 %v2543_v0  ;;  %1898 = vmatpush1.bf16.msra.mxu1 %v2546_v1  ;;  %v2634_v0 = vld [vmem:[%s3520_s1 + $0x720] ss:$16 sps:$4 sm:$0xff]   ;;  %v2637_v1 = vld [vmem:[%s3520_s1 + $0x728] ss:$16 sps:$4 sm:$0xff]  }
  0xac   :  { %1735 = vmatprep.subr.bf16.mxu0 %v2551_v2  ;;  %1899 = vmatprep.subr.bf16.mxu1 %v2554_v3  ;;  %v2642_v2 = vld [vmem:[%s3520_s1 + $0x744] ss:$16 sps:$4 sm:$0xff]   ;;  %v2645_v3 = vld [vmem:[%s3520_s1 + $0x74c] ss:$16 sps:$4 sm:$0xff]  }
  0xaf   :  { %1736 = vmatpush1.bf16.msra.mxu0 %v2549_v4  ;;  %1900 = vmatpush1.bf16.msra.mxu1 %v2552_v5  ;;  %v2640_v4 = vld [vmem:[%s3520_s1 + $0x740] ss:$16 sps:$4 sm:$0xff]   ;;  %v2643_v5 = vld [vmem:[%s3520_s1 + $0x748] ss:$16 sps:$4 sm:$0xff]  }
  0xb0   :  { %1737 = vmatprep.subr.bf16.mxu0 %v2557_v6  ;;  %1901 = vmatprep.subr.bf16.mxu1 %v2560_v7  ;;  %v2648_v6 = vld [vmem:[%s3520_s1 + $0x764] ss:$16 sps:$4 sm:$0xff]   ;;  %v2651_v7 = vld [vmem:[%s3520_s1 + $0x76c] ss:$16 sps:$4 sm:$0xff]  }
  0xb3   :  { %1738 = vmatpush1.bf16.msra.mxu0 %v2555_v8  ;;  %1902 = vmatpush1.bf16.msra.mxu1 %v2558_v9  ;;  %v2646_v8 = vld [vmem:[%s3520_s1 + $0x760] ss:$16 sps:$4 sm:$0xff]   ;;  %v2649_v9 = vld [vmem:[%s3520_s1 + $0x768] ss:$16 sps:$4 sm:$0xff]  }
  0xb4   :  { %1739 = vmatprep.subr.bf16.mxu0 %v2563_v10  ;;  %1903 = vmatprep.subr.bf16.mxu1 %v2566_v11  ;;  %v2654_v10 = vld [vmem:[%s3520_s1 + $0x784] ss:$16 sps:$4 sm:$0xff]   ;;  %v2657_v11 = vld [vmem:[%s3520_s1 + $0x78c] ss:$16 sps:$4 sm:$0xff]  }
  0xb7   :  { %1740 = vmatpush1.bf16.msra.mxu0 %v2561_v12  ;;  %1904 = vmatpush1.bf16.msra.mxu1 %v2564_v52  ;;  %v2652_v12 = vld [vmem:[%s3520_s1 + $0x780] ss:$16 sps:$4 sm:$0xff]   ;;  %v2655_v52 = vld [vmem:[%s3520_s1 + $0x788] ss:$16 sps:$4 sm:$0xff]  }
  0xb8   :  { %1741 = vmatprep.subr.bf16.mxu0 %v2569_v15  ;;  %1905 = vmatprep.subr.bf16.mxu1 %v2572_v16  ;;  %v2660_v15 = vld [vmem:[%s3520_s1 + $0x7a4] ss:$16 sps:$4 sm:$0xff]   ;;  %v2663_v16 = vld [vmem:[%s3520_s1 + $0x7ac] ss:$16 sps:$4 sm:$0xff]  }
  0xbb   :  { %1742 = vmatpush1.bf16.msra.mxu0 %v2567_v17  ;;  %1906 = vmatpush1.bf16.msra.mxu1 %v2570_v18  ;;  %v2658_v17 = vld [vmem:[%s3520_s1 + $0x7a0] ss:$16 sps:$4 sm:$0xff]   ;;  %v2661_v18 = vld [vmem:[%s3520_s1 + $0x7a8] ss:$16 sps:$4 sm:$0xff]  }
  0xbc   :  { %1743 = vmatprep.subr.bf16.mxu0 %v2575_v19  ;;  %1907 = vmatprep.subr.bf16.mxu1 %v2578_v20  ;;  %v2666_v19 = vld [vmem:[%s3520_s1 + $0x7c4] ss:$16 sps:$4 sm:$0xff]   ;;  %v2669_v20 = vld [vmem:[%s3520_s1 + $0x7cc] ss:$16 sps:$4 sm:$0xff]  }
  0xbf   :  { %1744 = vmatpush1.bf16.msra.mxu0 %v2573_v21  ;;  %1908 = vmatpush1.bf16.msra.mxu1 %v2576_v22  ;;  %v2664_v21 = vld [vmem:[%s3520_s1 + $0x7c0] ss:$16 sps:$4 sm:$0xff]   ;;  %v2667_v22 = vld [vmem:[%s3520_s1 + $0x7c8] ss:$16 sps:$4 sm:$0xff]  }
  0xc0   :  { %1754 = vmatprep.subr.bf16.mxu0 %v2582_v23  ;;  %1918 = vmatprep.subr.bf16.mxu1 %v2585_v24  ;;  %v2672_v23 = vld [vmem:[%s3520_s1 + $0x7e4] ss:$16 sps:$4 sm:$0xff]   ;;  %v2675_v24 = vld [vmem:[%s3520_s1 + $0x7ec] ss:$16 sps:$4 sm:$0xff]  }
  0xc2   :  { %1746 = vmatmul.mubr.bf16.vlgmr.msra.gmra.mrb[0].mxu0 %v3313_v13  ;;  %1910 = vmatmul.mubr.bf16.vlgmr.msra.gmra.mrb[0].mxu1 %v3313_v13 }
  0xc3   :  { %1755 = vmatpush1.bf16.msra.mxu0 %v2580_v26  ;;  %1919 = vmatpush1.bf16.msra.mxu1 %v2583_v27  ;;  %v2670_v26 = vld [vmem:[%s3520_s1 + $0x7e0] ss:$16 sps:$4 sm:$0xff]   ;;  %v2673_v27 = vld [vmem:[%s3520_s1 + $0x7e8] ss:$16 sps:$4 sm:$0xff]  }
  0xc4   :  { %1756 = vmatprep.subr.bf16.mxu0 %v2588_v28  ;;  %1920 = vmatprep.subr.bf16.mxu1 %v2591_v14  ;;  %v340_v28 = vcombine.high %v3313_v13, %v3313_v13  ;;  %v275_v14 = vsub.s32 0, %v2814_v42 }
  0xc5   :  { %1786 = vmatprep.mubr.bf16.mxu0 %v342_v29  ;;  %1950 = vmatprep.mubr.bf16.mxu1 %v342_v29  ;;  %v283_v29 = vsub.s32 2, %v2814_v42 }
  0xc7   :  { %1757 = vmatpush1.bf16.msra.mxu0 %v2586_v30  ;;  %1921 = vmatpush1.bf16.msra.mxu1 %v2589_v31  ;;  %v271_v30 = vld [vmem:[%s3522_s2] sm:$0xf]  ;;  %v279_v31 = vsub.s32 1, %v2814_v42 }
  0xc8   :  { %1758 = vmatprep.subr.bf16.mxu0 %v2594_v25  ;;  %1922 = vmatprep.subr.bf16.mxu1 %v2597_v32  ;;  %v287_v25 = vsub.s32 3, %v2814_v42  ;;  %v276_v32 = vrot.slane %v271_v30, %v275_v14 }
  0xca   :  { %v288_v13 = vrot.slane %v271_v30, %v287_v25 }
  0xcb   :  { %1759 = vmatpush1.bf16.msra.mxu0 %v2592_v33  ;;  %1923 = vmatpush1.bf16.msra.mxu1 %v2595_v34  ;;  %v284_v33 = vrot.slane %v271_v30, %v283_v29  ;;  %v280_v34 = vrot.slane %v271_v30, %v279_v31 }
  0xcc   :  { %1760 = vmatprep.subr.bf16.mxu0 %v2600_v35  ;;  %1924 = vmatprep.subr.bf16.mxu1 %v2603_v36 }
  0xcf   :  { %1761 = vmatpush1.bf16.msra.mxu0 %v2598_v37  ;;  %1925 = vmatpush1.bf16.msra.mxu1 %v2601_v38 }
  0xd0   :  { %1762 = vmatprep.subr.bf16.mxu0 %v2606_v39  ;;  %1926 = vmatprep.subr.bf16.mxu1 %v2609_v40 }
  0xd3   :  { %1763 = vmatpush1.bf16.msra.mxu0 %v2604_v41  ;;  %1927 = vmatpush1.bf16.msra.mxu1 %v2607_v43 }
  0xd4   :  { %1764 = vmatprep.subr.bf16.mxu0 %v2612_v44  ;;  %1928 = vmatprep.subr.bf16.mxu1 %v2615_v45 }
  0xd7   :  { %1765 = vmatpush1.bf16.msra.mxu0 %v2610_v46  ;;  %1929 = vmatpush1.bf16.msra.mxu1 %v2613_v47 }
  0xd8   :  { %1766 = vmatprep.subr.bf16.mxu0 %v2618_v48  ;;  %1930 = vmatprep.subr.bf16.mxu1 %v2621_v50 }
  0xdb   :  { %1767 = vmatpush1.bf16.msra.mxu0 %v2616_v51  ;;  %1931 = vmatpush1.bf16.msra.mxu1 %v2619_v53 }
  0xdc   :  { %1768 = vmatprep.subr.bf16.mxu0 %v2624_v54  ;;  %1932 = vmatprep.subr.bf16.mxu1 %v2627_v55 }
  0xdf   :  { %1769 = vmatpush1.bf16.msra.mxu0 %v2622_v56  ;;  %1933 = vmatpush1.bf16.msra.mxu1 %v2625_v57 }
  0xe0   :  { %1770 = vmatprep.subr.bf16.mxu0 %v2630_v58  ;;  %1934 = vmatprep.subr.bf16.mxu1 %v2633_v59 }
  0xe3   :  { %1771 = vmatpush1.bf16.msra.mxu0 %v2628_v60  ;;  %1935 = vmatpush1.bf16.msra.mxu1 %v2631_v61 }
  0xe4   :  { %1772 = vmatprep.subr.bf16.mxu0 %v2636_v62  ;;  %1936 = vmatprep.subr.bf16.mxu1 %v2639_v63 }
  0xe7   :  { %1773 = vmatpush1.bf16.msra.mxu0 %v2634_v0  ;;  %1937 = vmatpush1.bf16.msra.mxu1 %v2637_v1 }
  0xe8   :  { %1774 = vmatprep.subr.bf16.mxu0 %v2642_v2  ;;  %1938 = vmatprep.subr.bf16.mxu1 %v2645_v3 }
  0xeb   :  { %1775 = vmatpush1.bf16.msra.mxu0 %v2640_v4  ;;  %1939 = vmatpush1.bf16.msra.mxu1 %v2643_v5 }
  0xec   :  { %1776 = vmatprep.subr.bf16.mxu0 %v2648_v6  ;;  %1940 = vmatprep.subr.bf16.mxu1 %v2651_v7 }
  0xef   :  { %1777 = vmatpush1.bf16.msra.mxu0 %v2646_v8  ;;  %1941 = vmatpush1.bf16.msra.mxu1 %v2649_v9 }
  0xf0   :  { %1778 = vmatprep.subr.bf16.mxu0 %v2654_v10  ;;  %1942 = vmatprep.subr.bf16.mxu1 %v2657_v11 }
  0xf3   :  { %1779 = vmatpush1.bf16.msra.mxu0 %v2652_v12  ;;  %1943 = vmatpush1.bf16.msra.mxu1 %v2655_v52 }
  0xf4   :  { %1780 = vmatprep.subr.bf16.mxu0 %v2660_v15  ;;  %1944 = vmatprep.subr.bf16.mxu1 %v2663_v16 }
  0xf7   :  { %1781 = vmatpush1.bf16.msra.mxu0 %v2658_v17  ;;  %1945 = vmatpush1.bf16.msra.mxu1 %v2661_v18 }
  0xf8   :  { %1782 = vmatprep.subr.bf16.mxu0 %v2666_v19  ;;  %1946 = vmatprep.subr.bf16.mxu1 %v2669_v20 }
  0xfb   :  { %1783 = vmatpush1.bf16.msra.mxu0 %v2664_v21  ;;  %1947 = vmatpush1.bf16.msra.mxu1 %v2667_v22 }
  0xfc   :  { %1784 = vmatprep.subr.bf16.mxu0 %v2672_v23  ;;  %1948 = vmatprep.subr.bf16.mxu1 %v2675_v24 }
  0xff   :  { %1785 = vmatpush1.bf16.msra.mxu0 %v2670_v26  ;;  %1949 = vmatpush1.bf16.msra.mxu1 %v2673_v27 }
 0x102   :  { %1787 = vmatmul.mubr.bf16.vlgmr.msra.gmra.mrb[0].mxu0 %v340_v28  ;;  %1951 = vmatmul.mubr.bf16.vlgmr.msra.gmra.mrb[0].mxu1 %v340_v28 }
 0x1d5   :  { %v1788_v35 = vpop.f32.mrb[0].mxu0  ;;  %v1952_v36 = vpop.f32.mrb[0].mxu1 }
 0x1d6   :  { %v2262_v37 = vadd.f32 %v1788_v35, %v276_v32  ;;  %v2264_v38 = vadd.f32 %v1952_v36, %v284_v33  ;;  %v1790_v39 = vpop.f32.mrb[1].mxu0  ;;  %v1954_v40 = vpop.f32.mrb[1].mxu1 }
 0x1d7   :  { %v2263_v41 = vadd.f32 %v1790_v39, %v280_v34  ;;  %v2265_v43 = vadd.f32 %v1954_v40, %v288_v13  ;;  %v1792_v44 = vpop.f32.mrb[2].mxu0  ;;  %v1956_v45 = vpop.f32.mrb[2].mxu1 }
 0x1d8   :  { %v1793_v46 = vpop.f32.mrb[3].mxu0  ;;  %v1957_v42 = vpop.f32.mrb[3].mxu1 }
 0x1d9   :  { %v2260_v47 = vpack.c.bf16 %v2263_v41, %v2262_v37  ;;  %v2261_v48 = vpack.c.bf16 %v2265_v43, %v2264_v38 }
 0x1db   :  { %v1975_v50 = vrot.slane %v2260_v47, %v2832_v49  ;;  %v1982_v51 = vrot.slane %v2261_v48, %v2832_v49 }
 0x1dd   :  { %v1983_v53 = vcombine.low %v1975_v50, %v1982_v51 }
 0x1df   :  { %v1990_v54 = vrot.slane %v1983_v53, %v2832_v49 }
 0x1e1   :  { %1999 = vst.msk [vmem:[%s3523_s3] sm:$0xf] %vm1998_vm6, %v1990_v54 }

// kernel: vae_forward.15
= control target key start
LH: loop header
LB: loop body
LE: loop exit
PB: predicated region body
PF: predicated region fallthrough
CT: control target
= control target key end

     0   :  { %s1117_s12 = smov 0   ;;  %s1274_s0 = inlined_call_operand.vmem [shape: bf16[96,576], index: 0, kind: input, shape index: {}]   ;;  %s1275_s1 = inlined_call_operand.vmem [shape: bf16[576,64], index: 1, kind: input, shape index: {}]   ;;  %s1276_s2 = inlined_call_operand.vmem [shape: f32[1,64], index: 2, kind: input, shape index: {}]   ;;  %s1277_s3 = inlined_call_operand.vmem [shape: bf16[96,64], index: 3, kind: output, shape index: {}]  }
   0x1 LB: > { %s840_s13 = sadd.s32 4294967295, %s1093_s12   ;;  %p844_p0 = scmp.ge.s32.totalorder %s1093_s12, 1  ;;  %s1093_s12 = sphi %s1117_s12, %s13_s12  }
   0x2   : > { %p139_p1 = scmp.lt.s32.totalorder %s1093_s12, 3 }
   0x4   : > { %p140_p2 = pnand %p844_p0, %p139_p1 }
   0x5   : > { %v1030_v0 = vld [vmem:[%s1275_s1 + $0x40] sm:$0xff] (!%p140_p2)   ;;  %v1034_v4 = vld [vmem:[%s1275_s1 + $0x48] sm:$0xff] (!%p140_p2)   ;;  %v1038_v8 = vld [vmem:[%s1275_s1 + $0x50] sm:$0xff] (!%p140_p2)   ;;  %s164_s17 = smul.u32 (!%p140_p2), 6, %s840_s13  ;;  %v1095_v34 = vmov (!%p140_p2), 0.0   ;;  %vm1096_vm0 = vmmov (!%p140_p2), 0  }
   0x6   : > { %143 = sbr.rel (%p140_p2) target bundleno = 293 (0x125), region = 32  ;;  %v1031_v1 = vld [vmem:[%s1275_s1 + $0xc0] sm:$0xff] (!%p140_p2)   ;;  %916 = vmatprep.subr.bf16.mxu0 (!%p140_p2), %v1030_v0  ;;  %v1035_v5 = vld [vmem:[%s1275_s1 + $0xc8] sm:$0xff] (!%p140_p2)   ;;  %v1039_v9 = vld [vmem:[%s1275_s1 + $0xd0] sm:$0xff] (!%p140_p2)   ;;  %vm566_vm1 = vcmask (!%p140_p2), 523264   ;;  %vm777_vm2 = vcmask (!%p140_p2), 519168  }
   0x7   : > { %v1032_v2 = vld [vmem:[%s1275_s1] sm:$0xff] (!%p140_p2)   ;;  %950 = vmatprep.subr.bf16.mxu1 (!%p140_p2), %v1031_v1  ;;  %v1036_v6 = vld [vmem:[%s1275_s1 + $0x8] sm:$0xff] (!%p140_p2)   ;;  %v1040_v10 = vld [vmem:[%s1275_s1 + $0x10] sm:$0xff] (!%p140_p2)   ;;  %p165_p3 = scmp.lt.s32.totalorder (!%p140_p2), %s164_s17, 11 }
   0x8   : > { %v1033_v3 = vld [vmem:[%s1275_s1 + $0x80] sm:$0xff] (!%p140_p2)   ;;  %917 = vmatpush3.bf16.msra.mxu0 (!%p140_p2), %v1032_v2  ;;  %v1037_v7 = vld [vmem:[%s1275_s1 + $0x88] sm:$0xff] (!%p140_p2)   ;;  %v1041_v11 = vld [vmem:[%s1275_s1 + $0x90] sm:$0xff] (!%p140_p2)  }
   0x9   : > { %951 = vmatpush3.bf16.msra.mxu1 (!%p140_p2), %v1033_v3  ;;  %918 = vmatprep.subr.bf16.mxu0 (!%p140_p2), %v1034_v4  ;;  %v1042_v12 = vld [vmem:[%s1275_s1 + $0x58] sm:$0xff] (!%p140_p2)   ;;  %v1046_v16 = vld [vmem:[%s1275_s1 + $0x60] sm:$0xff] (!%p140_p2)   ;;  %v1050_v20 = vld [vmem:[%s1275_s1 + $0x68] sm:$0xff] (!%p140_p2)  }
   0xa   : > { %952 = vmatprep.subr.bf16.mxu1 (!%p140_p2), %v1035_v5  ;;  %v1043_v13 = vld [vmem:[%s1275_s1 + $0xd8] sm:$0xff] (!%p140_p2)   ;;  %v1047_v17 = vld [vmem:[%s1275_s1 + $0xe0] sm:$0xff] (!%p140_p2)   ;;  %v1051_v21 = vld [vmem:[%s1275_s1 + $0xe8] sm:$0xff] (!%p140_p2)  }
   0xb   : > { %v1044_v14 = vld [vmem:[%s1275_s1 + $0x18] sm:$0xff] (!%p140_p2)   ;;  %v1048_v18 = vld [vmem:[%s1275_s1 + $0x20] sm:$0xff] (!%p140_p2)   ;;  %v1052_v22 = vld [vmem:[%s1275_s1 + $0x28] sm:$0xff] (!%p140_p2)  }
   0xc   : > { %919 = vmatpush3.bf16.msra.mxu0 (!%p140_p2), %v1036_v6  ;;  %v1045_v15 = vld [vmem:[%s1275_s1 + $0x98] sm:$0xff] (!%p140_p2)   ;;  %v1049_v19 = vld [vmem:[%s1275_s1 + $0xa0] sm:$0xff] (!%p140_p2)   ;;  %v1053_v23 = vld [vmem:[%s1275_s1 + $0xa8] sm:$0xff] (!%p140_p2)  }
   0xd   : > { %953 = vmatpush3.bf16.msra.mxu1 %v1037_v7  ;;  %920 = vmatprep.subr.bf16.mxu0 %v1038_v8  ;;  %s1279_s17 = smov (!%p165_p3, %s164_s17), 11  ;;  %v1054_v24 = vld [vmem:[%s1275_s1 + $0x70] sm:$0xff]   ;;  %v1058_v28 = vld [vmem:[%s1275_s1 + $0x78] sm:$0xff]   ;;  %v1068_v37 = vld [vmem:[%s1275_s1 + $0x100] sm:$0xff]  }
   0xe   : > { %954 = vmatprep.subr.bf16.mxu1 %v1039_v9  ;;  %v1055_v25 = vld [vmem:[%s1275_s1 + $0xf0] sm:$0xff]   ;;  %s1019_s16 = smul.u32 20, %s1279_s17  ;;  %v1059_v29 = vld [vmem:[%s1275_s1 + $0xf8] sm:$0xff]   ;;  %v1073_v40 = vld [vmem:[%s1275_s1 + $0x108] sm:$0xff]   ;;  %s846_s18 = sshll.u32 %s1279_s17, 2 }
   0xf   : > { %v1056_v26 = vld [vmem:[%s1275_s1 + $0x30] sm:$0xff]   ;;  %v1060_v30 = vld [vmem:[%s1275_s1 + $0x38] sm:$0xff]   ;;  %v847_v54 = vld [vmem:[%s1276_s2] ss:$0 sm:$0xff]  ;;  %s175_s21 = scalar_lea.vmem %s1277_s3, %s846_s18 }
  0x10   : > { %921 = vmatpush3.bf16.msra.mxu0 %v1040_v10  ;;  %v1057_v27 = vld [vmem:[%s1275_s1 + $0xb0] sm:$0xff]   ;;  %s1223_s27 = scalar_lea.vmem %s1274_s0, %s1019_s16  ;;  %v1061_v31 = vld [vmem:[%s1275_s1 + $0xb8] sm:$0xff]  }
  0x11   : > { %955 = vmatpush3.bf16.msra.mxu1 %v1041_v11  ;;  %922 = vmatprep.subr.bf16.mxu0 %v1042_v12  ;;  %v1062_v32 = vld [vmem:[%s1223_s27] ss:$20 sps:$4 sm:$0xff]   ;;  %v1064_v33 = vld [vmem:[%s1223_s27 + $0x4] ss:$20 sps:$4 sm:$0xff]   ;;  %v1065_v35 = vld [vmem:[%s1223_s27 + $0x8] ss:$20 sps:$4 sm:$0xff]  }
  0x12   : > { %956 = vmatprep.subr.bf16.mxu1 %v1043_v13  ;;  %v1067_v36 = vld [vmem:[%s1223_s27 + $0xc] ss:$20 sps:$4 sm:$0xff]   ;;  %608 = vmatprep.mubr.bf16.mxu0 %v1064_v33  ;;  %v1071_v39 = vld [vmem:[%s1223_s27 + $0x34] ss:$20 sps:$4 sm:$0xff]   ;;  %v1075_v42 = vld [vmem:[%s1223_s27 + $0x30] ss:$20 sps:$4 sm:$0xff]  }
  0x13   : > { %665 = vmatprep.mubr.bf16.mxu1 %v1067_v36  ;;  %v1069_v38 = vld [vmem:[%s1223_s27 + $0x2c] ss:$20 sps:$4 sm:$0xff]   ;;  %v1074_v41 = vld [vmem:[%s1223_s27 + $0x28] ss:$20 sps:$4 sm:$0xff]   ;;  %v1076_v44 = vld [vmem:[%s1275_s1 + $0x110] sm:$0xff]  }
  0x14   : > { %923 = vmatpush3.bf16.msra.mxu0 %v1044_v14  ;;  %v1077_v43 = vld [vmem:[%s1223_s27 + $0x54] ss:$20 sps:$4 sm:$0xff]   ;;  %v1079_v45 = vld [vmem:[%s1223_s27 + $0x5c] ss:$20 sps:$4 sm:$0xff]   ;;  %v1082_v48 = vld [vmem:[%s1223_s27 + $0x58] ss:$20 sps:$4 sm:$0xff]  }
  0x15   : > { %957 = vmatpush3.bf16.msra.mxu1 %v1045_v15  ;;  %924 = vmatprep.subr.bf16.mxu0 %v1046_v16  ;;  %v1083_v46 = vld [vmem:[%s1275_s1 + $0x118] sm:$0xff]   ;;  %v1081_v47 = vld [vmem:[%s1223_s27 + $0x50] ss:$20 sps:$4 sm:$0xff]   ;;  %v1086_v51 = vld [vmem:[%s1223_s27 + $0x60] ss:$20 sps:$4 sm:$0xff]  }
  0x16   : > { %958 = vmatprep.subr.bf16.mxu1 %v1047_v17  ;;  %v1084_v49 = vld [vmem:[%s1223_s27 + $0x10] ss:$20 sps:$4 sm:$0xff]   ;;  %v1085_v50 = vld [vmem:[%s1223_s27 + $0x38] ss:$20 sps:$4 sm:$0xff]  }
  0x18   : > { %925 = vmatpush3.bf16.msra.mxu0 %v1048_v18 }
  0x19   : > { %959 = vmatpush3.bf16.msra.mxu1 %v1049_v19  ;;  %926 = vmatprep.subr.bf16.mxu0 %v1050_v20 }
  0x1a   : > { %960 = vmatprep.subr.bf16.mxu1 %v1051_v21 }
  0x1c   : > { %927 = vmatpush3.bf16.msra.mxu0 %v1052_v22 }
  0x1d   : > { %961 = vmatpush3.bf16.msra.mxu1 %v1053_v23  ;;  %928 = vmatprep.subr.bf16.mxu0 %v1054_v24 }
  0x1e   : > { %962 = vmatprep.subr.bf16.mxu1 %v1055_v25 }
  0x20   : > { %929 = vmatpush3.bf16.msra.mxu0 %v1056_v26 }
  0x21   : > { %963 = vmatpush3.bf16.msra.mxu1 %v1057_v27  ;;  %930 = vmatprep.subr.bf16.mxu0 %v1058_v28 }
  0x22   : > { %964 = vmatprep.subr.bf16.mxu1 %v1059_v29 }
  0x24   : > { %931 = vmatpush3.bf16.msra.mxu0 %v1060_v30 }
  0x25   : > { %965 = vmatpush3.bf16.msra.mxu1 %v1061_v31  ;;  %991 = vmatprep.subr.bf16.mxu0 %v1095_v34 }
  0x26   : > { %1011 = vmatprep.subr.bf16.mxu1 %v1095_v34 }
  0x27   : > { %609 = vmatmul.mubr.bf16.vlgmr.msra.gmra.mrb[0].mxu0 %v1062_v32 }
  0x28   : > { %666 = vmatmul.mubr.bf16.vlgmr.msra.gmra.mrb[0].mxu1 %v1065_v35  ;;  %992 = vmatpush3.bf16.msra.mxu0 %v1068_v37 }
  0x29   : > { %1015 = vmatpush3.bf16.msra.mxu1 %v1068_v37  ;;  %616 = vmatprep.mubr.bf16.mxu0 %v1069_v38 }
  0x2a   : > { %1012 = vmatprep.subr.bf16.mxu1 %v1095_v34  ;;  %673 = vmatprep.mubr.bf16.mxu1 %v1071_v39 }
  0x2b   : > { %993 = vmatprep.subr.bf16.mxu0 %v1095_v34 }
  0x2c   : > { %994 = vmatpush3.bf16.msra.mxu0 %v1073_v40 }
  0x2d   : > { %1016 = vmatpush3.bf16.msra.mxu1 %v1073_v40  ;;  %995 = vmatprep.subr.bf16.mxu0 %v1095_v34 }
  0x2e   : > { %1013 = vmatprep.subr.bf16.mxu1 %v1095_v34 }
  0x2f   : > { %617 = vmatmul.mubr.bf16.gmra.mrb[4].mxu0 %v1074_v41 }
  0x30   : > { %674 = vmatmul.mubr.bf16.gmra.mrb[4].mxu1 %v1075_v42  ;;  %624 = vmatprep.mubr.bf16.mxu0 %v1077_v43 }
  0x31   : > { %1017 = vmatpush3.bf16.msra.mxu1 %v1076_v44  ;;  %681 = vmatprep.mubr.bf16.mxu1 %v1079_v45 }
  0x32   : > { %996 = vmatpush3.bf16.msra.mxu0 %v1076_v44  ;;  %1014 = vmatprep.subr.bf16.mxu1 %v1095_v34 }
  0x33   : > { %997 = vmatprep.subr.bf16.mxu0 %v1095_v34 }
  0x35   : > { %1018 = vmatpush3.bf16.msra.mxu1 %v1083_v46 }
  0x36   : > { %998 = vmatpush3.bf16.msra.mxu0 %v1083_v46 }
  0x37   : > { %625 = vmatmul.mubr.bf16.gmra.mrb[8].mxu0 %v1081_v47 }
  0x38   : > { %682 = vmatmul.mubr.bf16.gmra.mrb[8].mxu1 %v1082_v48  ;;  %999 = vmatprep.mubr.msk.bf16.mxu0 %vm1096_vm0, %v1095_v34 }
  0x39   : > { %1003 = vmatprep.mubr.msk.bf16.mxu1 %vm1096_vm0, %v1095_v34 }
  0x3f   : > { %1000 = vmatmul.mubr.msk.bf16.vlgmr.msra.gmra.mrb[12].mxu0 %vm566_vm1, %v1084_v49 }
  0x40   : > { %1004 = vmatmul.mubr.msk.bf16.vlgmr.msra.gmra.mrb[12].mxu1 %vm566_vm1, %v1085_v50 }
  0x41   : > { %1007 = vmatprep.mubr.msk.bf16.mxu1 %vm1096_vm0, %v1095_v34 }
  0x48   : > { %1008 = vmatmul.mubr.msk.bf16.gmra.mrb[16].mxu1 %vm566_vm1, %v1086_v51 }
  0xfa   : > { %v932_v52 = vpop.f32.mrb[0].mxu0 }
  0xfb   : > { %v966_v53 = vpop.f32.mrb[0].mxu1  ;;  %v933_v55 = vpop.f32.mrb[1].mxu0 }
  0xfc   : > { %v934_v56 = vadd.f32 %v933_v55, %v932_v52  ;;  %v967_v57 = vpop.f32.mrb[1].mxu1  ;;  %v935_v58 = vpop.f32.mrb[2].mxu0 }
  0xfd   : > { %v968_v59 = vadd.f32 %v967_v57, %v966_v53  ;;  %v969_v60 = vpop.f32.mrb[2].mxu1  ;;  %v936_v61 = vpop.f32.mrb[3].mxu0 }
  0xfe   : > { %v611_v62 = vadd.f32 %v934_v56, %v847_v54  ;;  %v937_v63 = vadd.f32 %v936_v61, %v935_v58  ;;  %v970_v0 = vpop.f32.mrb[3].mxu1 }
  0xff   : > { %v971_v1 = vadd.f32 %v970_v0, %v969_v60 }
 0x100   : > { %v614_v2 = vadd.f32 %v937_v63, %v847_v54  ;;  %v668_v3 = vadd.f32 %v968_v59, %v611_v62 }
 0x102   : > { %v938_v4 = vpop.f32.mrb[4].mxu0  ;;  %v671_v5 = vadd.f32 %v971_v1, %v614_v2 }
 0x103   : > { %v972_v6 = vpop.f32.mrb[4].mxu1  ;;  %v939_v7 = vpop.f32.mrb[5].mxu0 }
 0x104   : > { %v940_v8 = vadd.f32 %v939_v7, %v938_v4  ;;  %v973_v9 = vpop.f32.mrb[5].mxu1  ;;  %v941_v10 = vpop.f32.mrb[6].mxu0 }
 0x105   : > { %v974_v11 = vadd.f32 %v973_v9, %v972_v6  ;;  %v975_v12 = vpop.f32.mrb[6].mxu1  ;;  %v942_v13 = vpop.f32.mrb[7].mxu0 }
 0x106   : > { %v619_v14 = vadd.f32 %v940_v8, %v847_v54  ;;  %v943_v15 = vadd.f32 %v942_v13, %v941_v10  ;;  %v976_v16 = vpop.f32.mrb[7].mxu1 }
 0x107   : > { %v977_v17 = vadd.f32 %v976_v16, %v975_v12 }
 0x108   : > { %v622_v18 = vadd.f32 %v943_v15, %v847_v54  ;;  %v676_v19 = vadd.f32 %v974_v11, %v619_v14 }
 0x10a   : > { %v944_v20 = vpop.f32.mrb[8].mxu0  ;;  %v679_v21 = vadd.f32 %v977_v17, %v622_v18 }
 0x10b   : > { %v978_v22 = vpop.f32.mrb[8].mxu1  ;;  %v945_v23 = vpop.f32.mrb[9].mxu0 }
 0x10c   : > { %v946_v24 = vadd.f32 %v945_v23, %v944_v20  ;;  %v979_v25 = vpop.f32.mrb[9].mxu1  ;;  %v947_v26 = vpop.f32.mrb[10].mxu0 }
 0x10d   : > { %v980_v27 = vadd.f32 %v979_v25, %v978_v22  ;;  %v981_v28 = vpop.f32.mrb[10].mxu1  ;;  %v948_v29 = vpop.f32.mrb[11].mxu0 }
 0x10e   : > { %v627_v30 = vadd.f32 %v946_v24, %v847_v54  ;;  %v949_v31 = vadd.f32 %v948_v29, %v947_v26  ;;  %v982_v32 = vpop.f32.mrb[11].mxu1 }
 0x10f   : > { %v983_v33 = vadd.f32 %v982_v32, %v981_v28 }
 0x110   : > { %v630_v34 = vadd.f32 %v949_v31, %v847_v54  ;;  %v684_v35 = vadd.f32 %v980_v27, %v627_v30 }
 0x112   : > { %v724_v36 = vpop.f32.mrb[12].mxu0  ;;  %v687_v37 = vadd.f32 %v983_v33, %v630_v34 }
 0x113   : > { %v725_v38 = vadd.f32 %v724_v36, %v668_v3  ;;  %v732_v39 = vpop.f32.mrb[12].mxu1  ;;  %v1001_v40 = vpop.f32.mrb[13].mxu0 }
 0x114   : > { %v733_v41 = vadd.f32 %v732_v39, %v676_v19  ;;  %v1005_v42 = vpop.f32.mrb[13].mxu1  ;;  %v727_v43 = vpop.f32.mrb[14].mxu0 }
 0x115   : > { %v747_v44 = vmax.f32 %v725_v38, 0.0  ;;  %v728_v45 = vadd.f32 %v727_v43, %v671_v5  ;;  %v735_v46 = vpop.f32.mrb[14].mxu1  ;;  %v1002_v47 = vpop.f32.mrb[15].mxu0 }
 0x116   : > { %v749_v48 = vmax.f32 %v733_v41, 0.0  ;;  %v736_v49 = vadd.f32 %v735_v46, %v679_v21  ;;  %v1006_v50 = vpop.f32.mrb[15].mxu1 }
 0x117   : > { %v910_v51 = vpack.c.bf16 %v747_v44, %v747_v44  ;;  %v748_v52 = vmax.f32 %v728_v45, 0.0 }
 0x118   : > { %v912_v53 = vpack.c.bf16 %v749_v48, %v749_v48  ;;  %v750_v54 = vmax.f32 %v736_v49, 0.0 }
 0x119   : > { %778 = vst.msk [vmem:[%s175_s21] sm:$0xf] %vm777_vm2, %v910_v51  ;;  %v911_v55 = vpack.c.bf16 %v748_v52, %v748_v52 }
 0x11a   : > { %780 = vst.msk [vmem:[%s175_s21 + $0x8] sm:$0xf] %vm777_vm2, %v912_v53  ;;  %v913_v56 = vpack.c.bf16 %v750_v54, %v750_v54 }
 0x11b   : > { %779 = vst.msk [vmem:[%s175_s21 + $0x4] sm:$0xf] %vm777_vm2, %v911_v55  ;;  %v740_v57 = vpop.f32.mrb[16].mxu1 }
 0x11c   : > { %781 = vst.msk [vmem:[%s175_s21 + $0xc] sm:$0xf] %vm777_vm2, %v913_v56  ;;  %v741_v58 = vadd.f32 %v740_v57, %v684_v35  ;;  %v1009_v59 = vpop.f32.mrb[17].mxu1 }
 0x11d   : > { %v743_v60 = vpop.f32.mrb[18].mxu1 }
 0x11e   : > { %v751_v61 = vmax.f32 %v741_v58, 0.0  ;;  %v744_v62 = vadd.f32 %v743_v60, %v687_v37  ;;  %v1010_v63 = vpop.f32.mrb[19].mxu1 }
 0x120   : > { %v914_v0 = vpack.c.bf16 %v751_v61, %v751_v61  ;;  %v752_v1 = vmax.f32 %v744_v62, 0.0 }
 0x122   : > { %782 = vst.msk [vmem:[%s175_s21 + $0x10] sm:$0xf] %vm777_vm2, %v914_v0  ;;  %v915_v2 = vpack.c.bf16 %v752_v1, %v752_v1 }
 0x124   : > { %783 = vst.msk [vmem:[%s175_s21 + $0x14] sm:$0xf] %vm777_vm2, %v915_v2 }
 0x125 PF: > { %s13_s12 = sadd.s32 1, %s1093_s12  }
 0x126   : > { %p10_p4 = scmp.ge.s32.totalorder %s13_s12, 4  }
 0x128   :  { %12 = sbr.rel (!%p10_p4) target bundleno = 1 (0x1), region = 62 }

// kernel: vae_forward.16
= control target key start
LH: loop header
LB: loop body
LE: loop exit
PB: predicated region body
PF: predicated region fallthrough
CT: control target
= control target key end

     0   :  { %s727_s12 = smov 0   ;;  %s809_s0 = inlined_call_operand.vmem [shape: bf16[128,256], index: 0, kind: input, shape index: {}]   ;;  %s810_s1 = inlined_call_operand.vmem [shape: bf16[256,128], index: 1, kind: input, shape index: {}]   ;;  %s811_s2 = inlined_call_operand.vmem [shape: f32[1,128], index: 2, kind: input, shape index: {}]   ;;  %s812_s3 = inlined_call_operand.vmem [shape: bf16[128,128], index: 3, kind: output, shape index: {}]  }
   0x1 LB: > { %s530_s13 = sadd.s32 4294967295, %s705_s12   ;;  %p534_p0 = scmp.ge.s32.totalorder %s705_s12, 1  ;;  %s705_s12 = sphi %s727_s12, %s13_s12  }
   0x2   : > { %p139_p1 = scmp.lt.s32.totalorder %s705_s12, 3 }
   0x4   : > { %p140_p2 = pnand %p534_p0, %p139_p1 }
   0x5   : > { %v671_v0 = vld [vmem:[%s810_s1 + $0x40] sm:$0xff] (!%p140_p2)   ;;  %s535_s16 = sshll.u32 (!%p140_p2), %s530_s13, 3  ;;  %v673_v2 = vld [vmem:[%s810_s1 + $0x48] sm:$0xff] (!%p140_p2)   ;;  %v675_v4 = vld [vmem:[%s810_s1 + $0x50] sm:$0xff] (!%p140_p2)  }
   0x6   : > { %143 = sbr.rel (%p140_p2) target bundleno = 271 (0x10f), region = 32  ;;  %v672_v1 = vld [vmem:[%s810_s1] sm:$0xff] (!%p140_p2)   ;;  %607 = vmatprep.subr.bf16.mxu0 (!%p140_p2), %v671_v0  ;;  %647 = vmatprep.subr.bf16.mxu1 (!%p140_p2), %v671_v0  ;;  %v674_v3 = vld [vmem:[%s810_s1 + $0x8] sm:$0xff] (!%p140_p2)   ;;  %p165_p3 = scmp.lt.s32.totalorder (!%p140_p2), %s535_s16, 15  ;;  %v676_v5 = vld [vmem:[%s810_s1 + $0x10] sm:$0xff] (!%p140_p2)  }
   0x7   : > { %608 = vmatpush3.bf16.msra.mxu0 (!%p140_p2), %v672_v1  ;;  %655 = vmatpush3.bf16.msra.mxu1 (!%p140_p2), %v672_v1  ;;  %v677_v6 = vld [vmem:[%s810_s1 + $0x58] sm:$0xff] (!%p140_p2)   ;;  %v679_v8 = vld [vmem:[%s810_s1 + $0x60] sm:$0xff] (!%p140_p2)   ;;  %v681_v10 = vld [vmem:[%s810_s1 + $0x68] sm:$0xff] (!%p140_p2)  }
   0x8   : > { %609 = vmatprep.subr.bf16.mxu0 (!%p140_p2), %v673_v2  ;;  %648 = vmatprep.subr.bf16.mxu1 (!%p140_p2), %v673_v2  ;;  %v678_v7 = vld [vmem:[%s810_s1 + $0x18] sm:$0xff] (!%p140_p2)   ;;  %v680_v9 = vld [vmem:[%s810_s1 + $0x20] sm:$0xff] (!%p140_p2)   ;;  %v682_v13 = vld [vmem:[%s810_s1 + $0x28] sm:$0xff] (!%p140_p2)  }
   0x9   : > { %v683_v14 = vld [vmem:[%s810_s1 + $0x70] sm:$0xff] (!%p140_p2)   ;;  %v685_v16 = vld [vmem:[%s810_s1 + $0x78] sm:$0xff] (!%p140_p2)   ;;  %v540_v26 = vld [vmem:[%s811_s2] ss:$0 sm:$0xff] (!%p140_p2) }
   0xa   : > { %v684_v15 = vld [vmem:[%s810_s1 + $0x30] sm:$0xff] (!%p140_p2)   ;;  %v686_v17 = vld [vmem:[%s810_s1 + $0x38] sm:$0xff] (!%p140_p2)  }
   0xb   : > { %610 = vmatpush3.bf16.msra.mxu0 (!%p140_p2), %v674_v3  ;;  %656 = vmatpush3.bf16.msra.mxu1 (!%p140_p2), %v674_v3 }
   0xc   : > { %611 = vmatprep.subr.bf16.mxu0 (!%p140_p2), %v675_v4  ;;  %649 = vmatprep.subr.bf16.mxu1 (!%p140_p2), %v675_v4 }
   0xd   : > { %s814_s16 = smov (!%p165_p3, %s535_s16), 15 }
   0xe   : > { %s575_s4 = sshll.u32 %s814_s16, 3  ;;  %s539_s28 = sshll.u32 %s814_s16, 2 }
   0xf   : > { %612 = vmatpush3.bf16.msra.mxu0 %v676_v5  ;;  %657 = vmatpush3.bf16.msra.mxu1 %v676_v5  ;;  %s768_s9 = scalar_lea.vmem %s809_s0, %s575_s4  ;;  %s175_s4 = scalar_lea.vmem %s812_s3, %s539_s28 }
  0x10   : > { %613 = vmatprep.subr.bf16.mxu0 %v677_v6  ;;  %650 = vmatprep.subr.bf16.mxu1 %v677_v6  ;;  %v689_v11 = vld [vmem:[%s768_s9 + $0x4] ss:$8 sps:$4 sm:$0xff]   ;;  %v687_v18 = vld [vmem:[%s768_s9] ss:$8 sps:$4 sm:$0xff]   ;;  %v693_v20 = vld [vmem:[%s768_s9 + $0x14] ss:$8 sps:$4 sm:$0xff]  }
  0x11   : > { %v692_v12 = vld [vmem:[%s768_s9 + $0x24] ss:$8 sps:$4 sm:$0xff]   ;;  %393 = vmatprep.mubr.bf16.mxu0 %v689_v11  ;;  %v690_v19 = vld [vmem:[%s768_s9 + $0x20] ss:$8 sps:$4 sm:$0xff]   ;;  %v695_v21 = vld [vmem:[%s768_s9 + $0x34] ss:$8 sps:$4 sm:$0xff]  }
  0x12   : > { %409 = vmatprep.mubr.bf16.mxu1 %v692_v12  ;;  %v697_v22 = vld [vmem:[%s768_s9 + $0x10] ss:$8 sps:$4 sm:$0xff]  }
  0x13   : > { %614 = vmatpush3.bf16.msra.mxu0 %v678_v7  ;;  %658 = vmatpush3.bf16.msra.mxu1 %v678_v7  ;;  %v698_v23 = vld [vmem:[%s768_s9 + $0x30] ss:$8 sps:$4 sm:$0xff]  }
  0x14   : > { %615 = vmatprep.subr.bf16.mxu0 %v679_v8  ;;  %651 = vmatprep.subr.bf16.mxu1 %v679_v8 }
  0x17   : > { %616 = vmatpush3.bf16.msra.mxu0 %v680_v9  ;;  %659 = vmatpush3.bf16.msra.mxu1 %v680_v9 }
  0x18   : > { %617 = vmatprep.subr.bf16.mxu0 %v681_v10  ;;  %652 = vmatprep.subr.bf16.mxu1 %v681_v10 }
  0x1b   : > { %618 = vmatpush3.bf16.msra.mxu0 %v682_v13  ;;  %660 = vmatpush3.bf16.msra.mxu1 %v682_v13 }
  0x1c   : > { %619 = vmatprep.subr.bf16.mxu0 %v683_v14  ;;  %653 = vmatprep.subr.bf16.mxu1 %v683_v14 }
  0x1f   : > { %620 = vmatpush3.bf16.msra.mxu0 %v684_v15  ;;  %661 = vmatpush3.bf16.msra.mxu1 %v684_v15 }
  0x20   : > { %621 = vmatprep.subr.bf16.mxu0 %v685_v16  ;;  %654 = vmatprep.subr.bf16.mxu1 %v685_v16 }
  0x23   : > { %622 = vmatpush3.bf16.msra.mxu0 %v686_v17  ;;  %662 = vmatpush3.bf16.msra.mxu1 %v686_v17 }
  0x26   : > { %394 = vmatmul.mubr.bf16.vlgmr.msra.gmra.mrb[0].mxu0 %v687_v18  ;;  %410 = vmatmul.mubr.bf16.vlgmr.msra.gmra.mrb[0].mxu1 %v690_v19 }
  0x27   : > { %401 = vmatprep.mubr.bf16.mxu0 %v693_v20  ;;  %417 = vmatprep.mubr.bf16.mxu1 %v695_v21 }
  0x2e   : > { %402 = vmatmul.mubr.bf16.gmra.mrb[4].mxu0 %v697_v22  ;;  %418 = vmatmul.mubr.bf16.gmra.mrb[4].mxu1 %v698_v23 }
  0xf9   : > { %v623_v24 = vpop.f32.mrb[0].mxu0  ;;  %v635_v25 = vpop.f32.mrb[0].mxu1 }
  0xfa   : > { %v624_v27 = vpop.f32.mrb[1].mxu0  ;;  %v636_v28 = vpop.f32.mrb[1].mxu1 }
  0xfb   : > { %v625_v29 = vadd.f32 %v624_v27, %v623_v24  ;;  %v637_v30 = vadd.f32 %v636_v28, %v635_v25  ;;  %v626_v31 = vpop.f32.mrb[2].mxu0  ;;  %v638_v32 = vpop.f32.mrb[2].mxu1 }
  0xfc   : > { %v627_v33 = vpop.f32.mrb[3].mxu0  ;;  %v639_v34 = vpop.f32.mrb[3].mxu1 }
  0xfd   : > { %v396_v35 = vadd.f32 %v625_v29, %v540_v26  ;;  %v412_v36 = vadd.f32 %v637_v30, %v540_v26  ;;  %v628_v37 = vadd.f32 %v627_v33, %v626_v31  ;;  %v640_v38 = vadd.f32 %v639_v34, %v638_v32 }
  0xff   : > { %v399_v39 = vadd.f32 %v628_v37, %v540_v26  ;;  %v415_v40 = vadd.f32 %v640_v38, %v540_v26  ;;  %v426_v41 = vmax.f32 %v396_v35, 0.0  ;;  %v430_v42 = vmax.f32 %v412_v36, 0.0 }
 0x101   : > { %v427_v43 = vmax.f32 %v399_v39, 0.0  ;;  %v431_v44 = vmax.f32 %v415_v40, 0.0  ;;  %v629_v45 = vpop.f32.mrb[4].mxu0  ;;  %v641_v46 = vpop.f32.mrb[4].mxu1 }
 0x102   : > { %v630_v47 = vpop.f32.mrb[5].mxu0  ;;  %v642_v48 = vpop.f32.mrb[5].mxu1 }
 0x103   : > { %v587_v49 = vpack.c.bf16 %v427_v43, %v426_v41  ;;  %v597_v50 = vpack.c.bf16 %v431_v44, %v430_v42  ;;  %v631_v51 = vadd.f32 %v630_v47, %v629_v45  ;;  %v643_v52 = vadd.f32 %v642_v48, %v641_v46  ;;  %v632_v53 = vpop.f32.mrb[6].mxu0  ;;  %v644_v54 = vpop.f32.mrb[6].mxu1 }
 0x104   : > { %v633_v55 = vpop.f32.mrb[7].mxu0  ;;  %v645_v56 = vpop.f32.mrb[7].mxu1 }
 0x105   : > { %588 = vst [vmem:[%s175_s4] sm:$0xff] %v587_v49   ;;  %605 = vst [vmem:[%s175_s4 + $0x10] sm:$0xff] %v597_v50   ;;  %v404_v57 = vadd.f32 %v631_v51, %v540_v26  ;;  %v420_v58 = vadd.f32 %v643_v52, %v540_v26  ;;  %v634_v59 = vadd.f32 %v633_v55, %v632_v53 }
 0x106   : > { %v646_v60 = vadd.f32 %v645_v56, %v644_v54 }
 0x107   : > { %v407_v61 = vadd.f32 %v634_v59, %v540_v26  ;;  %v428_v63 = vmax.f32 %v404_v57, 0.0  ;;  %v432_v0 = vmax.f32 %v420_v58, 0.0 }
 0x108   : > { %v423_v62 = vadd.f32 %v646_v60, %v540_v26 }
 0x109   : > { %v429_v1 = vmax.f32 %v407_v61, 0.0 }
 0x10a   : > { %v433_v2 = vmax.f32 %v423_v62, 0.0 }
 0x10b   : > { %v592_v3 = vpack.c.bf16 %v429_v1, %v428_v63 }
 0x10c   : > { %v602_v4 = vpack.c.bf16 %v433_v2, %v432_v0 }
 0x10d   : > { %604 = vst [vmem:[%s175_s4 + $0x8] sm:$0xff] %v592_v3  }
 0x10e   : > { %606 = vst [vmem:[%s175_s4 + $0x18] sm:$0xff] %v602_v4  }
 0x10f PF: > { %s13_s12 = sadd.s32 1, %s705_s12  }
 0x110   : > { %p10_p4 = scmp.ge.s32.totalorder %s13_s12, 4  }
 0x112   :  { %12 = sbr.rel (!%p10_p4) target bundleno = 1 (0x1), region = 62 }

// kernel: vae_forward.17
= control target key start
LH: loop header
LB: loop body
LE: loop exit
PB: predicated region body
PF: predicated region fallthrough
CT: control target
= control target key end

     0   :  { %s1065_s18 = smov 0   ;;  %s1067_s19 = smov 0   ;;  %s1233_s0 = inlined_call_operand.vmem [shape: bf16[128,512], index: 0, kind: input, shape index: {}]   ;;  %s1234_s1 = inlined_call_operand.vmem [shape: bf16[128,128], index: 1, kind: input, shape index: {}]   ;;  %s1235_s2 = inlined_call_operand.vmem [shape: f32[128,1], index: 2, kind: input, shape index: {}]   ;;  %s1236_s3 = inlined_call_operand.vmem [shape: f32[4,128], index: 3, kind: input, shape index: {}]   ;;  %s1237_s4 = inlined_call_operand.vmem [shape: f32[4,1], index: 4, kind: input, shape index: {}]   ;;  %s1238_s5 = inlined_call_operand.vmem [shape: f32[4,512], index: 5, kind: output, shape index: {}]  }
   0x1   :  { %s1069_s20 = smov 0  }
   0x2 LB: > { %s805_s21 = sadd.s32 4294967295, %s1029_s20   ;;  %s1082_s22 = sadd.s32 1, %s1029_s20   ;;  %s1029_s20 = sphi %s1069_s20, %s1241_s20   ;;  %s1025_s19 = sphi %s1067_s19, %s1240_s19   ;;  %s1021_s18 = sphi %s1065_s18, %s1239_s18  }
   0x3   : > { %s19_s23 = ssub.s32 %s1029_s20, %s1082_s22  ;;  %s22_s24 = sadd.s32 1, %s1025_s19 }
   0x4   : > { %p20_p0 = scmp.eq.s32.totalorder %s19_s23, 0  ;;  %p29_p1 = scmp.ne.s32.totalorder %s1025_s19, %s1021_s18 }
   0x5   : > { %p30_p2 = scmp.eq.s32.totalorder %s1029_s20, 0  ;;  %p808_p4 = scmp.ge.s32.totalorder %s1029_s20, 4 }
   0x6   : > { %s1091_s25 = scalar_select %p20_p0, %s1025_s19, %s22_s24  }
   0x7   : > { %p31_p3 = por %p30_p2, %p29_p1  ;;  %177 = sbr.rel (%p808_p4) target bundleno = 29 (0x1d), region = 32 }
   0xe   : > { %180 = sbr.rel (!%p31_p3) target bundleno = 29 (0x1d), region = 36  ;;  %s182_s26 = sand.u32 (%p31_p3), 1, %s1025_s19  }
   0xf   : > { %s810_s27 = sshll.u32 (%p31_p3), %s1029_s20, 2  ;;  %s809_s28 = sshll.u32 (%p31_p3), %s182_s26, 6 }
  0x10   : > { %s1099_s6 = scalar_lea.vmem (%p31_p3), %s1233_s0, %s810_s27  ;;  %s184_s7 = scalar_lea.vmem (%p31_p3), [#allocation2], %s809_s28 }
  0x11   : > { %v202_v0 = vld [vmem:[%s1099_s6] sm:$0xf] (%p31_p3)  ;;  %v204_v1 = vld [vmem:[%s1099_s6 + $0x10] sm:$0xf] (%p31_p3) }
  0x12   : > { %203 = vst [vmem:[%s184_s7] sm:$0xf] (%p31_p3), %v202_v0  ;;  %205 = vst [vmem:[%s184_s7 + $0x4] sm:$0xf] (%p31_p3), %v204_v1  ;;  %v206_v2 = vld [vmem:[%s1099_s6 + $0x20] sm:$0xf] (%p31_p3) }
  0x13   : > { %v208_v3 = vld [vmem:[%s1099_s6 + $0x30] sm:$0xf] (%p31_p3)  ;;  %v210_v4 = vld [vmem:[%s1099_s6 + $0x40] sm:$0xf] (%p31_p3)  ;;  %207 = vst [vmem:[%s184_s7 + $0x8] sm:$0xf] (%p31_p3), %v206_v2 }
  0x14   : > { %209 = vst [vmem:[%s184_s7 + $0xc] sm:$0xf] (%p31_p3), %v208_v3  ;;  %211 = vst [vmem:[%s184_s7 + $0x10] sm:$0xf] (%p31_p3), %v210_v4  ;;  %v212_v5 = vld [vmem:[%s1099_s6 + $0x50] sm:$0xf] (%p31_p3) }
  0x15   : > { %v214_v6 = vld [vmem:[%s1099_s6 + $0x60] sm:$0xf]  ;;  %v216_v7 = vld [vmem:[%s1099_s6 + $0x70] sm:$0xf]  ;;  %213 = vst [vmem:[%s184_s7 + $0x14] sm:$0xf] %v212_v5 }
  0x16   : > { %215 = vst [vmem:[%s184_s7 + $0x18] sm:$0xf] %v214_v6  ;;  %217 = vst [vmem:[%s184_s7 + $0x1c] sm:$0xf] %v216_v7  ;;  %v218_v8 = vld [vmem:[%s1099_s6 + $0x80] sm:$0xf] }
  0x17   : > { %v220_v9 = vld [vmem:[%s1099_s6 + $0x90] sm:$0xf]  ;;  %v222_v10 = vld [vmem:[%s1099_s6 + $0xa0] sm:$0xf]  ;;  %219 = vst [vmem:[%s184_s7 + $0x20] sm:$0xf] %v218_v8 }
  0x18   : > { %221 = vst [vmem:[%s184_s7 + $0x24] sm:$0xf] %v220_v9  ;;  %223 = vst [vmem:[%s184_s7 + $0x28] sm:$0xf] %v222_v10  ;;  %v224_v11 = vld [vmem:[%s1099_s6 + $0xb0] sm:$0xf] }
  0x19   : > { %v226_v12 = vld [vmem:[%s1099_s6 + $0xc0] sm:$0xf]  ;;  %v228_v13 = vld [vmem:[%s1099_s6 + $0xd0] sm:$0xf]  ;;  %225 = vst [vmem:[%s184_s7 + $0x2c] sm:$0xf] %v224_v11 }
  0x1a   : > { %227 = vst [vmem:[%s184_s7 + $0x30] sm:$0xf] %v226_v12  ;;  %229 = vst [vmem:[%s184_s7 + $0x34] sm:$0xf] %v228_v13  ;;  %v230_v14 = vld [vmem:[%s1099_s6 + $0xe0] sm:$0xf] }
  0x1b   : > { %v232_v15 = vld [vmem:[%s1099_s6 + $0xf0] sm:$0xf]  ;;  %231 = vst [vmem:[%s184_s7 + $0x38] sm:$0xf] %v230_v14 }
  0x1c   : > { %233 = vst [vmem:[%s184_s7 + $0x3c] sm:$0xf] %v232_v15 }
  0x1d PF: > { %p811_p5 = scmp.ge.s32.totalorder %s1029_s20, 1  ;;  %p287_p6 = scmp.lt.s32.totalorder %s1029_s20, 5 }
  0x1f   : > { %p288_p7 = pnand %p811_p5, %p287_p6 }
  0x20   : > { %s294_s8 = sand.u32 (!%p288_p7), 1, %s1021_s18   ;;  %v995_v16 = vld [vmem:[%s1234_s1] sm:$0xff] (!%p288_p7)   ;;  %v1031_v19 = vmov (!%p288_p7), 0   ;;  %v359_v24 = vld [vmem:[%s1235_s2 + $0x10] sm:$0xff] (!%p288_p7)  ;;  %v358_v25 = vld [vmem:[%s1235_s2 + $0x8] sm:$0xff] (!%p288_p7)  ;;  %v1032_v50 = vmov (!%p288_p7), 0.0|0.0  }
  0x21   : > { %291 = sbr.rel (%p288_p7) target bundleno = 561 (0x231), region = 77  ;;  %s812_s11 = sshll.u32 (!%p288_p7), %s294_s8, 6  ;;  %882 = vmatprep.mubr.bf16.mxu0 (!%p288_p7), %v995_v16  ;;  %985 = vset.pattern.permute.xlu0 (!%p288_p7), %v1031_v19  ;;  %v357_v23 = vld [vmem:[%s1235_s2] sm:$0xff] (!%p288_p7)  ;;  %v360_v26 = vld [vmem:[%s1235_s2 + $0x18] sm:$0xff] (!%p288_p7)  ;;  %v362_v29 = vld [vmem:[%s1235_s2 + $0x28] sm:$0xff] (!%p288_p7)  ;;  %vm1033_vm0 = vmmov (!%p288_p7), 0  }
  0x22   : > { %s1123_s12 = scalar_lea.vmem (!%p288_p7), [#allocation2], %s812_s11  ;;  %986 = vset.pattern.permute.xlu1 (!%p288_p7), %v1031_v19  ;;  %375 = vperm.xlu0 (!%p288_p7), %985, %v357_v23   ;;  %v361_v28 = vld [vmem:[%s1235_s2 + $0x20] sm:$0xff] (!%p288_p7)  ;;  %v363_v31 = vld [vmem:[%s1235_s2 + $0x30] sm:$0xff] (!%p288_p7)  ;;  %v364_v32 = vld [vmem:[%s1235_s2 + $0x38] sm:$0xff] (!%p288_p7)  ;;  %v1034_v51 = vmov (!%p288_p7), 0.0   ;;  %p320_p8 = scmp.lt.s32.totalorder (!%p288_p7), %s805_s21, 3 }
  0x23   : > { %v987_v17 = vld [vmem:[%s1123_s12] sm:$0xff] (!%p288_p7)   ;;  %v988_v18 = vld [vmem:[%s1123_s12 + $0x8] sm:$0xff] (!%p288_p7)   ;;  %v989_v20 = vld [vmem:[%s1123_s12 + $0x10] sm:$0xff] (!%p288_p7)   ;;  %385 = vperm.xlu1 (!%p288_p7), %986, %v359_v24   ;;  %933 = vmatprep.subr.bf16.mxu1 (!%p288_p7), %v1032_v50 }
  0x24   : > { %866 = vmatprep.subr.bf16.mxu0 (!%p288_p7), %v987_v17  ;;  %v990_v21 = vld [vmem:[%s1123_s12 + $0x18] sm:$0xff] (!%p288_p7)   ;;  %v991_v22 = vld [vmem:[%s1123_s12 + $0x20] sm:$0xff] (!%p288_p7)   ;;  %v992_v27 = vld [vmem:[%s1123_s12 + $0x28] sm:$0xff] (!%p288_p7)   ;;  %930 = vmatprep.mubr.msk.f32.mxu1 (!%p288_p7), %vm1033_vm0, %v1034_v51 }
  0x25   : > { %867 = vmatpush3.bf16.msra.mxu0 (!%p288_p7), %v987_v17  ;;  %v993_v30 = vld [vmem:[%s1123_s12 + $0x30] sm:$0xff] (!%p288_p7)   ;;  %v994_v33 = vld [vmem:[%s1123_s12 + $0x38] sm:$0xff] (!%p288_p7)   ;;  %v365_v34 = vld [vmem:[%s1235_s2 + $0x40] sm:$0xff] (!%p288_p7) }
  0x26   : > { %868 = vmatprep.subr.bf16.mxu0 (!%p288_p7), %v988_v18  ;;  %380 = vperm.xlu0 (!%p288_p7), %985, %v358_v25   ;;  %v366_v35 = vld [vmem:[%s1235_s2 + $0x48] sm:$0xff] (!%p288_p7)  ;;  %v997_v37 = vld [vmem:[%s1234_s1 + $0x10] sm:$0xff] (!%p288_p7)   ;;  %v368_v39 = vld [vmem:[%s1235_s2 + $0x58] sm:$0xff] (!%p288_p7) }
  0x27   : > { %390 = vperm.xlu1 (!%p288_p7), %986, %v360_v26   ;;  %v996_v36 = vld [vmem:[%s1234_s1 + $0x8] sm:$0xff] (!%p288_p7)   ;;  %v367_v38 = vld [vmem:[%s1235_s2 + $0x50] sm:$0xff] (!%p288_p7)  ;;  %v369_v40 = vld [vmem:[%s1235_s2 + $0x60] sm:$0xff] (!%p288_p7) }
  0x28   : > { %v370_v41 = vld [vmem:[%s1235_s2 + $0x68] sm:$0xff]  ;;  %v998_v42 = vld [vmem:[%s1234_s1 + $0x18] sm:$0xff]   ;;  %v999_v43 = vld [vmem:[%s1234_s1 + $0x20] sm:$0xff]   ;;  %s1243_s21 = smov (!%p320_p8, %s805_s21), 3 }
  0x29   : > { %869 = vmatpush3.bf16.msra.mxu0 %v988_v18  ;;  %v371_v44 = vld [vmem:[%s1235_s2 + $0x70] sm:$0xff]  ;;  %v372_v45 = vld [vmem:[%s1235_s2 + $0x78] sm:$0xff]  ;;  %v663_v46 = vld [vmem:[%s1237_s4] sm:$0xf]  ;;  %s813_s28 = sshll.u32 %s1243_s21, 2 }
  0x2a   : > { %870 = vmatprep.subr.bf16.mxu0 %v989_v20  ;;  %395 = vperm.xlu0 %985, %v361_v28   ;;  %v1000_v47 = vld [vmem:[%s1234_s1 + $0x28] sm:$0xff]   ;;  %v1001_v48 = vld [vmem:[%s1234_s1 + $0x30] sm:$0xff]   ;;  %v1002_v49 = vld [vmem:[%s1234_s1 + $0x38] sm:$0xff]   ;;  %s323_s6 = scalar_lea.vmem %s1238_s5, %s813_s28 }
  0x2b   : > { %400 = vperm.xlu1 %986, %v362_v29  }
  0x2d   : > { %871 = vmatpush3.bf16.msra.mxu0 %v989_v20 }
  0x2e   : > { %872 = vmatprep.subr.bf16.mxu0 %v990_v21  ;;  %405 = vperm.xlu0 %985, %v363_v31  }
  0x2f   : > { %410 = vperm.xlu1 %986, %v364_v32  }
  0x31   : > { %873 = vmatpush3.bf16.msra.mxu0 %v990_v21 }
  0x32   : > { %874 = vmatprep.subr.bf16.mxu0 %v991_v22  ;;  %415 = vperm.xlu0 %985, %v365_v34  }
  0x33   : > { %420 = vperm.xlu1 %986, %v366_v35  }
  0x35   : > { %875 = vmatpush3.bf16.msra.mxu0 %v991_v22 }
  0x36   : > { %876 = vmatprep.subr.bf16.mxu0 %v992_v27  ;;  %425 = vperm.xlu0 %985, %v367_v38  }
  0x37   : > { %430 = vperm.xlu1 %986, %v368_v39  }
  0x39   : > { %877 = vmatpush3.bf16.msra.mxu0 %v992_v27 }
  0x3a   : > { %878 = vmatprep.subr.bf16.mxu0 %v993_v30  ;;  %435 = vperm.xlu0 %985, %v369_v40  }
  0x3b   : > { %440 = vperm.xlu1 %986, %v370_v41  }
  0x3d   : > { %879 = vmatpush3.bf16.msra.mxu0 %v993_v30 }
  0x3e   : > { %880 = vmatprep.subr.bf16.mxu0 %v994_v33  ;;  %445 = vperm.xlu0 %985, %v371_v44  }
  0x3f   : > { %450 = vperm.xlu1 %986, %v372_v45  }
  0x41   : > { %881 = vmatpush3.bf16.msra.mxu0 %v994_v33 }
  0x42   : > { %666 = vperm.xlu0 %985, %v663_v46  }
  0x44   : > { %883 = vmatmul.mubr.bf16.vlgmr.msra.gmra.mrb[0].mxu0 %v996_v36 }
  0x45   : > { %886 = vmatprep.mubr.bf16.mxu0 %v997_v37 }
  0x4c   : > { %887 = vmatmul.mubr.bf16.gmra.mrb[4].mxu0 %v998_v42 }
  0x4d   : > { %890 = vmatprep.mubr.bf16.mxu0 %v999_v43 }
  0x54   : > { %891 = vmatmul.mubr.bf16.gmra.mrb[8].mxu0 %v1000_v47 }
  0x55   : > { %894 = vmatprep.mubr.bf16.mxu0 %v1001_v48 }
  0x5c   : > { %895 = vmatmul.mubr.bf16.gmra.mrb[12].mxu0 %v1002_v49 }
  0xa1   : > { %v376_v52 = vpop.permute.xlu0 %375 }
  0xa2   : > { %v386_v53 = vpop.permute.xlu1 %385 }
  0xa5   : > { %v381_v54 = vpop.permute.xlu0 %380 }
  0xa6   : > { %v391_v55 = vpop.permute.xlu1 %390 }
  0xa9   : > { %v396_v56 = vpop.permute.xlu0 %395 }
  0xaa   : > { %v401_v57 = vpop.permute.xlu1 %400 }
  0xad   : > { %v406_v58 = vpop.permute.xlu0 %405 }
  0xae   : > { %v411_v62 = vpop.permute.xlu1 %410 }
  0xb1   : > { %v416_v6 = vpop.permute.xlu0 %415 }
  0xb2   : > { %v421_v10 = vpop.permute.xlu1 %420 }
  0xb5   : > { %v426_v19 = vpop.permute.xlu0 %425 }
  0xb6   : > { %v431_v23 = vpop.permute.xlu1 %430 }
  0xb9   : > { %v436_v31 = vpop.permute.xlu0 %435 }
  0xba   : > { %v441_v36 = vpop.permute.xlu1 %440 }
  0xbd   : > { %v446_v43 = vpop.permute.xlu0 %445 }
  0xbe   : > { %v451_v48 = vpop.permute.xlu1 %450 }
 0x117   : > { %v884_v59 = vpop.f32.mrb[0].mxu0 }
 0x118   : > { %v592_v60 = vadd.f32 %v884_v59, %v386_v53  ;;  %v583_v61 = vpop.f32.mrb[1].mxu0 }
 0x119   : > { %v584_v63 = vadd.f32 %v583_v61, %v376_v52  ;;  %v885_v0 = vpop.f32.mrb[2].mxu0  ;;  %v662_v61 = vld [vmem:[%s1236_s3] sm:$0xf] }
 0x11a   : > { %v595_v1 = vadd.f32 %v885_v0, %v391_v55  ;;  %v586_v2 = vpop.f32.mrb[3].mxu0  ;;  %v648_v4 = vmax.f32 %v592_v60, 0.0 }
 0x11b   : > { %v587_v3 = vadd.f32 %v586_v2, %v381_v54  ;;  %v646_v7 = vmax.f32 %v584_v63, 0.0 }
 0x11c   : > { %v649_v5 = vmax.f32 %v595_v1, 0.0 }
 0x11d   : > { %v647_v8 = vmax.f32 %v587_v3, 0.0 }
 0x11e   : > { %v937_v9 = vpack.c.bf16 %v649_v5, %v648_v4 }
 0x11f   : > { %v888_v11 = vpop.f32.mrb[4].mxu0  ;;  %v934_v12 = vpack.c.bf16 %v647_v8, %v646_v7 }
 0x120   : > { %v608_v13 = vadd.f32 %v888_v11, %v406_v58  ;;  %v599_v14 = vpop.f32.mrb[5].mxu0 }
 0x121   : > { %v600_v15 = vadd.f32 %v599_v14, %v396_v56  ;;  %v889_v16 = vpop.f32.mrb[6].mxu0  ;;  %935 = vmatpush3.bf16.msra.mxu1 %v934_v12 }
 0x122   : > { %v611_v17 = vadd.f32 %v889_v16, %v411_v62  ;;  %v602_v18 = vpop.f32.mrb[7].mxu0  ;;  %936 = vmatprep.subr.bf16.mxu1 %v1032_v50  ;;  %v652_v21 = vmax.f32 %v608_v13, 0.0  ;;  %v667_v62 = vpop.permute.xlu0 %666 }
 0x123   : > { %v603_v20 = vadd.f32 %v602_v18, %v401_v57  ;;  %v650_v24 = vmax.f32 %v600_v15, 0.0 }
 0x124   : > { %v653_v22 = vmax.f32 %v611_v17, 0.0 }
 0x125   : > { %v651_v25 = vmax.f32 %v603_v20, 0.0  ;;  %938 = vmatpush3.bf16.msra.mxu1 %v937_v9 }
 0x126   : > { %v943_v26 = vpack.c.bf16 %v653_v22, %v652_v21  ;;  %939 = vmatprep.subr.bf16.mxu1 %v1032_v50 }
 0x127   : > { %v940_v27 = vpack.c.bf16 %v651_v25, %v650_v24  ;;  %v892_v28 = vpop.f32.mrb[8].mxu0 }
 0x128   : > { %v624_v29 = vadd.f32 %v892_v28, %v426_v19  ;;  %v615_v30 = vpop.f32.mrb[9].mxu0 }
 0x129   : > { %v616_v32 = vadd.f32 %v615_v30, %v416_v6  ;;  %v893_v33 = vpop.f32.mrb[10].mxu0  ;;  %941 = vmatpush3.bf16.msra.mxu1 %v940_v27 }
 0x12a   : > { %v627_v34 = vadd.f32 %v893_v33, %v431_v23  ;;  %v618_v35 = vpop.f32.mrb[11].mxu0  ;;  %942 = vmatprep.subr.bf16.mxu1 %v1032_v50  ;;  %v656_v38 = vmax.f32 %v624_v29, 0.0 }
 0x12b   : > { %v619_v37 = vadd.f32 %v618_v35, %v421_v10  ;;  %v654_v40 = vmax.f32 %v616_v32, 0.0 }
 0x12c   : > { %v657_v39 = vmax.f32 %v627_v34, 0.0 }
 0x12d   : > { %v655_v41 = vmax.f32 %v619_v37, 0.0  ;;  %944 = vmatpush3.bf16.msra.mxu1 %v943_v26 }
 0x12e   : > { %v949_v42 = vpack.c.bf16 %v657_v39, %v656_v38  ;;  %945 = vmatprep.subr.bf16.mxu1 %v1032_v50 }
 0x12f   : > { %v946_v44 = vpack.c.bf16 %v655_v41, %v654_v40  ;;  %v896_v45 = vpop.f32.mrb[12].mxu0 }
 0x130   : > { %v640_v46 = vadd.f32 %v896_v45, %v446_v43  ;;  %v631_v47 = vpop.f32.mrb[13].mxu0 }
 0x131   : > { %v632_v49 = vadd.f32 %v631_v47, %v436_v31  ;;  %v897_v51 = vpop.f32.mrb[14].mxu0  ;;  %947 = vmatpush3.bf16.msra.mxu1 %v946_v44 }
 0x132   : > { %v643_v52 = vadd.f32 %v897_v51, %v451_v48  ;;  %v634_v53 = vpop.f32.mrb[15].mxu0  ;;  %948 = vmatprep.subr.bf16.mxu1 %v1032_v50  ;;  %v660_v55 = vmax.f32 %v640_v46, 0.0 }
 0x133   : > { %v635_v54 = vadd.f32 %v634_v53, %v441_v36  ;;  %v658_v57 = vmax.f32 %v632_v49, 0.0 }
 0x134   : > { %v661_v56 = vmax.f32 %v643_v52, 0.0 }
 0x135   : > { %v659_v58 = vmax.f32 %v635_v54, 0.0  ;;  %950 = vmatpush3.bf16.msra.mxu1 %v949_v42 }
 0x136   : > { %v955_v59 = vpack.c.bf16 %v661_v56, %v660_v55  ;;  %951 = vmatprep.subr.bf16.mxu1 %v1032_v50 }
 0x137   : > { %v952_v60 = vpack.c.bf16 %v659_v58, %v658_v57 }
 0x139   : > { %953 = vmatpush3.bf16.msra.mxu1 %v952_v60 }
 0x13a   : > { %954 = vmatprep.subr.bf16.mxu1 %v1032_v50 }
 0x13d   : > { %956 = vmatpush3.bf16.msra.mxu1 %v955_v59 }
 0x140   : > { %931 = vmatmul.mubr.f32.vlgmr.msra.gmra.mrb[0].mxu1 %v662_v61 }
 0x213   : > { %v735_v63 = vpop.f32.mrb[0].mxu1 }
 0x214   : > { %v736_v0 = vadd.f32 %v735_v63, %v667_v62  ;;  %v932_v1 = vpop.f32.mrb[1].mxu1 }
 0x216   : > { %v830_v2 = vmul.f32 -1.442695, %v736_v0 }
 0x218   : > { %1003 = vpow2.f32 %v830_v2 }
 0x222   : > { %v1004_v3 = vpop.eup %1003 }
 0x223   : > { %v742_v4 = vadd.f32 1.0, %v1004_v3 }
 0x225   : > { %1005 = vrcp.f32 %v742_v4 }
 0x22f   : > { %v1006_v50 = vpop.eup %1005 }
 0x230   : > { %745 = vst [vmem:[%s323_s6] sm:$0xf] %v1006_v50 }
 0x231 PF: > { %p12_p9 = scmp.ge.s32.totalorder %s1082_s22, 6   ;;  %s1239_s18 = smov %s1025_s19 }
 0x232   : > { %s1240_s19 = smov %s1091_s25  ;;  %s1241_s20 = smov %s1082_s22 }
 0x233   :  { %14 = sbr.rel (!%p12_p9) target bundleno = 2 (0x2), region = 116 }

</bundles_post_ra>
